<compile_context>
chip_gen: v7x
topology: tpu7x:2x2x1
jax: 0.10.0
libtpu: 0.0.40
codegen_flags: <defaults>
</compile_context>

<pallas_src>
import jax
import jax.numpy as jnp
from jax.experimental import pallas as pl
from jax.experimental.pallas import tpu as pltpu


# -----------------------------------------------------------------------------
# Kernel
# -----------------------------------------------------------------------------
def _fusion_softmax_kernel(
    x_ref,                       # (N, Cin, TR, L)  input block (f32 or bf16)
    w1_ref, b1_ref,              # SMEM: (Cin, 16), (16,)   BN1 folded in
    w2_ref, b2_ref,              # SMEM: (16, 8),  (8,)     BN2 folded in
    w3_ref, b3_ref,              # SMEM: (8, 4),   (4,)     BN3 folded in
    w4_ref, b4_ref,              # SMEM: (4,),     (1,)
    o_ref,                       # (N, TR, L) f32 output block
):
    # Load the pixel tile once; per-channel slices along a *leading* dim are
    # free (no lane/sublane relayout).  Upcast bf16 -> f32 per channel slab.
    x = x_ref[...]                                   # (N, Cin, TR, L)
    cin = x.shape[1]
    h = [x[:, c].astype(jnp.float32) for c in range(cin)]   # cin x (N, TR, L)

    def dense_relu(h_in, w_ref, b_ref):
        """1x1 conv + (folded BN) + ReLU as unrolled VPU MAC chains.

        Weights are scalars read from SMEM; every vector op runs on a
        lane-dense (N, TR, L) slab, never touching the MXU/XLU.
        """
        n_in, n_out = w_ref.shape
        outs = []
        for d in range(n_out):
            acc = h_in[0] * w_ref[0, d] + b_ref[d]   # bias folded into 1st MAC
            for c in range(1, n_in):
                acc = acc + h_in[c] * w_ref[c, d]
            outs.append(jnp.maximum(acc, 0.0))
        return outs

    h = dense_relu(h, w1_ref, b1_ref)                # 16 x (N, TR, L)
    h = dense_relu(h, w2_ref, b2_ref)                #  8 x (N, TR, L)
    h = dense_relu(h, w3_ref, b3_ref)                #  4 x (N, TR, L)

    # conv1_4 (+ relu): single output channel.
    logits = h[0] * w4_ref[0] + b4_ref[0]
    for c in range(1, len(h)):
        logits = logits + h[c] * w4_ref[c]
    logits = jnp.maximum(logits, 0.0)                # (N, TR, L)

    # Softmax over dim 0 (agents), per pixel.  Leading-dim reduction -> pure
    # elementwise VPU work; exp + reciprocal go to the EUP.
    m = jnp.max(logits, axis=0, keepdims=True)       # (1, TR, L)
    e = jnp.exp(logits - m)
    s = jnp.sum(e, axis=0, keepdims=True)
    o_ref[...] = e * pl.reciprocal(s, approx=True)


# -----------------------------------------------------------------------------
# Wrapper
# -----------------------------------------------------------------------------
def _largest_divisor(total, limit, quantum):
    """Largest multiple of `quantum` that is <= limit and divides `total` (or 0)."""
    c = (min(limit, total) // quantum) * quantum
    while c >= quantum:
        if total % c == 0:
            return c
        c -= quantum
    return 0


def pixel_weighted_fusion_softmax(x_nchw, folded_params, *,
                                  target_block_pixels=16384,
                                  max_lanes=2048,
                                  vmem_budget_bytes=24 << 20):
    """x_nchw: (N, 2*channel, H, W), f32 or bf16.  Returns (N, 1, H, W) f32."""
    (w1, b1), (w2, b2), (w3, b3), (w4, b4) = folded_params
    N, C, H, W = x_nchw.shape
    P = H * W
    itemsize = jnp.dtype(x_nchw.dtype).itemsize

    # Lane width: largest multiple of 128 dividing P (lane-dense loads/stores),
    # otherwise the full pixel range goes on lanes.
    L = _largest_divisor(P, max_lanes, 128) or P
    R = P // L

    # VMEM working set per pixel row: double-buffered in/out blocks plus the
    # f32 intermediates (upcast input channels + 16 + 8 + 4 + 1 hidden slabs).
    per_row = N * L * (2 * C * itemsize + 2 * 4 + (C + 16 + 8 + 4 + 1) * 4)
    rows_budget = max(1, vmem_budget_bytes // max(per_row, 1))
    rows_target = max(1, target_block_pixels // L)
    row_limit = min(rows_budget, rows_target)
    if R <= row_limit:
        TR = R
    else:
        TR = _largest_divisor(R, row_limit, 8) or R

    # Prefer >= 2 grid steps (megacore sharding on v7x) when the block is big
    # enough to amortise per-step overhead and the split keeps 8-row alignment.
    if R // TR == 1 and R % 16 == 0 and (R // 2) * L >= 8192:
        TR = R // 2

    grid = (R // TR,)

    # Pixels-last view: pure reshape, no host-side transpose.
    x_pix = x_nchw.reshape(N, C, R, L)

    # Params in kernel-friendly shapes (weights (cin, cout), biases 1-D).
    w4r = w4.reshape(-1)                 # (4,)
    b4r = b4.reshape(-1)                 # (1,)

    smem_spec = pl.BlockSpec(memory_space=pltpu.MemorySpace.SMEM)

    # Explicit VMEM budget derived from the actual block sizes (+ headroom).
    required = per_row * TR + (6 << 20)
    vmem_limit = int(min(max(required, 32 << 20), 48 << 20))

    out = pl.pallas_call(
        _fusion_softmax_kernel,
        out_shape=jax.ShapeDtypeStruct((N, R, L), jnp.float32),
        grid=grid,
        in_specs=[
            pl.BlockSpec((N, C, TR, L), lambda i: (0, 0, i, 0)),
            smem_spec, smem_spec,        # w1, b1
            smem_spec, smem_spec,        # w2, b2
            smem_spec, smem_spec,        # w3, b3
            smem_spec, smem_spec,        # w4, b4
        ],
        out_specs=pl.BlockSpec((N, TR, L), lambda i: (0, i, 0)),
        compiler_params=pltpu.CompilerParams(
            dimension_semantics=("parallel",),
            vmem_limit_bytes=vmem_limit,
        ),
    )(x_pix, w1, b1, w2, b2, w3, b3, w4r, b4r)

    return out.reshape(N, 1, H, W)


# -----------------------------------------------------------------------------
# Deterministic parameter construction (synthetic; shapes per module __init__)
# -----------------------------------------------------------------------------
def _fold_bn(w, b, gamma, beta, mean, var, eps=1e-5):
    """Fold conv(1x1) + BatchNorm (inference) into an equivalent conv."""
    s = gamma / jnp.sqrt(var + eps)                 # (cout,)
    return w * s[None, :], (b - mean) * s + beta


def make_params(channel, key):
    cin = channel * 2
    dims = [(cin, 16), (16, 8), (8, 4), (4, 1)]
    keys = jax.random.split(key, 4 * len(dims))
    layers = []
    for li, (di, do) in enumerate(dims):
        kw, kb, kg, km = keys[4 * li: 4 * li + 4]
        w = 0.2 * jax.random.normal(kw, (di, do), jnp.float32)
        b = 0.1 * jax.random.normal(kb, (do,), jnp.float32)
        if li < 3:  # BN layers exist only after conv1_1..conv1_3
            gamma = 1.0 + 0.1 * jax.random.normal(kg, (do,), jnp.float32)
            beta = 0.05 * jax.random.normal(km, (do,), jnp.float32)
            mean = 0.1 * jax.random.normal(jax.random.fold_in(kg, 1),
                                           (do,), jnp.float32)
            var = jax.random.uniform(jax.random.fold_in(km, 1), (do,),
                                     jnp.float32, 0.5, 1.5)
            w, b = _fold_bn(w, b, gamma, beta, mean, var)
        layers.append((w, b))
    return layers


# -----------------------------------------------------------------------------
# Pure-JAX reference (same math, no Pallas)
# -----------------------------------------------------------------------------
def reference(x_nchw, folded_params):
    (w1, b1), (w2, b2), (w3, b3), (w4, b4) = folded_params
    N, C, H, W = x_nchw.shape
    h = jnp.transpose(x_nchw, (0, 2, 3, 1)).reshape(N, H * W, C)
    h = h.astype(jnp.float32)
    h = jax.nn.relu(h @ w1 + b1)
    h = jax.nn.relu(h @ w2 + b2)
    h = jax.nn.relu(h @ w3 + b3)
    logits = jax.nn.relu(h @ w4 + b4)[..., 0]       # (N, P)
    out = jax.nn.softmax(logits, axis=0)            # softmax over dim 0
    return out.reshape(N, 1, H, W)


if __name__ == "__main__":
    key = jax.random.PRNGKey(0)
    kx, kp, kx2 = jax.random.split(key, 3)

    channel = 4                       # module arg -> input has 2*channel = 8 ch
    params = make_params(channel, kp)

    # --- Test 1: small module-like shape (single pixel tile) -----------------
    N, H, W = 2, 16, 16
    x = jax.random.normal(kx, (N, 2 * channel, H, W), jnp.float32)
    out = jax.block_until_ready(pixel_weighted_fusion_softmax(x, params))
    ref = reference(x, params)
    assert out.shape == (N, 1, H, W)
    # tolerance loosened slightly for the approx (EUP) reciprocal in the softmax
    assert jnp.allclose(out, ref, atol=1e-2, rtol=1e-2), "mismatch vs reference"

    # --- Test 2: larger image, default (wide-lane) tiling ---------------------
    N2, H2, W2 = 3, 64, 64
    x2 = jax.random.normal(kx2, (N2, 2 * channel, H2, W2), jnp.float32)
    ref2 = reference(x2, params)
    out2 = jax.block_until_ready(pixel_weighted_fusion_softmax(x2, params))
    assert out2.shape == (N2, 1, H2, W2)
    assert jnp.allclose(out2, ref2, atol=1e-2, rtol=1e-2), "mismatch (default tiling)"

    # --- Test 3: multi-block grid over pixel rows ------------------------------
    out3 = jax.block_until_ready(
        pixel_weighted_fusion_softmax(x2, params,
                                      target_block_pixels=1024, max_lanes=128))
    assert out3.shape == (N2, 1, H2, W2)
    assert jnp.allclose(out3, ref2, atol=1e-2, rtol=1e-2), "mismatch (multi-block)"

    # --- Test 4: bf16 input path (halves the dominant HBM stream) -------------
    out_bf16 = jax.block_until_ready(
        pixel_weighted_fusion_softmax(x.astype(jnp.bfloat16), params))
    assert out_bf16.shape == (N, 1, H, W)
    assert jnp.allclose(out_bf16, ref, atol=5e-2), "mismatch (bf16 input)"

    print("KERNEL_OK")
</pallas_src>

<mosaic_0001>
module attributes {stable_mosaic.version = 11 : i64} {
  func.func @_fusion_softmax_kernel(%arg0: i32, %arg1: memref<2x8x1x256xf32, #tpu.memory_space<vmem>>, %arg2: memref<8x16xf32, #tpu.memory_space<smem>>, %arg3: memref<16xf32, #tpu.memory_space<smem>>, %arg4: memref<16x8xf32, #tpu.memory_space<smem>>, %arg5: memref<8xf32, #tpu.memory_space<smem>>, %arg6: memref<8x4xf32, #tpu.memory_space<smem>>, %arg7: memref<4xf32, #tpu.memory_space<smem>>, %arg8: memref<4xf32, #tpu.memory_space<smem>>, %arg9: memref<1xf32, #tpu.memory_space<smem>>, %arg10: memref<2x1x256xf32, #tpu.memory_space<vmem>>) attributes {dimension_semantics = [#tpu.dimension_semantics<parallel>], iteration_bounds = array<i64: 1>, scalar_prefetch = 0 : i64, scratch_operands = 0 : i64, tpu.core_type = #tpu.core_type<tc>, window_params = [{transform_indices = @transform_0, window_bounds = array<i64: 2, 8, 1, 256>}, {transform_indices = @transform_1, window_bounds = array<i64: 8, 16>}, {transform_indices = @transform_2, window_bounds = array<i64: 16>}, {transform_indices = @transform_3, window_bounds = array<i64: 16, 8>}, {transform_indices = @transform_4, window_bounds = array<i64: 8>}, {transform_indices = @transform_5, window_bounds = array<i64: 8, 4>}, {transform_indices = @transform_6, window_bounds = array<i64: 4>}, {transform_indices = @transform_7, window_bounds = array<i64: 4>}, {transform_indices = @transform_8, window_bounds = array<i64: 1>}, {transform_indices = @transform_9, window_bounds = array<i64: 2, 1, 256>}]} {
    %c0 = arith.constant 0 : index
    %c0_0 = arith.constant 0 : index
    %c0_1 = arith.constant 0 : index
    %c0_2 = arith.constant 0 : index
    %0 = vector.load %arg1[%c0, %c0_0, %c0_1, %c0_2] : memref<2x8x1x256xf32, #tpu.memory_space<vmem>>, vector<2x8x1x256xf32>
    %1 = vector.extract_strided_slice %0 {offsets = [0, 0, 0, 0], sizes = [2, 1, 1, 256], strides = [1, 1, 1, 1]} : vector<2x8x1x256xf32> to vector<2x1x1x256xf32>
    %2 = vector.shape_cast %1 : vector<2x1x1x256xf32> to vector<2x1x256xf32>
    %3 = vector.extract_strided_slice %0 {offsets = [0, 1, 0, 0], sizes = [2, 1, 1, 256], strides = [1, 1, 1, 1]} : vector<2x8x1x256xf32> to vector<2x1x1x256xf32>
    %4 = vector.shape_cast %3 : vector<2x1x1x256xf32> to vector<2x1x256xf32>
    %5 = vector.extract_strided_slice %0 {offsets = [0, 2, 0, 0], sizes = [2, 1, 1, 256], strides = [1, 1, 1, 1]} : vector<2x8x1x256xf32> to vector<2x1x1x256xf32>
    %6 = vector.shape_cast %5 : vector<2x1x1x256xf32> to vector<2x1x256xf32>
    %7 = vector.extract_strided_slice %0 {offsets = [0, 3, 0, 0], sizes = [2, 1, 1, 256], strides = [1, 1, 1, 1]} : vector<2x8x1x256xf32> to vector<2x1x1x256xf32>
    %8 = vector.shape_cast %7 : vector<2x1x1x256xf32> to vector<2x1x256xf32>
    %9 = vector.extract_strided_slice %0 {offsets = [0, 4, 0, 0], sizes = [2, 1, 1, 256], strides = [1, 1, 1, 1]} : vector<2x8x1x256xf32> to vector<2x1x1x256xf32>
    %10 = vector.shape_cast %9 : vector<2x1x1x256xf32> to vector<2x1x256xf32>
    %11 = vector.extract_strided_slice %0 {offsets = [0, 5, 0, 0], sizes = [2, 1, 1, 256], strides = [1, 1, 1, 1]} : vector<2x8x1x256xf32> to vector<2x1x1x256xf32>
    %12 = vector.shape_cast %11 : vector<2x1x1x256xf32> to vector<2x1x256xf32>
    %13 = vector.extract_strided_slice %0 {offsets = [0, 6, 0, 0], sizes = [2, 1, 1, 256], strides = [1, 1, 1, 1]} : vector<2x8x1x256xf32> to vector<2x1x1x256xf32>
    %14 = vector.shape_cast %13 : vector<2x1x1x256xf32> to vector<2x1x256xf32>
    %15 = vector.extract_strided_slice %0 {offsets = [0, 7, 0, 0], sizes = [2, 1, 1, 256], strides = [1, 1, 1, 1]} : vector<2x8x1x256xf32> to vector<2x1x1x256xf32>
    %16 = vector.shape_cast %15 : vector<2x1x1x256xf32> to vector<2x1x256xf32>
    %c0_3 = arith.constant 0 : index
    %c0_4 = arith.constant 0 : index
    %17 = memref.load %arg2[%c0_3, %c0_4] : memref<8x16xf32, #tpu.memory_space<smem>>
    %18 = vector.broadcast %17 : f32 to vector<2x1x256xf32>
    %19 = arith.mulf %2, %18 : vector<2x1x256xf32>
    %c0_5 = arith.constant 0 : index
    %20 = memref.load %arg3[%c0_5] : memref<16xf32, #tpu.memory_space<smem>>
    %21 = vector.broadcast %20 : f32 to vector<2x1x256xf32>
    %22 = arith.addf %19, %21 : vector<2x1x256xf32>
    %c1 = arith.constant 1 : index
    %c0_6 = arith.constant 0 : index
    %23 = memref.load %arg2[%c1, %c0_6] : memref<8x16xf32, #tpu.memory_space<smem>>
    %24 = vector.broadcast %23 : f32 to vector<2x1x256xf32>
    %25 = arith.mulf %4, %24 : vector<2x1x256xf32>
    %26 = arith.addf %22, %25 : vector<2x1x256xf32>
    %c2 = arith.constant 2 : index
    %c0_7 = arith.constant 0 : index
    %27 = memref.load %arg2[%c2, %c0_7] : memref<8x16xf32, #tpu.memory_space<smem>>
    %28 = vector.broadcast %27 : f32 to vector<2x1x256xf32>
    %29 = arith.mulf %6, %28 : vector<2x1x256xf32>
    %30 = arith.addf %26, %29 : vector<2x1x256xf32>
    %c3 = arith.constant 3 : index
    %c0_8 = arith.constant 0 : index
    %31 = memref.load %arg2[%c3, %c0_8] : memref<8x16xf32, #tpu.memory_space<smem>>
    %32 = vector.broadcast %31 : f32 to vector<2x1x256xf32>
    %33 = arith.mulf %8, %32 : vector<2x1x256xf32>
    %34 = arith.addf %30, %33 : vector<2x1x256xf32>
    %c4 = arith.constant 4 : index
    %c0_9 = arith.constant 0 : index
    %35 = memref.load %arg2[%c4, %c0_9] : memref<8x16xf32, #tpu.memory_space<smem>>
    %36 = vector.broadcast %35 : f32 to vector<2x1x256xf32>
    %37 = arith.mulf %10, %36 : vector<2x1x256xf32>
    %38 = arith.addf %34, %37 : vector<2x1x256xf32>
    %c5 = arith.constant 5 : index
    %c0_10 = arith.constant 0 : index
    %39 = memref.load %arg2[%c5, %c0_10] : memref<8x16xf32, #tpu.memory_space<smem>>
    %40 = vector.broadcast %39 : f32 to vector<2x1x256xf32>
    %41 = arith.mulf %12, %40 : vector<2x1x256xf32>
    %42 = arith.addf %38, %41 : vector<2x1x256xf32>
    %c6 = arith.constant 6 : index
    %c0_11 = arith.constant 0 : index
    %43 = memref.load %arg2[%c6, %c0_11] : memref<8x16xf32, #tpu.memory_space<smem>>
    %44 = vector.broadcast %43 : f32 to vector<2x1x256xf32>
    %45 = arith.mulf %14, %44 : vector<2x1x256xf32>
    %46 = arith.addf %42, %45 : vector<2x1x256xf32>
    %c7 = arith.constant 7 : index
    %c0_12 = arith.constant 0 : index
    %47 = memref.load %arg2[%c7, %c0_12] : memref<8x16xf32, #tpu.memory_space<smem>>
    %48 = vector.broadcast %47 : f32 to vector<2x1x256xf32>
    %49 = arith.mulf %16, %48 : vector<2x1x256xf32>
    %50 = arith.addf %46, %49 : vector<2x1x256xf32>
    %cst = arith.constant 0.000000e+00 : f32
    %51 = vector.broadcast %cst : f32 to vector<2x1x256xf32>
    %52 = arith.maximumf %50, %51 : vector<2x1x256xf32>
    %c0_13 = arith.constant 0 : index
    %c1_14 = arith.constant 1 : index
    %53 = memref.load %arg2[%c0_13, %c1_14] : memref<8x16xf32, #tpu.memory_space<smem>>
    %54 = vector.broadcast %53 : f32 to vector<2x1x256xf32>
    %55 = arith.mulf %2, %54 : vector<2x1x256xf32>
    %c1_15 = arith.constant 1 : index
    %56 = memref.load %arg3[%c1_15] : memref<16xf32, #tpu.memory_space<smem>>
    %57 = vector.broadcast %56 : f32 to vector<2x1x256xf32>
    %58 = arith.addf %55, %57 : vector<2x1x256xf32>
    %c1_16 = arith.constant 1 : index
    %c1_17 = arith.constant 1 : index
    %59 = memref.load %arg2[%c1_16, %c1_17] : memref<8x16xf32, #tpu.memory_space<smem>>
    %60 = vector.broadcast %59 : f32 to vector<2x1x256xf32>
    %61 = arith.mulf %4, %60 : vector<2x1x256xf32>
    %62 = arith.addf %58, %61 : vector<2x1x256xf32>
    %c2_18 = arith.constant 2 : index
    %c1_19 = arith.constant 1 : index
    %63 = memref.load %arg2[%c2_18, %c1_19] : memref<8x16xf32, #tpu.memory_space<smem>>
    %64 = vector.broadcast %63 : f32 to vector<2x1x256xf32>
    %65 = arith.mulf %6, %64 : vector<2x1x256xf32>
    %66 = arith.addf %62, %65 : vector<2x1x256xf32>
    %c3_20 = arith.constant 3 : index
    %c1_21 = arith.constant 1 : index
    %67 = memref.load %arg2[%c3_20, %c1_21] : memref<8x16xf32, #tpu.memory_space<smem>>
    %68 = vector.broadcast %67 : f32 to vector<2x1x256xf32>
    %69 = arith.mulf %8, %68 : vector<2x1x256xf32>
    %70 = arith.addf %66, %69 : vector<2x1x256xf32>
    %c4_22 = arith.constant 4 : index
    %c1_23 = arith.constant 1 : index
    %71 = memref.load %arg2[%c4_22, %c1_23] : memref<8x16xf32, #tpu.memory_space<smem>>
    %72 = vector.broadcast %71 : f32 to vector<2x1x256xf32>
    %73 = arith.mulf %10, %72 : vector<2x1x256xf32>
    %74 = arith.addf %70, %73 : vector<2x1x256xf32>
    %c5_24 = arith.constant 5 : index
    %c1_25 = arith.constant 1 : index
    %75 = memref.load %arg2[%c5_24, %c1_25] : memref<8x16xf32, #tpu.memory_space<smem>>
    %76 = vector.broadcast %75 : f32 to vector<2x1x256xf32>
    %77 = arith.mulf %12, %76 : vector<2x1x256xf32>
    %78 = arith.addf %74, %77 : vector<2x1x256xf32>
    %c6_26 = arith.constant 6 : index
    %c1_27 = arith.constant 1 : index
    %79 = memref.load %arg2[%c6_26, %c1_27] : memref<8x16xf32, #tpu.memory_space<smem>>
    %80 = vector.broadcast %79 : f32 to vector<2x1x256xf32>
    %81 = arith.mulf %14, %80 : vector<2x1x256xf32>
    %82 = arith.addf %78, %81 : vector<2x1x256xf32>
    %c7_28 = arith.constant 7 : index
    %c1_29 = arith.constant 1 : index
    %83 = memref.load %arg2[%c7_28, %c1_29] : memref<8x16xf32, #tpu.memory_space<smem>>
    %84 = vector.broadcast %83 : f32 to vector<2x1x256xf32>
    %85 = arith.mulf %16, %84 : vector<2x1x256xf32>
    %86 = arith.addf %82, %85 : vector<2x1x256xf32>
    %cst_30 = arith.constant 0.000000e+00 : f32
    %87 = vector.broadcast %cst_30 : f32 to vector<2x1x256xf32>
    %88 = arith.maximumf %86, %87 : vector<2x1x256xf32>
    %c0_31 = arith.constant 0 : index
    %c2_32 = arith.constant 2 : index
    %89 = memref.load %arg2[%c0_31, %c2_32] : memref<8x16xf32, #tpu.memory_space<smem>>
    %90 = vector.broadcast %89 : f32 to vector<2x1x256xf32>
    %91 = arith.mulf %2, %90 : vector<2x1x256xf32>
    %c2_33 = arith.constant 2 : index
    %92 = memref.load %arg3[%c2_33] : memref<16xf32, #tpu.memory_space<smem>>
    %93 = vector.broadcast %92 : f32 to vector<2x1x256xf32>
    %94 = arith.addf %91, %93 : vector<2x1x256xf32>
    %c1_34 = arith.constant 1 : index
    %c2_35 = arith.constant 2 : index
    %95 = memref.load %arg2[%c1_34, %c2_35] : memref<8x16xf32, #tpu.memory_space<smem>>
    %96 = vector.broadcast %95 : f32 to vector<2x1x256xf32>
    %97 = arith.mulf %4, %96 : vector<2x1x256xf32>
    %98 = arith.addf %94, %97 : vector<2x1x256xf32>
    %c2_36 = arith.constant 2 : index
    %c2_37 = arith.constant 2 : index
    %99 = memref.load %arg2[%c2_36, %c2_37] : memref<8x16xf32, #tpu.memory_space<smem>>
    %100 = vector.broadcast %99 : f32 to vector<2x1x256xf32>
    %101 = arith.mulf %6, %100 : vector<2x1x256xf32>
    %102 = arith.addf %98, %101 : vector<2x1x256xf32>
    %c3_38 = arith.constant 3 : index
    %c2_39 = arith.constant 2 : index
    %103 = memref.load %arg2[%c3_38, %c2_39] : memref<8x16xf32, #tpu.memory_space<smem>>
    %104 = vector.broadcast %103 : f32 to vector<2x1x256xf32>
    %105 = arith.mulf %8, %104 : vector<2x1x256xf32>
    %106 = arith.addf %102, %105 : vector<2x1x256xf32>
    %c4_40 = arith.constant 4 : index
    %c2_41 = arith.constant 2 : index
    %107 = memref.load %arg2[%c4_40, %c2_41] : memref<8x16xf32, #tpu.memory_space<smem>>
    %108 = vector.broadcast %107 : f32 to vector<2x1x256xf32>
    %109 = arith.mulf %10, %108 : vector<2x1x256xf32>
    %110 = arith.addf %106, %109 : vector<2x1x256xf32>
    %c5_42 = arith.constant 5 : index
    %c2_43 = arith.constant 2 : index
    %111 = memref.load %arg2[%c5_42, %c2_43] : memref<8x16xf32, #tpu.memory_space<smem>>
    %112 = vector.broadcast %111 : f32 to vector<2x1x256xf32>
    %113 = arith.mulf %12, %112 : vector<2x1x256xf32>
    %114 = arith.addf %110, %113 : vector<2x1x256xf32>
    %c6_44 = arith.constant 6 : index
    %c2_45 = arith.constant 2 : index
    %115 = memref.load %arg2[%c6_44, %c2_45] : memref<8x16xf32, #tpu.memory_space<smem>>
    %116 = vector.broadcast %115 : f32 to vector<2x1x256xf32>
    %117 = arith.mulf %14, %116 : vector<2x1x256xf32>
    %118 = arith.addf %114, %117 : vector<2x1x256xf32>
    %c7_46 = arith.constant 7 : index
    %c2_47 = arith.constant 2 : index
    %119 = memref.load %arg2[%c7_46, %c2_47] : memref<8x16xf32, #tpu.memory_space<smem>>
    %120 = vector.broadcast %119 : f32 to vector<2x1x256xf32>
    %121 = arith.mulf %16, %120 : vector<2x1x256xf32>
    %122 = arith.addf %118, %121 : vector<2x1x256xf32>
    %cst_48 = arith.constant 0.000000e+00 : f32
    %123 = vector.broadcast %cst_48 : f32 to vector<2x1x256xf32>
    %124 = arith.maximumf %122, %123 : vector<2x1x256xf32>
    %c0_49 = arith.constant 0 : index
    %c3_50 = arith.constant 3 : index
    %125 = memref.load %arg2[%c0_49, %c3_50] : memref<8x16xf32, #tpu.memory_space<smem>>
    %126 = vector.broadcast %125 : f32 to vector<2x1x256xf32>
    %127 = arith.mulf %2, %126 : vector<2x1x256xf32>
    %c3_51 = arith.constant 3 : index
    %128 = memref.load %arg3[%c3_51] : memref<16xf32, #tpu.memory_space<smem>>
    %129 = vector.broadcast %128 : f32 to vector<2x1x256xf32>
    %130 = arith.addf %127, %129 : vector<2x1x256xf32>
    %c1_52 = arith.constant 1 : index
    %c3_53 = arith.constant 3 : index
    %131 = memref.load %arg2[%c1_52, %c3_53] : memref<8x16xf32, #tpu.memory_space<smem>>
    %132 = vector.broadcast %131 : f32 to vector<2x1x256xf32>
    %133 = arith.mulf %4, %132 : vector<2x1x256xf32>
    %134 = arith.addf %130, %133 : vector<2x1x256xf32>
    %c2_54 = arith.constant 2 : index
    %c3_55 = arith.constant 3 : index
    %135 = memref.load %arg2[%c2_54, %c3_55] : memref<8x16xf32, #tpu.memory_space<smem>>
    %136 = vector.broadcast %135 : f32 to vector<2x1x256xf32>
    %137 = arith.mulf %6, %136 : vector<2x1x256xf32>
    %138 = arith.addf %134, %137 : vector<2x1x256xf32>
    %c3_56 = arith.constant 3 : index
    %c3_57 = arith.constant 3 : index
    %139 = memref.load %arg2[%c3_56, %c3_57] : memref<8x16xf32, #tpu.memory_space<smem>>
    %140 = vector.broadcast %139 : f32 to vector<2x1x256xf32>
    %141 = arith.mulf %8, %140 : vector<2x1x256xf32>
    %142 = arith.addf %138, %141 : vector<2x1x256xf32>
    %c4_58 = arith.constant 4 : index
    %c3_59 = arith.constant 3 : index
    %143 = memref.load %arg2[%c4_58, %c3_59] : memref<8x16xf32, #tpu.memory_space<smem>>
    %144 = vector.broadcast %143 : f32 to vector<2x1x256xf32>
    %145 = arith.mulf %10, %144 : vector<2x1x256xf32>
    %146 = arith.addf %142, %145 : vector<2x1x256xf32>
    %c5_60 = arith.constant 5 : index
    %c3_61 = arith.constant 3 : index
    %147 = memref.load %arg2[%c5_60, %c3_61] : memref<8x16xf32, #tpu.memory_space<smem>>
    %148 = vector.broadcast %147 : f32 to vector<2x1x256xf32>
    %149 = arith.mulf %12, %148 : vector<2x1x256xf32>
    %150 = arith.addf %146, %149 : vector<2x1x256xf32>
    %c6_62 = arith.constant 6 : index
    %c3_63 = arith.constant 3 : index
    %151 = memref.load %arg2[%c6_62, %c3_63] : memref<8x16xf32, #tpu.memory_space<smem>>
    %152 = vector.broadcast %151 : f32 to vector<2x1x256xf32>
    %153 = arith.mulf %14, %152 : vector<2x1x256xf32>
    %154 = arith.addf %150, %153 : vector<2x1x256xf32>
    %c7_64 = arith.constant 7 : index
    %c3_65 = arith.constant 3 : index
    %155 = memref.load %arg2[%c7_64, %c3_65] : memref<8x16xf32, #tpu.memory_space<smem>>
    %156 = vector.broadcast %155 : f32 to vector<2x1x256xf32>
    %157 = arith.mulf %16, %156 : vector<2x1x256xf32>
    %158 = arith.addf %154, %157 : vector<2x1x256xf32>
    %cst_66 = arith.constant 0.000000e+00 : f32
    %159 = vector.broadcast %cst_66 : f32 to vector<2x1x256xf32>
    %160 = arith.maximumf %158, %159 : vector<2x1x256xf32>
    %c0_67 = arith.constant 0 : index
    %c4_68 = arith.constant 4 : index
    %161 = memref.load %arg2[%c0_67, %c4_68] : memref<8x16xf32, #tpu.memory_space<smem>>
    %162 = vector.broadcast %161 : f32 to vector<2x1x256xf32>
    %163 = arith.mulf %2, %162 : vector<2x1x256xf32>
    %c4_69 = arith.constant 4 : index
    %164 = memref.load %arg3[%c4_69] : memref<16xf32, #tpu.memory_space<smem>>
    %165 = vector.broadcast %164 : f32 to vector<2x1x256xf32>
    %166 = arith.addf %163, %165 : vector<2x1x256xf32>
    %c1_70 = arith.constant 1 : index
    %c4_71 = arith.constant 4 : index
    %167 = memref.load %arg2[%c1_70, %c4_71] : memref<8x16xf32, #tpu.memory_space<smem>>
    %168 = vector.broadcast %167 : f32 to vector<2x1x256xf32>
    %169 = arith.mulf %4, %168 : vector<2x1x256xf32>
    %170 = arith.addf %166, %169 : vector<2x1x256xf32>
    %c2_72 = arith.constant 2 : index
    %c4_73 = arith.constant 4 : index
    %171 = memref.load %arg2[%c2_72, %c4_73] : memref<8x16xf32, #tpu.memory_space<smem>>
    %172 = vector.broadcast %171 : f32 to vector<2x1x256xf32>
    %173 = arith.mulf %6, %172 : vector<2x1x256xf32>
    %174 = arith.addf %170, %173 : vector<2x1x256xf32>
    %c3_74 = arith.constant 3 : index
    %c4_75 = arith.constant 4 : index
    %175 = memref.load %arg2[%c3_74, %c4_75] : memref<8x16xf32, #tpu.memory_space<smem>>
    %176 = vector.broadcast %175 : f32 to vector<2x1x256xf32>
    %177 = arith.mulf %8, %176 : vector<2x1x256xf32>
    %178 = arith.addf %174, %177 : vector<2x1x256xf32>
    %c4_76 = arith.constant 4 : index
    %c4_77 = arith.constant 4 : index
    %179 = memref.load %arg2[%c4_76, %c4_77] : memref<8x16xf32, #tpu.memory_space<smem>>
    %180 = vector.broadcast %179 : f32 to vector<2x1x256xf32>
    %181 = arith.mulf %10, %180 : vector<2x1x256xf32>
    %182 = arith.addf %178, %181 : vector<2x1x256xf32>
    %c5_78 = arith.constant 5 : index
    %c4_79 = arith.constant 4 : index
    %183 = memref.load %arg2[%c5_78, %c4_79] : memref<8x16xf32, #tpu.memory_space<smem>>
    %184 = vector.broadcast %183 : f32 to vector<2x1x256xf32>
    %185 = arith.mulf %12, %184 : vector<2x1x256xf32>
    %186 = arith.addf %182, %185 : vector<2x1x256xf32>
    %c6_80 = arith.constant 6 : index
    %c4_81 = arith.constant 4 : index
    %187 = memref.load %arg2[%c6_80, %c4_81] : memref<8x16xf32, #tpu.memory_space<smem>>
    %188 = vector.broadcast %187 : f32 to vector<2x1x256xf32>
    %189 = arith.mulf %14, %188 : vector<2x1x256xf32>
    %190 = arith.addf %186, %189 : vector<2x1x256xf32>
    %c7_82 = arith.constant 7 : index
    %c4_83 = arith.constant 4 : index
    %191 = memref.load %arg2[%c7_82, %c4_83] : memref<8x16xf32, #tpu.memory_space<smem>>
    %192 = vector.broadcast %191 : f32 to vector<2x1x256xf32>
    %193 = arith.mulf %16, %192 : vector<2x1x256xf32>
    %194 = arith.addf %190, %193 : vector<2x1x256xf32>
    %cst_84 = arith.constant 0.000000e+00 : f32
    %195 = vector.broadcast %cst_84 : f32 to vector<2x1x256xf32>
    %196 = arith.maximumf %194, %195 : vector<2x1x256xf32>
    %c0_85 = arith.constant 0 : index
    %c5_86 = arith.constant 5 : index
    %197 = memref.load %arg2[%c0_85, %c5_86] : memref<8x16xf32, #tpu.memory_space<smem>>
    %198 = vector.broadcast %197 : f32 to vector<2x1x256xf32>
    %199 = arith.mulf %2, %198 : vector<2x1x256xf32>
    %c5_87 = arith.constant 5 : index
    %200 = memref.load %arg3[%c5_87] : memref<16xf32, #tpu.memory_space<smem>>
    %201 = vector.broadcast %200 : f32 to vector<2x1x256xf32>
    %202 = arith.addf %199, %201 : vector<2x1x256xf32>
    %c1_88 = arith.constant 1 : index
    %c5_89 = arith.constant 5 : index
    %203 = memref.load %arg2[%c1_88, %c5_89] : memref<8x16xf32, #tpu.memory_space<smem>>
    %204 = vector.broadcast %203 : f32 to vector<2x1x256xf32>
    %205 = arith.mulf %4, %204 : vector<2x1x256xf32>
    %206 = arith.addf %202, %205 : vector<2x1x256xf32>
    %c2_90 = arith.constant 2 : index
    %c5_91 = arith.constant 5 : index
    %207 = memref.load %arg2[%c2_90, %c5_91] : memref<8x16xf32, #tpu.memory_space<smem>>
    %208 = vector.broadcast %207 : f32 to vector<2x1x256xf32>
    %209 = arith.mulf %6, %208 : vector<2x1x256xf32>
    %210 = arith.addf %206, %209 : vector<2x1x256xf32>
    %c3_92 = arith.constant 3 : index
    %c5_93 = arith.constant 5 : index
    %211 = memref.load %arg2[%c3_92, %c5_93] : memref<8x16xf32, #tpu.memory_space<smem>>
    %212 = vector.broadcast %211 : f32 to vector<2x1x256xf32>
    %213 = arith.mulf %8, %212 : vector<2x1x256xf32>
    %214 = arith.addf %210, %213 : vector<2x1x256xf32>
    %c4_94 = arith.constant 4 : index
    %c5_95 = arith.constant 5 : index
    %215 = memref.load %arg2[%c4_94, %c5_95] : memref<8x16xf32, #tpu.memory_space<smem>>
    %216 = vector.broadcast %215 : f32 to vector<2x1x256xf32>
    %217 = arith.mulf %10, %216 : vector<2x1x256xf32>
    %218 = arith.addf %214, %217 : vector<2x1x256xf32>
    %c5_96 = arith.constant 5 : index
    %c5_97 = arith.constant 5 : index
    %219 = memref.load %arg2[%c5_96, %c5_97] : memref<8x16xf32, #tpu.memory_space<smem>>
    %220 = vector.broadcast %219 : f32 to vector<2x1x256xf32>
    %221 = arith.mulf %12, %220 : vector<2x1x256xf32>
    %222 = arith.addf %218, %221 : vector<2x1x256xf32>
    %c6_98 = arith.constant 6 : index
    %c5_99 = arith.constant 5 : index
    %223 = memref.load %arg2[%c6_98, %c5_99] : memref<8x16xf32, #tpu.memory_space<smem>>
    %224 = vector.broadcast %223 : f32 to vector<2x1x256xf32>
    %225 = arith.mulf %14, %224 : vector<2x1x256xf32>
    %226 = arith.addf %222, %225 : vector<2x1x256xf32>
    %c7_100 = arith.constant 7 : index
    %c5_101 = arith.constant 5 : index
    %227 = memref.load %arg2[%c7_100, %c5_101] : memref<8x16xf32, #tpu.memory_space<smem>>
    %228 = vector.broadcast %227 : f32 to vector<2x1x256xf32>
    %229 = arith.mulf %16, %228 : vector<2x1x256xf32>
    %230 = arith.addf %226, %229 : vector<2x1x256xf32>
    %cst_102 = arith.constant 0.000000e+00 : f32
    %231 = vector.broadcast %cst_102 : f32 to vector<2x1x256xf32>
    %232 = arith.maximumf %230, %231 : vector<2x1x256xf32>
    %c0_103 = arith.constant 0 : index
    %c6_104 = arith.constant 6 : index
    %233 = memref.load %arg2[%c0_103, %c6_104] : memref<8x16xf32, #tpu.memory_space<smem>>
    %234 = vector.broadcast %233 : f32 to vector<2x1x256xf32>
    %235 = arith.mulf %2, %234 : vector<2x1x256xf32>
    %c6_105 = arith.constant 6 : index
    %236 = memref.load %arg3[%c6_105] : memref<16xf32, #tpu.memory_space<smem>>
    %237 = vector.broadcast %236 : f32 to vector<2x1x256xf32>
    %238 = arith.addf %235, %237 : vector<2x1x256xf32>
    %c1_106 = arith.constant 1 : index
    %c6_107 = arith.constant 6 : index
    %239 = memref.load %arg2[%c1_106, %c6_107] : memref<8x16xf32, #tpu.memory_space<smem>>
    %240 = vector.broadcast %239 : f32 to vector<2x1x256xf32>
    %241 = arith.mulf %4, %240 : vector<2x1x256xf32>
    %242 = arith.addf %238, %241 : vector<2x1x256xf32>
    %c2_108 = arith.constant 2 : index
    %c6_109 = arith.constant 6 : index
    %243 = memref.load %arg2[%c2_108, %c6_109] : memref<8x16xf32, #tpu.memory_space<smem>>
    %244 = vector.broadcast %243 : f32 to vector<2x1x256xf32>
    %245 = arith.mulf %6, %244 : vector<2x1x256xf32>
    %246 = arith.addf %242, %245 : vector<2x1x256xf32>
    %c3_110 = arith.constant 3 : index
    %c6_111 = arith.constant 6 : index
    %247 = memref.load %arg2[%c3_110, %c6_111] : memref<8x16xf32, #tpu.memory_space<smem>>
    %248 = vector.broadcast %247 : f32 to vector<2x1x256xf32>
    %249 = arith.mulf %8, %248 : vector<2x1x256xf32>
    %250 = arith.addf %246, %249 : vector<2x1x256xf32>
    %c4_112 = arith.constant 4 : index
    %c6_113 = arith.constant 6 : index
    %251 = memref.load %arg2[%c4_112, %c6_113] : memref<8x16xf32, #tpu.memory_space<smem>>
    %252 = vector.broadcast %251 : f32 to vector<2x1x256xf32>
    %253 = arith.mulf %10, %252 : vector<2x1x256xf32>
    %254 = arith.addf %250, %253 : vector<2x1x256xf32>
    %c5_114 = arith.constant 5 : index
    %c6_115 = arith.constant 6 : index
    %255 = memref.load %arg2[%c5_114, %c6_115] : memref<8x16xf32, #tpu.memory_space<smem>>
    %256 = vector.broadcast %255 : f32 to vector<2x1x256xf32>
    %257 = arith.mulf %12, %256 : vector<2x1x256xf32>
    %258 = arith.addf %254, %257 : vector<2x1x256xf32>
    %c6_116 = arith.constant 6 : index
    %c6_117 = arith.constant 6 : index
    %259 = memref.load %arg2[%c6_116, %c6_117] : memref<8x16xf32, #tpu.memory_space<smem>>
    %260 = vector.broadcast %259 : f32 to vector<2x1x256xf32>
    %261 = arith.mulf %14, %260 : vector<2x1x256xf32>
    %262 = arith.addf %258, %261 : vector<2x1x256xf32>
    %c7_118 = arith.constant 7 : index
    %c6_119 = arith.constant 6 : index
    %263 = memref.load %arg2[%c7_118, %c6_119] : memref<8x16xf32, #tpu.memory_space<smem>>
    %264 = vector.broadcast %263 : f32 to vector<2x1x256xf32>
    %265 = arith.mulf %16, %264 : vector<2x1x256xf32>
    %266 = arith.addf %262, %265 : vector<2x1x256xf32>
    %cst_120 = arith.constant 0.000000e+00 : f32
    %267 = vector.broadcast %cst_120 : f32 to vector<2x1x256xf32>
    %268 = arith.maximumf %266, %267 : vector<2x1x256xf32>
    %c0_121 = arith.constant 0 : index
    %c7_122 = arith.constant 7 : index
    %269 = memref.load %arg2[%c0_121, %c7_122] : memref<8x16xf32, #tpu.memory_space<smem>>
    %270 = vector.broadcast %269 : f32 to vector<2x1x256xf32>
    %271 = arith.mulf %2, %270 : vector<2x1x256xf32>
    %c7_123 = arith.constant 7 : index
    %272 = memref.load %arg3[%c7_123] : memref<16xf32, #tpu.memory_space<smem>>
    %273 = vector.broadcast %272 : f32 to vector<2x1x256xf32>
    %274 = arith.addf %271, %273 : vector<2x1x256xf32>
    %c1_124 = arith.constant 1 : index
    %c7_125 = arith.constant 7 : index
    %275 = memref.load %arg2[%c1_124, %c7_125] : memref<8x16xf32, #tpu.memory_space<smem>>
    %276 = vector.broadcast %275 : f32 to vector<2x1x256xf32>
    %277 = arith.mulf %4, %276 : vector<2x1x256xf32>
    %278 = arith.addf %274, %277 : vector<2x1x256xf32>
    %c2_126 = arith.constant 2 : index
    %c7_127 = arith.constant 7 : index
    %279 = memref.load %arg2[%c2_126, %c7_127] : memref<8x16xf32, #tpu.memory_space<smem>>
    %280 = vector.broadcast %279 : f32 to vector<2x1x256xf32>
    %281 = arith.mulf %6, %280 : vector<2x1x256xf32>
    %282 = arith.addf %278, %281 : vector<2x1x256xf32>
    %c3_128 = arith.constant 3 : index
    %c7_129 = arith.constant 7 : index
    %283 = memref.load %arg2[%c3_128, %c7_129] : memref<8x16xf32, #tpu.memory_space<smem>>
    %284 = vector.broadcast %283 : f32 to vector<2x1x256xf32>
    %285 = arith.mulf %8, %284 : vector<2x1x256xf32>
    %286 = arith.addf %282, %285 : vector<2x1x256xf32>
    %c4_130 = arith.constant 4 : index
    %c7_131 = arith.constant 7 : index
    %287 = memref.load %arg2[%c4_130, %c7_131] : memref<8x16xf32, #tpu.memory_space<smem>>
    %288 = vector.broadcast %287 : f32 to vector<2x1x256xf32>
    %289 = arith.mulf %10, %288 : vector<2x1x256xf32>
    %290 = arith.addf %286, %289 : vector<2x1x256xf32>
    %c5_132 = arith.constant 5 : index
    %c7_133 = arith.constant 7 : index
    %291 = memref.load %arg2[%c5_132, %c7_133] : memref<8x16xf32, #tpu.memory_space<smem>>
    %292 = vector.broadcast %291 : f32 to vector<2x1x256xf32>
    %293 = arith.mulf %12, %292 : vector<2x1x256xf32>
    %294 = arith.addf %290, %293 : vector<2x1x256xf32>
    %c6_134 = arith.constant 6 : index
    %c7_135 = arith.constant 7 : index
    %295 = memref.load %arg2[%c6_134, %c7_135] : memref<8x16xf32, #tpu.memory_space<smem>>
    %296 = vector.broadcast %295 : f32 to vector<2x1x256xf32>
    %297 = arith.mulf %14, %296 : vector<2x1x256xf32>
    %298 = arith.addf %294, %297 : vector<2x1x256xf32>
    %c7_136 = arith.constant 7 : index
    %c7_137 = arith.constant 7 : index
    %299 = memref.load %arg2[%c7_136, %c7_137] : memref<8x16xf32, #tpu.memory_space<smem>>
    %300 = vector.broadcast %299 : f32 to vector<2x1x256xf32>
    %301 = arith.mulf %16, %300 : vector<2x1x256xf32>
    %302 = arith.addf %298, %301 : vector<2x1x256xf32>
    %cst_138 = arith.constant 0.000000e+00 : f32
    %303 = vector.broadcast %cst_138 : f32 to vector<2x1x256xf32>
    %304 = arith.maximumf %302, %303 : vector<2x1x256xf32>
    %c0_139 = arith.constant 0 : index
    %c8 = arith.constant 8 : index
    %305 = memref.load %arg2[%c0_139, %c8] : memref<8x16xf32, #tpu.memory_space<smem>>
    %306 = vector.broadcast %305 : f32 to vector<2x1x256xf32>
    %307 = arith.mulf %2, %306 : vector<2x1x256xf32>
    %c8_140 = arith.constant 8 : index
    %308 = memref.load %arg3[%c8_140] : memref<16xf32, #tpu.memory_space<smem>>
    %309 = vector.broadcast %308 : f32 to vector<2x1x256xf32>
    %310 = arith.addf %307, %309 : vector<2x1x256xf32>
    %c1_141 = arith.constant 1 : index
    %c8_142 = arith.constant 8 : index
    %311 = memref.load %arg2[%c1_141, %c8_142] : memref<8x16xf32, #tpu.memory_space<smem>>
    %312 = vector.broadcast %311 : f32 to vector<2x1x256xf32>
    %313 = arith.mulf %4, %312 : vector<2x1x256xf32>
    %314 = arith.addf %310, %313 : vector<2x1x256xf32>
    %c2_143 = arith.constant 2 : index
    %c8_144 = arith.constant 8 : index
    %315 = memref.load %arg2[%c2_143, %c8_144] : memref<8x16xf32, #tpu.memory_space<smem>>
    %316 = vector.broadcast %315 : f32 to vector<2x1x256xf32>
    %317 = arith.mulf %6, %316 : vector<2x1x256xf32>
    %318 = arith.addf %314, %317 : vector<2x1x256xf32>
    %c3_145 = arith.constant 3 : index
    %c8_146 = arith.constant 8 : index
    %319 = memref.load %arg2[%c3_145, %c8_146] : memref<8x16xf32, #tpu.memory_space<smem>>
    %320 = vector.broadcast %319 : f32 to vector<2x1x256xf32>
    %321 = arith.mulf %8, %320 : vector<2x1x256xf32>
    %322 = arith.addf %318, %321 : vector<2x1x256xf32>
    %c4_147 = arith.constant 4 : index
    %c8_148 = arith.constant 8 : index
    %323 = memref.load %arg2[%c4_147, %c8_148] : memref<8x16xf32, #tpu.memory_space<smem>>
    %324 = vector.broadcast %323 : f32 to vector<2x1x256xf32>
    %325 = arith.mulf %10, %324 : vector<2x1x256xf32>
    %326 = arith.addf %322, %325 : vector<2x1x256xf32>
    %c5_149 = arith.constant 5 : index
    %c8_150 = arith.constant 8 : index
    %327 = memref.load %arg2[%c5_149, %c8_150] : memref<8x16xf32, #tpu.memory_space<smem>>
    %328 = vector.broadcast %327 : f32 to vector<2x1x256xf32>
    %329 = arith.mulf %12, %328 : vector<2x1x256xf32>
    %330 = arith.addf %326, %329 : vector<2x1x256xf32>
    %c6_151 = arith.constant 6 : index
    %c8_152 = arith.constant 8 : index
    %331 = memref.load %arg2[%c6_151, %c8_152] : memref<8x16xf32, #tpu.memory_space<smem>>
    %332 = vector.broadcast %331 : f32 to vector<2x1x256xf32>
    %333 = arith.mulf %14, %332 : vector<2x1x256xf32>
    %334 = arith.addf %330, %333 : vector<2x1x256xf32>
    %c7_153 = arith.constant 7 : index
    %c8_154 = arith.constant 8 : index
    %335 = memref.load %arg2[%c7_153, %c8_154] : memref<8x16xf32, #tpu.memory_space<smem>>
    %336 = vector.broadcast %335 : f32 to vector<2x1x256xf32>
    %337 = arith.mulf %16, %336 : vector<2x1x256xf32>
    %338 = arith.addf %334, %337 : vector<2x1x256xf32>
    %cst_155 = arith.constant 0.000000e+00 : f32
    %339 = vector.broadcast %cst_155 : f32 to vector<2x1x256xf32>
    %340 = arith.maximumf %338, %339 : vector<2x1x256xf32>
    %c0_156 = arith.constant 0 : index
    %c9 = arith.constant 9 : index
    %341 = memref.load %arg2[%c0_156, %c9] : memref<8x16xf32, #tpu.memory_space<smem>>
    %342 = vector.broadcast %341 : f32 to vector<2x1x256xf32>
    %343 = arith.mulf %2, %342 : vector<2x1x256xf32>
    %c9_157 = arith.constant 9 : index
    %344 = memref.load %arg3[%c9_157] : memref<16xf32, #tpu.memory_space<smem>>
    %345 = vector.broadcast %344 : f32 to vector<2x1x256xf32>
    %346 = arith.addf %343, %345 : vector<2x1x256xf32>
    %c1_158 = arith.constant 1 : index
    %c9_159 = arith.constant 9 : index
    %347 = memref.load %arg2[%c1_158, %c9_159] : memref<8x16xf32, #tpu.memory_space<smem>>
    %348 = vector.broadcast %347 : f32 to vector<2x1x256xf32>
    %349 = arith.mulf %4, %348 : vector<2x1x256xf32>
    %350 = arith.addf %346, %349 : vector<2x1x256xf32>
    %c2_160 = arith.constant 2 : index
    %c9_161 = arith.constant 9 : index
    %351 = memref.load %arg2[%c2_160, %c9_161] : memref<8x16xf32, #tpu.memory_space<smem>>
    %352 = vector.broadcast %351 : f32 to vector<2x1x256xf32>
    %353 = arith.mulf %6, %352 : vector<2x1x256xf32>
    %354 = arith.addf %350, %353 : vector<2x1x256xf32>
    %c3_162 = arith.constant 3 : index
    %c9_163 = arith.constant 9 : index
    %355 = memref.load %arg2[%c3_162, %c9_163] : memref<8x16xf32, #tpu.memory_space<smem>>
    %356 = vector.broadcast %355 : f32 to vector<2x1x256xf32>
    %357 = arith.mulf %8, %356 : vector<2x1x256xf32>
    %358 = arith.addf %354, %357 : vector<2x1x256xf32>
    %c4_164 = arith.constant 4 : index
    %c9_165 = arith.constant 9 : index
    %359 = memref.load %arg2[%c4_164, %c9_165] : memref<8x16xf32, #tpu.memory_space<smem>>
    %360 = vector.broadcast %359 : f32 to vector<2x1x256xf32>
    %361 = arith.mulf %10, %360 : vector<2x1x256xf32>
    %362 = arith.addf %358, %361 : vector<2x1x256xf32>
    %c5_166 = arith.constant 5 : index
    %c9_167 = arith.constant 9 : index
    %363 = memref.load %arg2[%c5_166, %c9_167] : memref<8x16xf32, #tpu.memory_space<smem>>
    %364 = vector.broadcast %363 : f32 to vector<2x1x256xf32>
    %365 = arith.mulf %12, %364 : vector<2x1x256xf32>
    %366 = arith.addf %362, %365 : vector<2x1x256xf32>
    %c6_168 = arith.constant 6 : index
    %c9_169 = arith.constant 9 : index
    %367 = memref.load %arg2[%c6_168, %c9_169] : memref<8x16xf32, #tpu.memory_space<smem>>
    %368 = vector.broadcast %367 : f32 to vector<2x1x256xf32>
    %369 = arith.mulf %14, %368 : vector<2x1x256xf32>
    %370 = arith.addf %366, %369 : vector<2x1x256xf32>
    %c7_170 = arith.constant 7 : index
    %c9_171 = arith.constant 9 : index
    %371 = memref.load %arg2[%c7_170, %c9_171] : memref<8x16xf32, #tpu.memory_space<smem>>
    %372 = vector.broadcast %371 : f32 to vector<2x1x256xf32>
    %373 = arith.mulf %16, %372 : vector<2x1x256xf32>
    %374 = arith.addf %370, %373 : vector<2x1x256xf32>
    %cst_172 = arith.constant 0.000000e+00 : f32
    %375 = vector.broadcast %cst_172 : f32 to vector<2x1x256xf32>
    %376 = arith.maximumf %374, %375 : vector<2x1x256xf32>
    %c0_173 = arith.constant 0 : index
    %c10 = arith.constant 10 : index
    %377 = memref.load %arg2[%c0_173, %c10] : memref<8x16xf32, #tpu.memory_space<smem>>
    %378 = vector.broadcast %377 : f32 to vector<2x1x256xf32>
    %379 = arith.mulf %2, %378 : vector<2x1x256xf32>
    %c10_174 = arith.constant 10 : index
    %380 = memref.load %arg3[%c10_174] : memref<16xf32, #tpu.memory_space<smem>>
    %381 = vector.broadcast %380 : f32 to vector<2x1x256xf32>
    %382 = arith.addf %379, %381 : vector<2x1x256xf32>
    %c1_175 = arith.constant 1 : index
    %c10_176 = arith.constant 10 : index
    %383 = memref.load %arg2[%c1_175, %c10_176] : memref<8x16xf32, #tpu.memory_space<smem>>
    %384 = vector.broadcast %383 : f32 to vector<2x1x256xf32>
    %385 = arith.mulf %4, %384 : vector<2x1x256xf32>
    %386 = arith.addf %382, %385 : vector<2x1x256xf32>
    %c2_177 = arith.constant 2 : index
    %c10_178 = arith.constant 10 : index
    %387 = memref.load %arg2[%c2_177, %c10_178] : memref<8x16xf32, #tpu.memory_space<smem>>
    %388 = vector.broadcast %387 : f32 to vector<2x1x256xf32>
    %389 = arith.mulf %6, %388 : vector<2x1x256xf32>
    %390 = arith.addf %386, %389 : vector<2x1x256xf32>
    %c3_179 = arith.constant 3 : index
    %c10_180 = arith.constant 10 : index
    %391 = memref.load %arg2[%c3_179, %c10_180] : memref<8x16xf32, #tpu.memory_space<smem>>
    %392 = vector.broadcast %391 : f32 to vector<2x1x256xf32>
    %393 = arith.mulf %8, %392 : vector<2x1x256xf32>
    %394 = arith.addf %390, %393 : vector<2x1x256xf32>
    %c4_181 = arith.constant 4 : index
    %c10_182 = arith.constant 10 : index
    %395 = memref.load %arg2[%c4_181, %c10_182] : memref<8x16xf32, #tpu.memory_space<smem>>
    %396 = vector.broadcast %395 : f32 to vector<2x1x256xf32>
    %397 = arith.mulf %10, %396 : vector<2x1x256xf32>
    %398 = arith.addf %394, %397 : vector<2x1x256xf32>
    %c5_183 = arith.constant 5 : index
    %c10_184 = arith.constant 10 : index
    %399 = memref.load %arg2[%c5_183, %c10_184] : memref<8x16xf32, #tpu.memory_space<smem>>
    %400 = vector.broadcast %399 : f32 to vector<2x1x256xf32>
    %401 = arith.mulf %12, %400 : vector<2x1x256xf32>
    %402 = arith.addf %398, %401 : vector<2x1x256xf32>
    %c6_185 = arith.constant 6 : index
    %c10_186 = arith.constant 10 : index
    %403 = memref.load %arg2[%c6_185, %c10_186] : memref<8x16xf32, #tpu.memory_space<smem>>
    %404 = vector.broadcast %403 : f32 to vector<2x1x256xf32>
    %405 = arith.mulf %14, %404 : vector<2x1x256xf32>
    %406 = arith.addf %402, %405 : vector<2x1x256xf32>
    %c7_187 = arith.constant 7 : index
    %c10_188 = arith.constant 10 : index
    %407 = memref.load %arg2[%c7_187, %c10_188] : memref<8x16xf32, #tpu.memory_space<smem>>
    %408 = vector.broadcast %407 : f32 to vector<2x1x256xf32>
    %409 = arith.mulf %16, %408 : vector<2x1x256xf32>
    %410 = arith.addf %406, %409 : vector<2x1x256xf32>
    %cst_189 = arith.constant 0.000000e+00 : f32
    %411 = vector.broadcast %cst_189 : f32 to vector<2x1x256xf32>
    %412 = arith.maximumf %410, %411 : vector<2x1x256xf32>
    %c0_190 = arith.constant 0 : index
    %c11 = arith.constant 11 : index
    %413 = memref.load %arg2[%c0_190, %c11] : memref<8x16xf32, #tpu.memory_space<smem>>
    %414 = vector.broadcast %413 : f32 to vector<2x1x256xf32>
    %415 = arith.mulf %2, %414 : vector<2x1x256xf32>
    %c11_191 = arith.constant 11 : index
    %416 = memref.load %arg3[%c11_191] : memref<16xf32, #tpu.memory_space<smem>>
    %417 = vector.broadcast %416 : f32 to vector<2x1x256xf32>
    %418 = arith.addf %415, %417 : vector<2x1x256xf32>
    %c1_192 = arith.constant 1 : index
    %c11_193 = arith.constant 11 : index
    %419 = memref.load %arg2[%c1_192, %c11_193] : memref<8x16xf32, #tpu.memory_space<smem>>
    %420 = vector.broadcast %419 : f32 to vector<2x1x256xf32>
    %421 = arith.mulf %4, %420 : vector<2x1x256xf32>
    %422 = arith.addf %418, %421 : vector<2x1x256xf32>
    %c2_194 = arith.constant 2 : index
    %c11_195 = arith.constant 11 : index
    %423 = memref.load %arg2[%c2_194, %c11_195] : memref<8x16xf32, #tpu.memory_space<smem>>
    %424 = vector.broadcast %423 : f32 to vector<2x1x256xf32>
    %425 = arith.mulf %6, %424 : vector<2x1x256xf32>
    %426 = arith.addf %422, %425 : vector<2x1x256xf32>
    %c3_196 = arith.constant 3 : index
    %c11_197 = arith.constant 11 : index
    %427 = memref.load %arg2[%c3_196, %c11_197] : memref<8x16xf32, #tpu.memory_space<smem>>
    %428 = vector.broadcast %427 : f32 to vector<2x1x256xf32>
    %429 = arith.mulf %8, %428 : vector<2x1x256xf32>
    %430 = arith.addf %426, %429 : vector<2x1x256xf32>
    %c4_198 = arith.constant 4 : index
    %c11_199 = arith.constant 11 : index
    %431 = memref.load %arg2[%c4_198, %c11_199] : memref<8x16xf32, #tpu.memory_space<smem>>
    %432 = vector.broadcast %431 : f32 to vector<2x1x256xf32>
    %433 = arith.mulf %10, %432 : vector<2x1x256xf32>
    %434 = arith.addf %430, %433 : vector<2x1x256xf32>
    %c5_200 = arith.constant 5 : index
    %c11_201 = arith.constant 11 : index
    %435 = memref.load %arg2[%c5_200, %c11_201] : memref<8x16xf32, #tpu.memory_space<smem>>
    %436 = vector.broadcast %435 : f32 to vector<2x1x256xf32>
    %437 = arith.mulf %12, %436 : vector<2x1x256xf32>
    %438 = arith.addf %434, %437 : vector<2x1x256xf32>
    %c6_202 = arith.constant 6 : index
    %c11_203 = arith.constant 11 : index
    %439 = memref.load %arg2[%c6_202, %c11_203] : memref<8x16xf32, #tpu.memory_space<smem>>
    %440 = vector.broadcast %439 : f32 to vector<2x1x256xf32>
    %441 = arith.mulf %14, %440 : vector<2x1x256xf32>
    %442 = arith.addf %438, %441 : vector<2x1x256xf32>
    %c7_204 = arith.constant 7 : index
    %c11_205 = arith.constant 11 : index
    %443 = memref.load %arg2[%c7_204, %c11_205] : memref<8x16xf32, #tpu.memory_space<smem>>
    %444 = vector.broadcast %443 : f32 to vector<2x1x256xf32>
    %445 = arith.mulf %16, %444 : vector<2x1x256xf32>
    %446 = arith.addf %442, %445 : vector<2x1x256xf32>
    %cst_206 = arith.constant 0.000000e+00 : f32
    %447 = vector.broadcast %cst_206 : f32 to vector<2x1x256xf32>
    %448 = arith.maximumf %446, %447 : vector<2x1x256xf32>
    %c0_207 = arith.constant 0 : index
    %c12 = arith.constant 12 : index
    %449 = memref.load %arg2[%c0_207, %c12] : memref<8x16xf32, #tpu.memory_space<smem>>
    %450 = vector.broadcast %449 : f32 to vector<2x1x256xf32>
    %451 = arith.mulf %2, %450 : vector<2x1x256xf32>
    %c12_208 = arith.constant 12 : index
    %452 = memref.load %arg3[%c12_208] : memref<16xf32, #tpu.memory_space<smem>>
    %453 = vector.broadcast %452 : f32 to vector<2x1x256xf32>
    %454 = arith.addf %451, %453 : vector<2x1x256xf32>
    %c1_209 = arith.constant 1 : index
    %c12_210 = arith.constant 12 : index
    %455 = memref.load %arg2[%c1_209, %c12_210] : memref<8x16xf32, #tpu.memory_space<smem>>
    %456 = vector.broadcast %455 : f32 to vector<2x1x256xf32>
    %457 = arith.mulf %4, %456 : vector<2x1x256xf32>
    %458 = arith.addf %454, %457 : vector<2x1x256xf32>
    %c2_211 = arith.constant 2 : index
    %c12_212 = arith.constant 12 : index
    %459 = memref.load %arg2[%c2_211, %c12_212] : memref<8x16xf32, #tpu.memory_space<smem>>
    %460 = vector.broadcast %459 : f32 to vector<2x1x256xf32>
    %461 = arith.mulf %6, %460 : vector<2x1x256xf32>
    %462 = arith.addf %458, %461 : vector<2x1x256xf32>
    %c3_213 = arith.constant 3 : index
    %c12_214 = arith.constant 12 : index
    %463 = memref.load %arg2[%c3_213, %c12_214] : memref<8x16xf32, #tpu.memory_space<smem>>
    %464 = vector.broadcast %463 : f32 to vector<2x1x256xf32>
    %465 = arith.mulf %8, %464 : vector<2x1x256xf32>
    %466 = arith.addf %462, %465 : vector<2x1x256xf32>
    %c4_215 = arith.constant 4 : index
    %c12_216 = arith.constant 12 : index
    %467 = memref.load %arg2[%c4_215, %c12_216] : memref<8x16xf32, #tpu.memory_space<smem>>
    %468 = vector.broadcast %467 : f32 to vector<2x1x256xf32>
    %469 = arith.mulf %10, %468 : vector<2x1x256xf32>
    %470 = arith.addf %466, %469 : vector<2x1x256xf32>
    %c5_217 = arith.constant 5 : index
    %c12_218 = arith.constant 12 : index
    %471 = memref.load %arg2[%c5_217, %c12_218] : memref<8x16xf32, #tpu.memory_space<smem>>
    %472 = vector.broadcast %471 : f32 to vector<2x1x256xf32>
    %473 = arith.mulf %12, %472 : vector<2x1x256xf32>
    %474 = arith.addf %470, %473 : vector<2x1x256xf32>
    %c6_219 = arith.constant 6 : index
    %c12_220 = arith.constant 12 : index
    %475 = memref.load %arg2[%c6_219, %c12_220] : memref<8x16xf32, #tpu.memory_space<smem>>
    %476 = vector.broadcast %475 : f32 to vector<2x1x256xf32>
    %477 = arith.mulf %14, %476 : vector<2x1x256xf32>
    %478 = arith.addf %474, %477 : vector<2x1x256xf32>
    %c7_221 = arith.constant 7 : index
    %c12_222 = arith.constant 12 : index
    %479 = memref.load %arg2[%c7_221, %c12_222] : memref<8x16xf32, #tpu.memory_space<smem>>
    %480 = vector.broadcast %479 : f32 to vector<2x1x256xf32>
    %481 = arith.mulf %16, %480 : vector<2x1x256xf32>
    %482 = arith.addf %478, %481 : vector<2x1x256xf32>
    %cst_223 = arith.constant 0.000000e+00 : f32
    %483 = vector.broadcast %cst_223 : f32 to vector<2x1x256xf32>
    %484 = arith.maximumf %482, %483 : vector<2x1x256xf32>
    %c0_224 = arith.constant 0 : index
    %c13 = arith.constant 13 : index
    %485 = memref.load %arg2[%c0_224, %c13] : memref<8x16xf32, #tpu.memory_space<smem>>
    %486 = vector.broadcast %485 : f32 to vector<2x1x256xf32>
    %487 = arith.mulf %2, %486 : vector<2x1x256xf32>
    %c13_225 = arith.constant 13 : index
    %488 = memref.load %arg3[%c13_225] : memref<16xf32, #tpu.memory_space<smem>>
    %489 = vector.broadcast %488 : f32 to vector<2x1x256xf32>
    %490 = arith.addf %487, %489 : vector<2x1x256xf32>
    %c1_226 = arith.constant 1 : index
    %c13_227 = arith.constant 13 : index
    %491 = memref.load %arg2[%c1_226, %c13_227] : memref<8x16xf32, #tpu.memory_space<smem>>
    %492 = vector.broadcast %491 : f32 to vector<2x1x256xf32>
    %493 = arith.mulf %4, %492 : vector<2x1x256xf32>
    %494 = arith.addf %490, %493 : vector<2x1x256xf32>
    %c2_228 = arith.constant 2 : index
    %c13_229 = arith.constant 13 : index
    %495 = memref.load %arg2[%c2_228, %c13_229] : memref<8x16xf32, #tpu.memory_space<smem>>
    %496 = vector.broadcast %495 : f32 to vector<2x1x256xf32>
    %497 = arith.mulf %6, %496 : vector<2x1x256xf32>
    %498 = arith.addf %494, %497 : vector<2x1x256xf32>
    %c3_230 = arith.constant 3 : index
    %c13_231 = arith.constant 13 : index
    %499 = memref.load %arg2[%c3_230, %c13_231] : memref<8x16xf32, #tpu.memory_space<smem>>
    %500 = vector.broadcast %499 : f32 to vector<2x1x256xf32>
    %501 = arith.mulf %8, %500 : vector<2x1x256xf32>
    %502 = arith.addf %498, %501 : vector<2x1x256xf32>
    %c4_232 = arith.constant 4 : index
    %c13_233 = arith.constant 13 : index
    %503 = memref.load %arg2[%c4_232, %c13_233] : memref<8x16xf32, #tpu.memory_space<smem>>
    %504 = vector.broadcast %503 : f32 to vector<2x1x256xf32>
    %505 = arith.mulf %10, %504 : vector<2x1x256xf32>
    %506 = arith.addf %502, %505 : vector<2x1x256xf32>
    %c5_234 = arith.constant 5 : index
    %c13_235 = arith.constant 13 : index
    %507 = memref.load %arg2[%c5_234, %c13_235] : memref<8x16xf32, #tpu.memory_space<smem>>
    %508 = vector.broadcast %507 : f32 to vector<2x1x256xf32>
    %509 = arith.mulf %12, %508 : vector<2x1x256xf32>
    %510 = arith.addf %506, %509 : vector<2x1x256xf32>
    %c6_236 = arith.constant 6 : index
    %c13_237 = arith.constant 13 : index
    %511 = memref.load %arg2[%c6_236, %c13_237] : memref<8x16xf32, #tpu.memory_space<smem>>
    %512 = vector.broadcast %511 : f32 to vector<2x1x256xf32>
    %513 = arith.mulf %14, %512 : vector<2x1x256xf32>
    %514 = arith.addf %510, %513 : vector<2x1x256xf32>
    %c7_238 = arith.constant 7 : index
    %c13_239 = arith.constant 13 : index
    %515 = memref.load %arg2[%c7_238, %c13_239] : memref<8x16xf32, #tpu.memory_space<smem>>
    %516 = vector.broadcast %515 : f32 to vector<2x1x256xf32>
    %517 = arith.mulf %16, %516 : vector<2x1x256xf32>
    %518 = arith.addf %514, %517 : vector<2x1x256xf32>
    %cst_240 = arith.constant 0.000000e+00 : f32
    %519 = vector.broadcast %cst_240 : f32 to vector<2x1x256xf32>
    %520 = arith.maximumf %518, %519 : vector<2x1x256xf32>
    %c0_241 = arith.constant 0 : index
    %c14 = arith.constant 14 : index
    %521 = memref.load %arg2[%c0_241, %c14] : memref<8x16xf32, #tpu.memory_space<smem>>
    %522 = vector.broadcast %521 : f32 to vector<2x1x256xf32>
    %523 = arith.mulf %2, %522 : vector<2x1x256xf32>
    %c14_242 = arith.constant 14 : index
    %524 = memref.load %arg3[%c14_242] : memref<16xf32, #tpu.memory_space<smem>>
    %525 = vector.broadcast %524 : f32 to vector<2x1x256xf32>
    %526 = arith.addf %523, %525 : vector<2x1x256xf32>
    %c1_243 = arith.constant 1 : index
    %c14_244 = arith.constant 14 : index
    %527 = memref.load %arg2[%c1_243, %c14_244] : memref<8x16xf32, #tpu.memory_space<smem>>
    %528 = vector.broadcast %527 : f32 to vector<2x1x256xf32>
    %529 = arith.mulf %4, %528 : vector<2x1x256xf32>
    %530 = arith.addf %526, %529 : vector<2x1x256xf32>
    %c2_245 = arith.constant 2 : index
    %c14_246 = arith.constant 14 : index
    %531 = memref.load %arg2[%c2_245, %c14_246] : memref<8x16xf32, #tpu.memory_space<smem>>
    %532 = vector.broadcast %531 : f32 to vector<2x1x256xf32>
    %533 = arith.mulf %6, %532 : vector<2x1x256xf32>
    %534 = arith.addf %530, %533 : vector<2x1x256xf32>
    %c3_247 = arith.constant 3 : index
    %c14_248 = arith.constant 14 : index
    %535 = memref.load %arg2[%c3_247, %c14_248] : memref<8x16xf32, #tpu.memory_space<smem>>
    %536 = vector.broadcast %535 : f32 to vector<2x1x256xf32>
    %537 = arith.mulf %8, %536 : vector<2x1x256xf32>
    %538 = arith.addf %534, %537 : vector<2x1x256xf32>
    %c4_249 = arith.constant 4 : index
    %c14_250 = arith.constant 14 : index
    %539 = memref.load %arg2[%c4_249, %c14_250] : memref<8x16xf32, #tpu.memory_space<smem>>
    %540 = vector.broadcast %539 : f32 to vector<2x1x256xf32>
    %541 = arith.mulf %10, %540 : vector<2x1x256xf32>
    %542 = arith.addf %538, %541 : vector<2x1x256xf32>
    %c5_251 = arith.constant 5 : index
    %c14_252 = arith.constant 14 : index
    %543 = memref.load %arg2[%c5_251, %c14_252] : memref<8x16xf32, #tpu.memory_space<smem>>
    %544 = vector.broadcast %543 : f32 to vector<2x1x256xf32>
    %545 = arith.mulf %12, %544 : vector<2x1x256xf32>
    %546 = arith.addf %542, %545 : vector<2x1x256xf32>
    %c6_253 = arith.constant 6 : index
    %c14_254 = arith.constant 14 : index
    %547 = memref.load %arg2[%c6_253, %c14_254] : memref<8x16xf32, #tpu.memory_space<smem>>
    %548 = vector.broadcast %547 : f32 to vector<2x1x256xf32>
    %549 = arith.mulf %14, %548 : vector<2x1x256xf32>
    %550 = arith.addf %546, %549 : vector<2x1x256xf32>
    %c7_255 = arith.constant 7 : index
    %c14_256 = arith.constant 14 : index
    %551 = memref.load %arg2[%c7_255, %c14_256] : memref<8x16xf32, #tpu.memory_space<smem>>
    %552 = vector.broadcast %551 : f32 to vector<2x1x256xf32>
    %553 = arith.mulf %16, %552 : vector<2x1x256xf32>
    %554 = arith.addf %550, %553 : vector<2x1x256xf32>
    %cst_257 = arith.constant 0.000000e+00 : f32
    %555 = vector.broadcast %cst_257 : f32 to vector<2x1x256xf32>
    %556 = arith.maximumf %554, %555 : vector<2x1x256xf32>
    %c0_258 = arith.constant 0 : index
    %c15 = arith.constant 15 : index
    %557 = memref.load %arg2[%c0_258, %c15] : memref<8x16xf32, #tpu.memory_space<smem>>
    %558 = vector.broadcast %557 : f32 to vector<2x1x256xf32>
    %559 = arith.mulf %2, %558 : vector<2x1x256xf32>
    %c15_259 = arith.constant 15 : index
    %560 = memref.load %arg3[%c15_259] : memref<16xf32, #tpu.memory_space<smem>>
    %561 = vector.broadcast %560 : f32 to vector<2x1x256xf32>
    %562 = arith.addf %559, %561 : vector<2x1x256xf32>
    %c1_260 = arith.constant 1 : index
    %c15_261 = arith.constant 15 : index
    %563 = memref.load %arg2[%c1_260, %c15_261] : memref<8x16xf32, #tpu.memory_space<smem>>
    %564 = vector.broadcast %563 : f32 to vector<2x1x256xf32>
    %565 = arith.mulf %4, %564 : vector<2x1x256xf32>
    %566 = arith.addf %562, %565 : vector<2x1x256xf32>
    %c2_262 = arith.constant 2 : index
    %c15_263 = arith.constant 15 : index
    %567 = memref.load %arg2[%c2_262, %c15_263] : memref<8x16xf32, #tpu.memory_space<smem>>
    %568 = vector.broadcast %567 : f32 to vector<2x1x256xf32>
    %569 = arith.mulf %6, %568 : vector<2x1x256xf32>
    %570 = arith.addf %566, %569 : vector<2x1x256xf32>
    %c3_264 = arith.constant 3 : index
    %c15_265 = arith.constant 15 : index
    %571 = memref.load %arg2[%c3_264, %c15_265] : memref<8x16xf32, #tpu.memory_space<smem>>
    %572 = vector.broadcast %571 : f32 to vector<2x1x256xf32>
    %573 = arith.mulf %8, %572 : vector<2x1x256xf32>
    %574 = arith.addf %570, %573 : vector<2x1x256xf32>
    %c4_266 = arith.constant 4 : index
    %c15_267 = arith.constant 15 : index
    %575 = memref.load %arg2[%c4_266, %c15_267] : memref<8x16xf32, #tpu.memory_space<smem>>
    %576 = vector.broadcast %575 : f32 to vector<2x1x256xf32>
    %577 = arith.mulf %10, %576 : vector<2x1x256xf32>
    %578 = arith.addf %574, %577 : vector<2x1x256xf32>
    %c5_268 = arith.constant 5 : index
    %c15_269 = arith.constant 15 : index
    %579 = memref.load %arg2[%c5_268, %c15_269] : memref<8x16xf32, #tpu.memory_space<smem>>
    %580 = vector.broadcast %579 : f32 to vector<2x1x256xf32>
    %581 = arith.mulf %12, %580 : vector<2x1x256xf32>
    %582 = arith.addf %578, %581 : vector<2x1x256xf32>
    %c6_270 = arith.constant 6 : index
    %c15_271 = arith.constant 15 : index
    %583 = memref.load %arg2[%c6_270, %c15_271] : memref<8x16xf32, #tpu.memory_space<smem>>
    %584 = vector.broadcast %583 : f32 to vector<2x1x256xf32>
    %585 = arith.mulf %14, %584 : vector<2x1x256xf32>
    %586 = arith.addf %582, %585 : vector<2x1x256xf32>
    %c7_272 = arith.constant 7 : index
    %c15_273 = arith.constant 15 : index
    %587 = memref.load %arg2[%c7_272, %c15_273] : memref<8x16xf32, #tpu.memory_space<smem>>
    %588 = vector.broadcast %587 : f32 to vector<2x1x256xf32>
    %589 = arith.mulf %16, %588 : vector<2x1x256xf32>
    %590 = arith.addf %586, %589 : vector<2x1x256xf32>
    %cst_274 = arith.constant 0.000000e+00 : f32
    %591 = vector.broadcast %cst_274 : f32 to vector<2x1x256xf32>
    %592 = arith.maximumf %590, %591 : vector<2x1x256xf32>
    %c0_275 = arith.constant 0 : index
    %c0_276 = arith.constant 0 : index
    %593 = memref.load %arg4[%c0_275, %c0_276] : memref<16x8xf32, #tpu.memory_space<smem>>
    %594 = vector.broadcast %593 : f32 to vector<2x1x256xf32>
    %595 = arith.mulf %52, %594 : vector<2x1x256xf32>
    %c0_277 = arith.constant 0 : index
    %596 = memref.load %arg5[%c0_277] : memref<8xf32, #tpu.memory_space<smem>>
    %597 = vector.broadcast %596 : f32 to vector<2x1x256xf32>
    %598 = arith.addf %595, %597 : vector<2x1x256xf32>
    %c1_278 = arith.constant 1 : index
    %c0_279 = arith.constant 0 : index
    %599 = memref.load %arg4[%c1_278, %c0_279] : memref<16x8xf32, #tpu.memory_space<smem>>
    %600 = vector.broadcast %599 : f32 to vector<2x1x256xf32>
    %601 = arith.mulf %88, %600 : vector<2x1x256xf32>
    %602 = arith.addf %598, %601 : vector<2x1x256xf32>
    %c2_280 = arith.constant 2 : index
    %c0_281 = arith.constant 0 : index
    %603 = memref.load %arg4[%c2_280, %c0_281] : memref<16x8xf32, #tpu.memory_space<smem>>
    %604 = vector.broadcast %603 : f32 to vector<2x1x256xf32>
    %605 = arith.mulf %124, %604 : vector<2x1x256xf32>
    %606 = arith.addf %602, %605 : vector<2x1x256xf32>
    %c3_282 = arith.constant 3 : index
    %c0_283 = arith.constant 0 : index
    %607 = memref.load %arg4[%c3_282, %c0_283] : memref<16x8xf32, #tpu.memory_space<smem>>
    %608 = vector.broadcast %607 : f32 to vector<2x1x256xf32>
    %609 = arith.mulf %160, %608 : vector<2x1x256xf32>
    %610 = arith.addf %606, %609 : vector<2x1x256xf32>
    %c4_284 = arith.constant 4 : index
    %c0_285 = arith.constant 0 : index
    %611 = memref.load %arg4[%c4_284, %c0_285] : memref<16x8xf32, #tpu.memory_space<smem>>
    %612 = vector.broadcast %611 : f32 to vector<2x1x256xf32>
    %613 = arith.mulf %196, %612 : vector<2x1x256xf32>
    %614 = arith.addf %610, %613 : vector<2x1x256xf32>
    %c5_286 = arith.constant 5 : index
    %c0_287 = arith.constant 0 : index
    %615 = memref.load %arg4[%c5_286, %c0_287] : memref<16x8xf32, #tpu.memory_space<smem>>
    %616 = vector.broadcast %615 : f32 to vector<2x1x256xf32>
    %617 = arith.mulf %232, %616 : vector<2x1x256xf32>
    %618 = arith.addf %614, %617 : vector<2x1x256xf32>
    %c6_288 = arith.constant 6 : index
    %c0_289 = arith.constant 0 : index
    %619 = memref.load %arg4[%c6_288, %c0_289] : memref<16x8xf32, #tpu.memory_space<smem>>
    %620 = vector.broadcast %619 : f32 to vector<2x1x256xf32>
    %621 = arith.mulf %268, %620 : vector<2x1x256xf32>
    %622 = arith.addf %618, %621 : vector<2x1x256xf32>
    %c7_290 = arith.constant 7 : index
    %c0_291 = arith.constant 0 : index
    %623 = memref.load %arg4[%c7_290, %c0_291] : memref<16x8xf32, #tpu.memory_space<smem>>
    %624 = vector.broadcast %623 : f32 to vector<2x1x256xf32>
    %625 = arith.mulf %304, %624 : vector<2x1x256xf32>
    %626 = arith.addf %622, %625 : vector<2x1x256xf32>
    %c8_292 = arith.constant 8 : index
    %c0_293 = arith.constant 0 : index
    %627 = memref.load %arg4[%c8_292, %c0_293] : memref<16x8xf32, #tpu.memory_space<smem>>
    %628 = vector.broadcast %627 : f32 to vector<2x1x256xf32>
    %629 = arith.mulf %340, %628 : vector<2x1x256xf32>
    %630 = arith.addf %626, %629 : vector<2x1x256xf32>
    %c9_294 = arith.constant 9 : index
    %c0_295 = arith.constant 0 : index
    %631 = memref.load %arg4[%c9_294, %c0_295] : memref<16x8xf32, #tpu.memory_space<smem>>
    %632 = vector.broadcast %631 : f32 to vector<2x1x256xf32>
    %633 = arith.mulf %376, %632 : vector<2x1x256xf32>
    %634 = arith.addf %630, %633 : vector<2x1x256xf32>
    %c10_296 = arith.constant 10 : index
    %c0_297 = arith.constant 0 : index
    %635 = memref.load %arg4[%c10_296, %c0_297] : memref<16x8xf32, #tpu.memory_space<smem>>
    %636 = vector.broadcast %635 : f32 to vector<2x1x256xf32>
    %637 = arith.mulf %412, %636 : vector<2x1x256xf32>
    %638 = arith.addf %634, %637 : vector<2x1x256xf32>
    %c11_298 = arith.constant 11 : index
    %c0_299 = arith.constant 0 : index
    %639 = memref.load %arg4[%c11_298, %c0_299] : memref<16x8xf32, #tpu.memory_space<smem>>
    %640 = vector.broadcast %639 : f32 to vector<2x1x256xf32>
    %641 = arith.mulf %448, %640 : vector<2x1x256xf32>
    %642 = arith.addf %638, %641 : vector<2x1x256xf32>
    %c12_300 = arith.constant 12 : index
    %c0_301 = arith.constant 0 : index
    %643 = memref.load %arg4[%c12_300, %c0_301] : memref<16x8xf32, #tpu.memory_space<smem>>
    %644 = vector.broadcast %643 : f32 to vector<2x1x256xf32>
    %645 = arith.mulf %484, %644 : vector<2x1x256xf32>
    %646 = arith.addf %642, %645 : vector<2x1x256xf32>
    %c13_302 = arith.constant 13 : index
    %c0_303 = arith.constant 0 : index
    %647 = memref.load %arg4[%c13_302, %c0_303] : memref<16x8xf32, #tpu.memory_space<smem>>
    %648 = vector.broadcast %647 : f32 to vector<2x1x256xf32>
    %649 = arith.mulf %520, %648 : vector<2x1x256xf32>
    %650 = arith.addf %646, %649 : vector<2x1x256xf32>
    %c14_304 = arith.constant 14 : index
    %c0_305 = arith.constant 0 : index
    %651 = memref.load %arg4[%c14_304, %c0_305] : memref<16x8xf32, #tpu.memory_space<smem>>
    %652 = vector.broadcast %651 : f32 to vector<2x1x256xf32>
    %653 = arith.mulf %556, %652 : vector<2x1x256xf32>
    %654 = arith.addf %650, %653 : vector<2x1x256xf32>
    %c15_306 = arith.constant 15 : index
    %c0_307 = arith.constant 0 : index
    %655 = memref.load %arg4[%c15_306, %c0_307] : memref<16x8xf32, #tpu.memory_space<smem>>
    %656 = vector.broadcast %655 : f32 to vector<2x1x256xf32>
    %657 = arith.mulf %592, %656 : vector<2x1x256xf32>
    %658 = arith.addf %654, %657 : vector<2x1x256xf32>
    %cst_308 = arith.constant 0.000000e+00 : f32
    %659 = vector.broadcast %cst_308 : f32 to vector<2x1x256xf32>
    %660 = arith.maximumf %658, %659 : vector<2x1x256xf32>
    %c0_309 = arith.constant 0 : index
    %c1_310 = arith.constant 1 : index
    %661 = memref.load %arg4[%c0_309, %c1_310] : memref<16x8xf32, #tpu.memory_space<smem>>
    %662 = vector.broadcast %661 : f32 to vector<2x1x256xf32>
    %663 = arith.mulf %52, %662 : vector<2x1x256xf32>
    %c1_311 = arith.constant 1 : index
    %664 = memref.load %arg5[%c1_311] : memref<8xf32, #tpu.memory_space<smem>>
    %665 = vector.broadcast %664 : f32 to vector<2x1x256xf32>
    %666 = arith.addf %663, %665 : vector<2x1x256xf32>
    %c1_312 = arith.constant 1 : index
    %c1_313 = arith.constant 1 : index
    %667 = memref.load %arg4[%c1_312, %c1_313] : memref<16x8xf32, #tpu.memory_space<smem>>
    %668 = vector.broadcast %667 : f32 to vector<2x1x256xf32>
    %669 = arith.mulf %88, %668 : vector<2x1x256xf32>
    %670 = arith.addf %666, %669 : vector<2x1x256xf32>
    %c2_314 = arith.constant 2 : index
    %c1_315 = arith.constant 1 : index
    %671 = memref.load %arg4[%c2_314, %c1_315] : memref<16x8xf32, #tpu.memory_space<smem>>
    %672 = vector.broadcast %671 : f32 to vector<2x1x256xf32>
    %673 = arith.mulf %124, %672 : vector<2x1x256xf32>
    %674 = arith.addf %670, %673 : vector<2x1x256xf32>
    %c3_316 = arith.constant 3 : index
    %c1_317 = arith.constant 1 : index
    %675 = memref.load %arg4[%c3_316, %c1_317] : memref<16x8xf32, #tpu.memory_space<smem>>
    %676 = vector.broadcast %675 : f32 to vector<2x1x256xf32>
    %677 = arith.mulf %160, %676 : vector<2x1x256xf32>
    %678 = arith.addf %674, %677 : vector<2x1x256xf32>
    %c4_318 = arith.constant 4 : index
    %c1_319 = arith.constant 1 : index
    %679 = memref.load %arg4[%c4_318, %c1_319] : memref<16x8xf32, #tpu.memory_space<smem>>
    %680 = vector.broadcast %679 : f32 to vector<2x1x256xf32>
    %681 = arith.mulf %196, %680 : vector<2x1x256xf32>
    %682 = arith.addf %678, %681 : vector<2x1x256xf32>
    %c5_320 = arith.constant 5 : index
    %c1_321 = arith.constant 1 : index
    %683 = memref.load %arg4[%c5_320, %c1_321] : memref<16x8xf32, #tpu.memory_space<smem>>
    %684 = vector.broadcast %683 : f32 to vector<2x1x256xf32>
    %685 = arith.mulf %232, %684 : vector<2x1x256xf32>
    %686 = arith.addf %682, %685 : vector<2x1x256xf32>
    %c6_322 = arith.constant 6 : index
    %c1_323 = arith.constant 1 : index
    %687 = memref.load %arg4[%c6_322, %c1_323] : memref<16x8xf32, #tpu.memory_space<smem>>
    %688 = vector.broadcast %687 : f32 to vector<2x1x256xf32>
    %689 = arith.mulf %268, %688 : vector<2x1x256xf32>
    %690 = arith.addf %686, %689 : vector<2x1x256xf32>
    %c7_324 = arith.constant 7 : index
    %c1_325 = arith.constant 1 : index
    %691 = memref.load %arg4[%c7_324, %c1_325] : memref<16x8xf32, #tpu.memory_space<smem>>
    %692 = vector.broadcast %691 : f32 to vector<2x1x256xf32>
    %693 = arith.mulf %304, %692 : vector<2x1x256xf32>
    %694 = arith.addf %690, %693 : vector<2x1x256xf32>
    %c8_326 = arith.constant 8 : index
    %c1_327 = arith.constant 1 : index
    %695 = memref.load %arg4[%c8_326, %c1_327] : memref<16x8xf32, #tpu.memory_space<smem>>
    %696 = vector.broadcast %695 : f32 to vector<2x1x256xf32>
    %697 = arith.mulf %340, %696 : vector<2x1x256xf32>
    %698 = arith.addf %694, %697 : vector<2x1x256xf32>
    %c9_328 = arith.constant 9 : index
    %c1_329 = arith.constant 1 : index
    %699 = memref.load %arg4[%c9_328, %c1_329] : memref<16x8xf32, #tpu.memory_space<smem>>
    %700 = vector.broadcast %699 : f32 to vector<2x1x256xf32>
    %701 = arith.mulf %376, %700 : vector<2x1x256xf32>
    %702 = arith.addf %698, %701 : vector<2x1x256xf32>
    %c10_330 = arith.constant 10 : index
    %c1_331 = arith.constant 1 : index
    %703 = memref.load %arg4[%c10_330, %c1_331] : memref<16x8xf32, #tpu.memory_space<smem>>
    %704 = vector.broadcast %703 : f32 to vector<2x1x256xf32>
    %705 = arith.mulf %412, %704 : vector<2x1x256xf32>
    %706 = arith.addf %702, %705 : vector<2x1x256xf32>
    %c11_332 = arith.constant 11 : index
    %c1_333 = arith.constant 1 : index
    %707 = memref.load %arg4[%c11_332, %c1_333] : memref<16x8xf32, #tpu.memory_space<smem>>
    %708 = vector.broadcast %707 : f32 to vector<2x1x256xf32>
    %709 = arith.mulf %448, %708 : vector<2x1x256xf32>
    %710 = arith.addf %706, %709 : vector<2x1x256xf32>
    %c12_334 = arith.constant 12 : index
    %c1_335 = arith.constant 1 : index
    %711 = memref.load %arg4[%c12_334, %c1_335] : memref<16x8xf32, #tpu.memory_space<smem>>
    %712 = vector.broadcast %711 : f32 to vector<2x1x256xf32>
    %713 = arith.mulf %484, %712 : vector<2x1x256xf32>
    %714 = arith.addf %710, %713 : vector<2x1x256xf32>
    %c13_336 = arith.constant 13 : index
    %c1_337 = arith.constant 1 : index
    %715 = memref.load %arg4[%c13_336, %c1_337] : memref<16x8xf32, #tpu.memory_space<smem>>
    %716 = vector.broadcast %715 : f32 to vector<2x1x256xf32>
    %717 = arith.mulf %520, %716 : vector<2x1x256xf32>
    %718 = arith.addf %714, %717 : vector<2x1x256xf32>
    %c14_338 = arith.constant 14 : index
    %c1_339 = arith.constant 1 : index
    %719 = memref.load %arg4[%c14_338, %c1_339] : memref<16x8xf32, #tpu.memory_space<smem>>
    %720 = vector.broadcast %719 : f32 to vector<2x1x256xf32>
    %721 = arith.mulf %556, %720 : vector<2x1x256xf32>
    %722 = arith.addf %718, %721 : vector<2x1x256xf32>
    %c15_340 = arith.constant 15 : index
    %c1_341 = arith.constant 1 : index
    %723 = memref.load %arg4[%c15_340, %c1_341] : memref<16x8xf32, #tpu.memory_space<smem>>
    %724 = vector.broadcast %723 : f32 to vector<2x1x256xf32>
    %725 = arith.mulf %592, %724 : vector<2x1x256xf32>
    %726 = arith.addf %722, %725 : vector<2x1x256xf32>
    %cst_342 = arith.constant 0.000000e+00 : f32
    %727 = vector.broadcast %cst_342 : f32 to vector<2x1x256xf32>
    %728 = arith.maximumf %726, %727 : vector<2x1x256xf32>
    %c0_343 = arith.constant 0 : index
    %c2_344 = arith.constant 2 : index
    %729 = memref.load %arg4[%c0_343, %c2_344] : memref<16x8xf32, #tpu.memory_space<smem>>
    %730 = vector.broadcast %729 : f32 to vector<2x1x256xf32>
    %731 = arith.mulf %52, %730 : vector<2x1x256xf32>
    %c2_345 = arith.constant 2 : index
    %732 = memref.load %arg5[%c2_345] : memref<8xf32, #tpu.memory_space<smem>>
    %733 = vector.broadcast %732 : f32 to vector<2x1x256xf32>
    %734 = arith.addf %731, %733 : vector<2x1x256xf32>
    %c1_346 = arith.constant 1 : index
    %c2_347 = arith.constant 2 : index
    %735 = memref.load %arg4[%c1_346, %c2_347] : memref<16x8xf32, #tpu.memory_space<smem>>
    %736 = vector.broadcast %735 : f32 to vector<2x1x256xf32>
    %737 = arith.mulf %88, %736 : vector<2x1x256xf32>
    %738 = arith.addf %734, %737 : vector<2x1x256xf32>
    %c2_348 = arith.constant 2 : index
    %c2_349 = arith.constant 2 : index
    %739 = memref.load %arg4[%c2_348, %c2_349] : memref<16x8xf32, #tpu.memory_space<smem>>
    %740 = vector.broadcast %739 : f32 to vector<2x1x256xf32>
    %741 = arith.mulf %124, %740 : vector<2x1x256xf32>
    %742 = arith.addf %738, %741 : vector<2x1x256xf32>
    %c3_350 = arith.constant 3 : index
    %c2_351 = arith.constant 2 : index
    %743 = memref.load %arg4[%c3_350, %c2_351] : memref<16x8xf32, #tpu.memory_space<smem>>
    %744 = vector.broadcast %743 : f32 to vector<2x1x256xf32>
    %745 = arith.mulf %160, %744 : vector<2x1x256xf32>
    %746 = arith.addf %742, %745 : vector<2x1x256xf32>
    %c4_352 = arith.constant 4 : index
    %c2_353 = arith.constant 2 : index
    %747 = memref.load %arg4[%c4_352, %c2_353] : memref<16x8xf32, #tpu.memory_space<smem>>
    %748 = vector.broadcast %747 : f32 to vector<2x1x256xf32>
    %749 = arith.mulf %196, %748 : vector<2x1x256xf32>
    %750 = arith.addf %746, %749 : vector<2x1x256xf32>
    %c5_354 = arith.constant 5 : index
    %c2_355 = arith.constant 2 : index
    %751 = memref.load %arg4[%c5_354, %c2_355] : memref<16x8xf32, #tpu.memory_space<smem>>
    %752 = vector.broadcast %751 : f32 to vector<2x1x256xf32>
    %753 = arith.mulf %232, %752 : vector<2x1x256xf32>
    %754 = arith.addf %750, %753 : vector<2x1x256xf32>
    %c6_356 = arith.constant 6 : index
    %c2_357 = arith.constant 2 : index
    %755 = memref.load %arg4[%c6_356, %c2_357] : memref<16x8xf32, #tpu.memory_space<smem>>
    %756 = vector.broadcast %755 : f32 to vector<2x1x256xf32>
    %757 = arith.mulf %268, %756 : vector<2x1x256xf32>
    %758 = arith.addf %754, %757 : vector<2x1x256xf32>
    %c7_358 = arith.constant 7 : index
    %c2_359 = arith.constant 2 : index
    %759 = memref.load %arg4[%c7_358, %c2_359] : memref<16x8xf32, #tpu.memory_space<smem>>
    %760 = vector.broadcast %759 : f32 to vector<2x1x256xf32>
    %761 = arith.mulf %304, %760 : vector<2x1x256xf32>
    %762 = arith.addf %758, %761 : vector<2x1x256xf32>
    %c8_360 = arith.constant 8 : index
    %c2_361 = arith.constant 2 : index
    %763 = memref.load %arg4[%c8_360, %c2_361] : memref<16x8xf32, #tpu.memory_space<smem>>
    %764 = vector.broadcast %763 : f32 to vector<2x1x256xf32>
    %765 = arith.mulf %340, %764 : vector<2x1x256xf32>
    %766 = arith.addf %762, %765 : vector<2x1x256xf32>
    %c9_362 = arith.constant 9 : index
    %c2_363 = arith.constant 2 : index
    %767 = memref.load %arg4[%c9_362, %c2_363] : memref<16x8xf32, #tpu.memory_space<smem>>
    %768 = vector.broadcast %767 : f32 to vector<2x1x256xf32>
    %769 = arith.mulf %376, %768 : vector<2x1x256xf32>
    %770 = arith.addf %766, %769 : vector<2x1x256xf32>
    %c10_364 = arith.constant 10 : index
    %c2_365 = arith.constant 2 : index
    %771 = memref.load %arg4[%c10_364, %c2_365] : memref<16x8xf32, #tpu.memory_space<smem>>
    %772 = vector.broadcast %771 : f32 to vector<2x1x256xf32>
    %773 = arith.mulf %412, %772 : vector<2x1x256xf32>
    %774 = arith.addf %770, %773 : vector<2x1x256xf32>
    %c11_366 = arith.constant 11 : index
    %c2_367 = arith.constant 2 : index
    %775 = memref.load %arg4[%c11_366, %c2_367] : memref<16x8xf32, #tpu.memory_space<smem>>
    %776 = vector.broadcast %775 : f32 to vector<2x1x256xf32>
    %777 = arith.mulf %448, %776 : vector<2x1x256xf32>
    %778 = arith.addf %774, %777 : vector<2x1x256xf32>
    %c12_368 = arith.constant 12 : index
    %c2_369 = arith.constant 2 : index
    %779 = memref.load %arg4[%c12_368, %c2_369] : memref<16x8xf32, #tpu.memory_space<smem>>
    %780 = vector.broadcast %779 : f32 to vector<2x1x256xf32>
    %781 = arith.mulf %484, %780 : vector<2x1x256xf32>
    %782 = arith.addf %778, %781 : vector<2x1x256xf32>
    %c13_370 = arith.constant 13 : index
    %c2_371 = arith.constant 2 : index
    %783 = memref.load %arg4[%c13_370, %c2_371] : memref<16x8xf32, #tpu.memory_space<smem>>
    %784 = vector.broadcast %783 : f32 to vector<2x1x256xf32>
    %785 = arith.mulf %520, %784 : vector<2x1x256xf32>
    %786 = arith.addf %782, %785 : vector<2x1x256xf32>
    %c14_372 = arith.constant 14 : index
    %c2_373 = arith.constant 2 : index
    %787 = memref.load %arg4[%c14_372, %c2_373] : memref<16x8xf32, #tpu.memory_space<smem>>
    %788 = vector.broadcast %787 : f32 to vector<2x1x256xf32>
    %789 = arith.mulf %556, %788 : vector<2x1x256xf32>
    %790 = arith.addf %786, %789 : vector<2x1x256xf32>
    %c15_374 = arith.constant 15 : index
    %c2_375 = arith.constant 2 : index
    %791 = memref.load %arg4[%c15_374, %c2_375] : memref<16x8xf32, #tpu.memory_space<smem>>
    %792 = vector.broadcast %791 : f32 to vector<2x1x256xf32>
    %793 = arith.mulf %592, %792 : vector<2x1x256xf32>
    %794 = arith.addf %790, %793 : vector<2x1x256xf32>
    %cst_376 = arith.constant 0.000000e+00 : f32
    %795 = vector.broadcast %cst_376 : f32 to vector<2x1x256xf32>
    %796 = arith.maximumf %794, %795 : vector<2x1x256xf32>
    %c0_377 = arith.constant 0 : index
    %c3_378 = arith.constant 3 : index
    %797 = memref.load %arg4[%c0_377, %c3_378] : memref<16x8xf32, #tpu.memory_space<smem>>
    %798 = vector.broadcast %797 : f32 to vector<2x1x256xf32>
    %799 = arith.mulf %52, %798 : vector<2x1x256xf32>
    %c3_379 = arith.constant 3 : index
    %800 = memref.load %arg5[%c3_379] : memref<8xf32, #tpu.memory_space<smem>>
    %801 = vector.broadcast %800 : f32 to vector<2x1x256xf32>
    %802 = arith.addf %799, %801 : vector<2x1x256xf32>
    %c1_380 = arith.constant 1 : index
    %c3_381 = arith.constant 3 : index
    %803 = memref.load %arg4[%c1_380, %c3_381] : memref<16x8xf32, #tpu.memory_space<smem>>
    %804 = vector.broadcast %803 : f32 to vector<2x1x256xf32>
    %805 = arith.mulf %88, %804 : vector<2x1x256xf32>
    %806 = arith.addf %802, %805 : vector<2x1x256xf32>
    %c2_382 = arith.constant 2 : index
    %c3_383 = arith.constant 3 : index
    %807 = memref.load %arg4[%c2_382, %c3_383] : memref<16x8xf32, #tpu.memory_space<smem>>
    %808 = vector.broadcast %807 : f32 to vector<2x1x256xf32>
    %809 = arith.mulf %124, %808 : vector<2x1x256xf32>
    %810 = arith.addf %806, %809 : vector<2x1x256xf32>
    %c3_384 = arith.constant 3 : index
    %c3_385 = arith.constant 3 : index
    %811 = memref.load %arg4[%c3_384, %c3_385] : memref<16x8xf32, #tpu.memory_space<smem>>
    %812 = vector.broadcast %811 : f32 to vector<2x1x256xf32>
    %813 = arith.mulf %160, %812 : vector<2x1x256xf32>
    %814 = arith.addf %810, %813 : vector<2x1x256xf32>
    %c4_386 = arith.constant 4 : index
    %c3_387 = arith.constant 3 : index
    %815 = memref.load %arg4[%c4_386, %c3_387] : memref<16x8xf32, #tpu.memory_space<smem>>
    %816 = vector.broadcast %815 : f32 to vector<2x1x256xf32>
    %817 = arith.mulf %196, %816 : vector<2x1x256xf32>
    %818 = arith.addf %814, %817 : vector<2x1x256xf32>
    %c5_388 = arith.constant 5 : index
    %c3_389 = arith.constant 3 : index
    %819 = memref.load %arg4[%c5_388, %c3_389] : memref<16x8xf32, #tpu.memory_space<smem>>
    %820 = vector.broadcast %819 : f32 to vector<2x1x256xf32>
    %821 = arith.mulf %232, %820 : vector<2x1x256xf32>
    %822 = arith.addf %818, %821 : vector<2x1x256xf32>
    %c6_390 = arith.constant 6 : index
    %c3_391 = arith.constant 3 : index
    %823 = memref.load %arg4[%c6_390, %c3_391] : memref<16x8xf32, #tpu.memory_space<smem>>
    %824 = vector.broadcast %823 : f32 to vector<2x1x256xf32>
    %825 = arith.mulf %268, %824 : vector<2x1x256xf32>
    %826 = arith.addf %822, %825 : vector<2x1x256xf32>
    %c7_392 = arith.constant 7 : index
    %c3_393 = arith.constant 3 : index
    %827 = memref.load %arg4[%c7_392, %c3_393] : memref<16x8xf32, #tpu.memory_space<smem>>
    %828 = vector.broadcast %827 : f32 to vector<2x1x256xf32>
    %829 = arith.mulf %304, %828 : vector<2x1x256xf32>
    %830 = arith.addf %826, %829 : vector<2x1x256xf32>
    %c8_394 = arith.constant 8 : index
    %c3_395 = arith.constant 3 : index
    %831 = memref.load %arg4[%c8_394, %c3_395] : memref<16x8xf32, #tpu.memory_space<smem>>
    %832 = vector.broadcast %831 : f32 to vector<2x1x256xf32>
    %833 = arith.mulf %340, %832 : vector<2x1x256xf32>
    %834 = arith.addf %830, %833 : vector<2x1x256xf32>
    %c9_396 = arith.constant 9 : index
    %c3_397 = arith.constant 3 : index
    %835 = memref.load %arg4[%c9_396, %c3_397] : memref<16x8xf32, #tpu.memory_space<smem>>
    %836 = vector.broadcast %835 : f32 to vector<2x1x256xf32>
    %837 = arith.mulf %376, %836 : vector<2x1x256xf32>
    %838 = arith.addf %834, %837 : vector<2x1x256xf32>
    %c10_398 = arith.constant 10 : index
    %c3_399 = arith.constant 3 : index
    %839 = memref.load %arg4[%c10_398, %c3_399] : memref<16x8xf32, #tpu.memory_space<smem>>
    %840 = vector.broadcast %839 : f32 to vector<2x1x256xf32>
    %841 = arith.mulf %412, %840 : vector<2x1x256xf32>
    %842 = arith.addf %838, %841 : vector<2x1x256xf32>
    %c11_400 = arith.constant 11 : index
    %c3_401 = arith.constant 3 : index
    %843 = memref.load %arg4[%c11_400, %c3_401] : memref<16x8xf32, #tpu.memory_space<smem>>
    %844 = vector.broadcast %843 : f32 to vector<2x1x256xf32>
    %845 = arith.mulf %448, %844 : vector<2x1x256xf32>
    %846 = arith.addf %842, %845 : vector<2x1x256xf32>
    %c12_402 = arith.constant 12 : index
    %c3_403 = arith.constant 3 : index
    %847 = memref.load %arg4[%c12_402, %c3_403] : memref<16x8xf32, #tpu.memory_space<smem>>
    %848 = vector.broadcast %847 : f32 to vector<2x1x256xf32>
    %849 = arith.mulf %484, %848 : vector<2x1x256xf32>
    %850 = arith.addf %846, %849 : vector<2x1x256xf32>
    %c13_404 = arith.constant 13 : index
    %c3_405 = arith.constant 3 : index
    %851 = memref.load %arg4[%c13_404, %c3_405] : memref<16x8xf32, #tpu.memory_space<smem>>
    %852 = vector.broadcast %851 : f32 to vector<2x1x256xf32>
    %853 = arith.mulf %520, %852 : vector<2x1x256xf32>
    %854 = arith.addf %850, %853 : vector<2x1x256xf32>
    %c14_406 = arith.constant 14 : index
    %c3_407 = arith.constant 3 : index
    %855 = memref.load %arg4[%c14_406, %c3_407] : memref<16x8xf32, #tpu.memory_space<smem>>
    %856 = vector.broadcast %855 : f32 to vector<2x1x256xf32>
    %857 = arith.mulf %556, %856 : vector<2x1x256xf32>
    %858 = arith.addf %854, %857 : vector<2x1x256xf32>
    %c15_408 = arith.constant 15 : index
    %c3_409 = arith.constant 3 : index
    %859 = memref.load %arg4[%c15_408, %c3_409] : memref<16x8xf32, #tpu.memory_space<smem>>
    %860 = vector.broadcast %859 : f32 to vector<2x1x256xf32>
    %861 = arith.mulf %592, %860 : vector<2x1x256xf32>
    %862 = arith.addf %858, %861 : vector<2x1x256xf32>
    %cst_410 = arith.constant 0.000000e+00 : f32
    %863 = vector.broadcast %cst_410 : f32 to vector<2x1x256xf32>
    %864 = arith.maximumf %862, %863 : vector<2x1x256xf32>
    %c0_411 = arith.constant 0 : index
    %c4_412 = arith.constant 4 : index
    %865 = memref.load %arg4[%c0_411, %c4_412] : memref<16x8xf32, #tpu.memory_space<smem>>
    %866 = vector.broadcast %865 : f32 to vector<2x1x256xf32>
    %867 = arith.mulf %52, %866 : vector<2x1x256xf32>
    %c4_413 = arith.constant 4 : index
    %868 = memref.load %arg5[%c4_413] : memref<8xf32, #tpu.memory_space<smem>>
    %869 = vector.broadcast %868 : f32 to vector<2x1x256xf32>
    %870 = arith.addf %867, %869 : vector<2x1x256xf32>
    %c1_414 = arith.constant 1 : index
    %c4_415 = arith.constant 4 : index
    %871 = memref.load %arg4[%c1_414, %c4_415] : memref<16x8xf32, #tpu.memory_space<smem>>
    %872 = vector.broadcast %871 : f32 to vector<2x1x256xf32>
    %873 = arith.mulf %88, %872 : vector<2x1x256xf32>
    %874 = arith.addf %870, %873 : vector<2x1x256xf32>
    %c2_416 = arith.constant 2 : index
    %c4_417 = arith.constant 4 : index
    %875 = memref.load %arg4[%c2_416, %c4_417] : memref<16x8xf32, #tpu.memory_space<smem>>
    %876 = vector.broadcast %875 : f32 to vector<2x1x256xf32>
    %877 = arith.mulf %124, %876 : vector<2x1x256xf32>
    %878 = arith.addf %874, %877 : vector<2x1x256xf32>
    %c3_418 = arith.constant 3 : index
    %c4_419 = arith.constant 4 : index
    %879 = memref.load %arg4[%c3_418, %c4_419] : memref<16x8xf32, #tpu.memory_space<smem>>
    %880 = vector.broadcast %879 : f32 to vector<2x1x256xf32>
    %881 = arith.mulf %160, %880 : vector<2x1x256xf32>
    %882 = arith.addf %878, %881 : vector<2x1x256xf32>
    %c4_420 = arith.constant 4 : index
    %c4_421 = arith.constant 4 : index
    %883 = memref.load %arg4[%c4_420, %c4_421] : memref<16x8xf32, #tpu.memory_space<smem>>
    %884 = vector.broadcast %883 : f32 to vector<2x1x256xf32>
    %885 = arith.mulf %196, %884 : vector<2x1x256xf32>
    %886 = arith.addf %882, %885 : vector<2x1x256xf32>
    %c5_422 = arith.constant 5 : index
    %c4_423 = arith.constant 4 : index
    %887 = memref.load %arg4[%c5_422, %c4_423] : memref<16x8xf32, #tpu.memory_space<smem>>
    %888 = vector.broadcast %887 : f32 to vector<2x1x256xf32>
    %889 = arith.mulf %232, %888 : vector<2x1x256xf32>
    %890 = arith.addf %886, %889 : vector<2x1x256xf32>
    %c6_424 = arith.constant 6 : index
    %c4_425 = arith.constant 4 : index
    %891 = memref.load %arg4[%c6_424, %c4_425] : memref<16x8xf32, #tpu.memory_space<smem>>
    %892 = vector.broadcast %891 : f32 to vector<2x1x256xf32>
    %893 = arith.mulf %268, %892 : vector<2x1x256xf32>
    %894 = arith.addf %890, %893 : vector<2x1x256xf32>
    %c7_426 = arith.constant 7 : index
    %c4_427 = arith.constant 4 : index
    %895 = memref.load %arg4[%c7_426, %c4_427] : memref<16x8xf32, #tpu.memory_space<smem>>
    %896 = vector.broadcast %895 : f32 to vector<2x1x256xf32>
    %897 = arith.mulf %304, %896 : vector<2x1x256xf32>
    %898 = arith.addf %894, %897 : vector<2x1x256xf32>
    %c8_428 = arith.constant 8 : index
    %c4_429 = arith.constant 4 : index
    %899 = memref.load %arg4[%c8_428, %c4_429] : memref<16x8xf32, #tpu.memory_space<smem>>
    %900 = vector.broadcast %899 : f32 to vector<2x1x256xf32>
    %901 = arith.mulf %340, %900 : vector<2x1x256xf32>
    %902 = arith.addf %898, %901 : vector<2x1x256xf32>
    %c9_430 = arith.constant 9 : index
    %c4_431 = arith.constant 4 : index
    %903 = memref.load %arg4[%c9_430, %c4_431] : memref<16x8xf32, #tpu.memory_space<smem>>
    %904 = vector.broadcast %903 : f32 to vector<2x1x256xf32>
    %905 = arith.mulf %376, %904 : vector<2x1x256xf32>
    %906 = arith.addf %902, %905 : vector<2x1x256xf32>
    %c10_432 = arith.constant 10 : index
    %c4_433 = arith.constant 4 : index
    %907 = memref.load %arg4[%c10_432, %c4_433] : memref<16x8xf32, #tpu.memory_space<smem>>
    %908 = vector.broadcast %907 : f32 to vector<2x1x256xf32>
    %909 = arith.mulf %412, %908 : vector<2x1x256xf32>
    %910 = arith.addf %906, %909 : vector<2x1x256xf32>
    %c11_434 = arith.constant 11 : index
    %c4_435 = arith.constant 4 : index
    %911 = memref.load %arg4[%c11_434, %c4_435] : memref<16x8xf32, #tpu.memory_space<smem>>
    %912 = vector.broadcast %911 : f32 to vector<2x1x256xf32>
    %913 = arith.mulf %448, %912 : vector<2x1x256xf32>
    %914 = arith.addf %910, %913 : vector<2x1x256xf32>
    %c12_436 = arith.constant 12 : index
    %c4_437 = arith.constant 4 : index
    %915 = memref.load %arg4[%c12_436, %c4_437] : memref<16x8xf32, #tpu.memory_space<smem>>
    %916 = vector.broadcast %915 : f32 to vector<2x1x256xf32>
    %917 = arith.mulf %484, %916 : vector<2x1x256xf32>
    %918 = arith.addf %914, %917 : vector<2x1x256xf32>
    %c13_438 = arith.constant 13 : index
    %c4_439 = arith.constant 4 : index
    %919 = memref.load %arg4[%c13_438, %c4_439] : memref<16x8xf32, #tpu.memory_space<smem>>
    %920 = vector.broadcast %919 : f32 to vector<2x1x256xf32>
    %921 = arith.mulf %520, %920 : vector<2x1x256xf32>
    %922 = arith.addf %918, %921 : vector<2x1x256xf32>
    %c14_440 = arith.constant 14 : index
    %c4_441 = arith.constant 4 : index
    %923 = memref.load %arg4[%c14_440, %c4_441] : memref<16x8xf32, #tpu.memory_space<smem>>
    %924 = vector.broadcast %923 : f32 to vector<2x1x256xf32>
    %925 = arith.mulf %556, %924 : vector<2x1x256xf32>
    %926 = arith.addf %922, %925 : vector<2x1x256xf32>
    %c15_442 = arith.constant 15 : index
    %c4_443 = arith.constant 4 : index
    %927 = memref.load %arg4[%c15_442, %c4_443] : memref<16x8xf32, #tpu.memory_space<smem>>
    %928 = vector.broadcast %927 : f32 to vector<2x1x256xf32>
    %929 = arith.mulf %592, %928 : vector<2x1x256xf32>
    %930 = arith.addf %926, %929 : vector<2x1x256xf32>
    %cst_444 = arith.constant 0.000000e+00 : f32
    %931 = vector.broadcast %cst_444 : f32 to vector<2x1x256xf32>
    %932 = arith.maximumf %930, %931 : vector<2x1x256xf32>
    %c0_445 = arith.constant 0 : index
    %c5_446 = arith.constant 5 : index
    %933 = memref.load %arg4[%c0_445, %c5_446] : memref<16x8xf32, #tpu.memory_space<smem>>
    %934 = vector.broadcast %933 : f32 to vector<2x1x256xf32>
    %935 = arith.mulf %52, %934 : vector<2x1x256xf32>
    %c5_447 = arith.constant 5 : index
    %936 = memref.load %arg5[%c5_447] : memref<8xf32, #tpu.memory_space<smem>>
    %937 = vector.broadcast %936 : f32 to vector<2x1x256xf32>
    %938 = arith.addf %935, %937 : vector<2x1x256xf32>
    %c1_448 = arith.constant 1 : index
    %c5_449 = arith.constant 5 : index
    %939 = memref.load %arg4[%c1_448, %c5_449] : memref<16x8xf32, #tpu.memory_space<smem>>
    %940 = vector.broadcast %939 : f32 to vector<2x1x256xf32>
    %941 = arith.mulf %88, %940 : vector<2x1x256xf32>
    %942 = arith.addf %938, %941 : vector<2x1x256xf32>
    %c2_450 = arith.constant 2 : index
    %c5_451 = arith.constant 5 : index
    %943 = memref.load %arg4[%c2_450, %c5_451] : memref<16x8xf32, #tpu.memory_space<smem>>
    %944 = vector.broadcast %943 : f32 to vector<2x1x256xf32>
    %945 = arith.mulf %124, %944 : vector<2x1x256xf32>
    %946 = arith.addf %942, %945 : vector<2x1x256xf32>
    %c3_452 = arith.constant 3 : index
    %c5_453 = arith.constant 5 : index
    %947 = memref.load %arg4[%c3_452, %c5_453] : memref<16x8xf32, #tpu.memory_space<smem>>
    %948 = vector.broadcast %947 : f32 to vector<2x1x256xf32>
    %949 = arith.mulf %160, %948 : vector<2x1x256xf32>
    %950 = arith.addf %946, %949 : vector<2x1x256xf32>
    %c4_454 = arith.constant 4 : index
    %c5_455 = arith.constant 5 : index
    %951 = memref.load %arg4[%c4_454, %c5_455] : memref<16x8xf32, #tpu.memory_space<smem>>
    %952 = vector.broadcast %951 : f32 to vector<2x1x256xf32>
    %953 = arith.mulf %196, %952 : vector<2x1x256xf32>
    %954 = arith.addf %950, %953 : vector<2x1x256xf32>
    %c5_456 = arith.constant 5 : index
    %c5_457 = arith.constant 5 : index
    %955 = memref.load %arg4[%c5_456, %c5_457] : memref<16x8xf32, #tpu.memory_space<smem>>
    %956 = vector.broadcast %955 : f32 to vector<2x1x256xf32>
    %957 = arith.mulf %232, %956 : vector<2x1x256xf32>
    %958 = arith.addf %954, %957 : vector<2x1x256xf32>
    %c6_458 = arith.constant 6 : index
    %c5_459 = arith.constant 5 : index
    %959 = memref.load %arg4[%c6_458, %c5_459] : memref<16x8xf32, #tpu.memory_space<smem>>
    %960 = vector.broadcast %959 : f32 to vector<2x1x256xf32>
    %961 = arith.mulf %268, %960 : vector<2x1x256xf32>
    %962 = arith.addf %958, %961 : vector<2x1x256xf32>
    %c7_460 = arith.constant 7 : index
    %c5_461 = arith.constant 5 : index
    %963 = memref.load %arg4[%c7_460, %c5_461] : memref<16x8xf32, #tpu.memory_space<smem>>
    %964 = vector.broadcast %963 : f32 to vector<2x1x256xf32>
    %965 = arith.mulf %304, %964 : vector<2x1x256xf32>
    %966 = arith.addf %962, %965 : vector<2x1x256xf32>
    %c8_462 = arith.constant 8 : index
    %c5_463 = arith.constant 5 : index
    %967 = memref.load %arg4[%c8_462, %c5_463] : memref<16x8xf32, #tpu.memory_space<smem>>
    %968 = vector.broadcast %967 : f32 to vector<2x1x256xf32>
    %969 = arith.mulf %340, %968 : vector<2x1x256xf32>
    %970 = arith.addf %966, %969 : vector<2x1x256xf32>
    %c9_464 = arith.constant 9 : index
    %c5_465 = arith.constant 5 : index
    %971 = memref.load %arg4[%c9_464, %c5_465] : memref<16x8xf32, #tpu.memory_space<smem>>
    %972 = vector.broadcast %971 : f32 to vector<2x1x256xf32>
    %973 = arith.mulf %376, %972 : vector<2x1x256xf32>
    %974 = arith.addf %970, %973 : vector<2x1x256xf32>
    %c10_466 = arith.constant 10 : index
    %c5_467 = arith.constant 5 : index
    %975 = memref.load %arg4[%c10_466, %c5_467] : memref<16x8xf32, #tpu.memory_space<smem>>
    %976 = vector.broadcast %975 : f32 to vector<2x1x256xf32>
    %977 = arith.mulf %412, %976 : vector<2x1x256xf32>
    %978 = arith.addf %974, %977 : vector<2x1x256xf32>
    %c11_468 = arith.constant 11 : index
    %c5_469 = arith.constant 5 : index
    %979 = memref.load %arg4[%c11_468, %c5_469] : memref<16x8xf32, #tpu.memory_space<smem>>
    %980 = vector.broadcast %979 : f32 to vector<2x1x256xf32>
    %981 = arith.mulf %448, %980 : vector<2x1x256xf32>
    %982 = arith.addf %978, %981 : vector<2x1x256xf32>
    %c12_470 = arith.constant 12 : index
    %c5_471 = arith.constant 5 : index
    %983 = memref.load %arg4[%c12_470, %c5_471] : memref<16x8xf32, #tpu.memory_space<smem>>
    %984 = vector.broadcast %983 : f32 to vector<2x1x256xf32>
    %985 = arith.mulf %484, %984 : vector<2x1x256xf32>
    %986 = arith.addf %982, %985 : vector<2x1x256xf32>
    %c13_472 = arith.constant 13 : index
    %c5_473 = arith.constant 5 : index
    %987 = memref.load %arg4[%c13_472, %c5_473] : memref<16x8xf32, #tpu.memory_space<smem>>
    %988 = vector.broadcast %987 : f32 to vector<2x1x256xf32>
    %989 = arith.mulf %520, %988 : vector<2x1x256xf32>
    %990 = arith.addf %986, %989 : vector<2x1x256xf32>
    %c14_474 = arith.constant 14 : index
    %c5_475 = arith.constant 5 : index
    %991 = memref.load %arg4[%c14_474, %c5_475] : memref<16x8xf32, #tpu.memory_space<smem>>
    %992 = vector.broadcast %991 : f32 to vector<2x1x256xf32>
    %993 = arith.mulf %556, %992 : vector<2x1x256xf32>
    %994 = arith.addf %990, %993 : vector<2x1x256xf32>
    %c15_476 = arith.constant 15 : index
    %c5_477 = arith.constant 5 : index
    %995 = memref.load %arg4[%c15_476, %c5_477] : memref<16x8xf32, #tpu.memory_space<smem>>
    %996 = vector.broadcast %995 : f32 to vector<2x1x256xf32>
    %997 = arith.mulf %592, %996 : vector<2x1x256xf32>
    %998 = arith.addf %994, %997 : vector<2x1x256xf32>
    %cst_478 = arith.constant 0.000000e+00 : f32
    %999 = vector.broadcast %cst_478 : f32 to vector<2x1x256xf32>
    %1000 = arith.maximumf %998, %999 : vector<2x1x256xf32>
    %c0_479 = arith.constant 0 : index
    %c6_480 = arith.constant 6 : index
    %1001 = memref.load %arg4[%c0_479, %c6_480] : memref<16x8xf32, #tpu.memory_space<smem>>
    %1002 = vector.broadcast %1001 : f32 to vector<2x1x256xf32>
    %1003 = arith.mulf %52, %1002 : vector<2x1x256xf32>
    %c6_481 = arith.constant 6 : index
    %1004 = memref.load %arg5[%c6_481] : memref<8xf32, #tpu.memory_space<smem>>
    %1005 = vector.broadcast %1004 : f32 to vector<2x1x256xf32>
    %1006 = arith.addf %1003, %1005 : vector<2x1x256xf32>
    %c1_482 = arith.constant 1 : index
    %c6_483 = arith.constant 6 : index
    %1007 = memref.load %arg4[%c1_482, %c6_483] : memref<16x8xf32, #tpu.memory_space<smem>>
    %1008 = vector.broadcast %1007 : f32 to vector<2x1x256xf32>
    %1009 = arith.mulf %88, %1008 : vector<2x1x256xf32>
    %1010 = arith.addf %1006, %1009 : vector<2x1x256xf32>
    %c2_484 = arith.constant 2 : index
    %c6_485 = arith.constant 6 : index
    %1011 = memref.load %arg4[%c2_484, %c6_485] : memref<16x8xf32, #tpu.memory_space<smem>>
    %1012 = vector.broadcast %1011 : f32 to vector<2x1x256xf32>
    %1013 = arith.mulf %124, %1012 : vector<2x1x256xf32>
    %1014 = arith.addf %1010, %1013 : vector<2x1x256xf32>
    %c3_486 = arith.constant 3 : index
    %c6_487 = arith.constant 6 : index
    %1015 = memref.load %arg4[%c3_486, %c6_487] : memref<16x8xf32, #tpu.memory_space<smem>>
    %1016 = vector.broadcast %1015 : f32 to vector<2x1x256xf32>
    %1017 = arith.mulf %160, %1016 : vector<2x1x256xf32>
    %1018 = arith.addf %1014, %1017 : vector<2x1x256xf32>
    %c4_488 = arith.constant 4 : index
    %c6_489 = arith.constant 6 : index
    %1019 = memref.load %arg4[%c4_488, %c6_489] : memref<16x8xf32, #tpu.memory_space<smem>>
    %1020 = vector.broadcast %1019 : f32 to vector<2x1x256xf32>
    %1021 = arith.mulf %196, %1020 : vector<2x1x256xf32>
    %1022 = arith.addf %1018, %1021 : vector<2x1x256xf32>
    %c5_490 = arith.constant 5 : index
    %c6_491 = arith.constant 6 : index
    %1023 = memref.load %arg4[%c5_490, %c6_491] : memref<16x8xf32, #tpu.memory_space<smem>>
    %1024 = vector.broadcast %1023 : f32 to vector<2x1x256xf32>
    %1025 = arith.mulf %232, %1024 : vector<2x1x256xf32>
    %1026 = arith.addf %1022, %1025 : vector<2x1x256xf32>
    %c6_492 = arith.constant 6 : index
    %c6_493 = arith.constant 6 : index
    %1027 = memref.load %arg4[%c6_492, %c6_493] : memref<16x8xf32, #tpu.memory_space<smem>>
    %1028 = vector.broadcast %1027 : f32 to vector<2x1x256xf32>
    %1029 = arith.mulf %268, %1028 : vector<2x1x256xf32>
    %1030 = arith.addf %1026, %1029 : vector<2x1x256xf32>
    %c7_494 = arith.constant 7 : index
    %c6_495 = arith.constant 6 : index
    %1031 = memref.load %arg4[%c7_494, %c6_495] : memref<16x8xf32, #tpu.memory_space<smem>>
    %1032 = vector.broadcast %1031 : f32 to vector<2x1x256xf32>
    %1033 = arith.mulf %304, %1032 : vector<2x1x256xf32>
    %1034 = arith.addf %1030, %1033 : vector<2x1x256xf32>
    %c8_496 = arith.constant 8 : index
    %c6_497 = arith.constant 6 : index
    %1035 = memref.load %arg4[%c8_496, %c6_497] : memref<16x8xf32, #tpu.memory_space<smem>>
    %1036 = vector.broadcast %1035 : f32 to vector<2x1x256xf32>
    %1037 = arith.mulf %340, %1036 : vector<2x1x256xf32>
    %1038 = arith.addf %1034, %1037 : vector<2x1x256xf32>
    %c9_498 = arith.constant 9 : index
    %c6_499 = arith.constant 6 : index
    %1039 = memref.load %arg4[%c9_498, %c6_499] : memref<16x8xf32, #tpu.memory_space<smem>>
    %1040 = vector.broadcast %1039 : f32 to vector<2x1x256xf32>
    %1041 = arith.mulf %376, %1040 : vector<2x1x256xf32>
    %1042 = arith.addf %1038, %1041 : vector<2x1x256xf32>
    %c10_500 = arith.constant 10 : index
    %c6_501 = arith.constant 6 : index
    %1043 = memref.load %arg4[%c10_500, %c6_501] : memref<16x8xf32, #tpu.memory_space<smem>>
    %1044 = vector.broadcast %1043 : f32 to vector<2x1x256xf32>
    %1045 = arith.mulf %412, %1044 : vector<2x1x256xf32>
    %1046 = arith.addf %1042, %1045 : vector<2x1x256xf32>
    %c11_502 = arith.constant 11 : index
    %c6_503 = arith.constant 6 : index
    %1047 = memref.load %arg4[%c11_502, %c6_503] : memref<16x8xf32, #tpu.memory_space<smem>>
    %1048 = vector.broadcast %1047 : f32 to vector<2x1x256xf32>
    %1049 = arith.mulf %448, %1048 : vector<2x1x256xf32>
    %1050 = arith.addf %1046, %1049 : vector<2x1x256xf32>
    %c12_504 = arith.constant 12 : index
    %c6_505 = arith.constant 6 : index
    %1051 = memref.load %arg4[%c12_504, %c6_505] : memref<16x8xf32, #tpu.memory_space<smem>>
    %1052 = vector.broadcast %1051 : f32 to vector<2x1x256xf32>
    %1053 = arith.mulf %484, %1052 : vector<2x1x256xf32>
    %1054 = arith.addf %1050, %1053 : vector<2x1x256xf32>
    %c13_506 = arith.constant 13 : index
    %c6_507 = arith.constant 6 : index
    %1055 = memref.load %arg4[%c13_506, %c6_507] : memref<16x8xf32, #tpu.memory_space<smem>>
    %1056 = vector.broadcast %1055 : f32 to vector<2x1x256xf32>
    %1057 = arith.mulf %520, %1056 : vector<2x1x256xf32>
    %1058 = arith.addf %1054, %1057 : vector<2x1x256xf32>
    %c14_508 = arith.constant 14 : index
    %c6_509 = arith.constant 6 : index
    %1059 = memref.load %arg4[%c14_508, %c6_509] : memref<16x8xf32, #tpu.memory_space<smem>>
    %1060 = vector.broadcast %1059 : f32 to vector<2x1x256xf32>
    %1061 = arith.mulf %556, %1060 : vector<2x1x256xf32>
    %1062 = arith.addf %1058, %1061 : vector<2x1x256xf32>
    %c15_510 = arith.constant 15 : index
    %c6_511 = arith.constant 6 : index
    %1063 = memref.load %arg4[%c15_510, %c6_511] : memref<16x8xf32, #tpu.memory_space<smem>>
    %1064 = vector.broadcast %1063 : f32 to vector<2x1x256xf32>
    %1065 = arith.mulf %592, %1064 : vector<2x1x256xf32>
    %1066 = arith.addf %1062, %1065 : vector<2x1x256xf32>
    %cst_512 = arith.constant 0.000000e+00 : f32
    %1067 = vector.broadcast %cst_512 : f32 to vector<2x1x256xf32>
    %1068 = arith.maximumf %1066, %1067 : vector<2x1x256xf32>
    %c0_513 = arith.constant 0 : index
    %c7_514 = arith.constant 7 : index
    %1069 = memref.load %arg4[%c0_513, %c7_514] : memref<16x8xf32, #tpu.memory_space<smem>>
    %1070 = vector.broadcast %1069 : f32 to vector<2x1x256xf32>
    %1071 = arith.mulf %52, %1070 : vector<2x1x256xf32>
    %c7_515 = arith.constant 7 : index
    %1072 = memref.load %arg5[%c7_515] : memref<8xf32, #tpu.memory_space<smem>>
    %1073 = vector.broadcast %1072 : f32 to vector<2x1x256xf32>
    %1074 = arith.addf %1071, %1073 : vector<2x1x256xf32>
    %c1_516 = arith.constant 1 : index
    %c7_517 = arith.constant 7 : index
    %1075 = memref.load %arg4[%c1_516, %c7_517] : memref<16x8xf32, #tpu.memory_space<smem>>
    %1076 = vector.broadcast %1075 : f32 to vector<2x1x256xf32>
    %1077 = arith.mulf %88, %1076 : vector<2x1x256xf32>
    %1078 = arith.addf %1074, %1077 : vector<2x1x256xf32>
    %c2_518 = arith.constant 2 : index
    %c7_519 = arith.constant 7 : index
    %1079 = memref.load %arg4[%c2_518, %c7_519] : memref<16x8xf32, #tpu.memory_space<smem>>
    %1080 = vector.broadcast %1079 : f32 to vector<2x1x256xf32>
    %1081 = arith.mulf %124, %1080 : vector<2x1x256xf32>
    %1082 = arith.addf %1078, %1081 : vector<2x1x256xf32>
    %c3_520 = arith.constant 3 : index
    %c7_521 = arith.constant 7 : index
    %1083 = memref.load %arg4[%c3_520, %c7_521] : memref<16x8xf32, #tpu.memory_space<smem>>
    %1084 = vector.broadcast %1083 : f32 to vector<2x1x256xf32>
    %1085 = arith.mulf %160, %1084 : vector<2x1x256xf32>
    %1086 = arith.addf %1082, %1085 : vector<2x1x256xf32>
    %c4_522 = arith.constant 4 : index
    %c7_523 = arith.constant 7 : index
    %1087 = memref.load %arg4[%c4_522, %c7_523] : memref<16x8xf32, #tpu.memory_space<smem>>
    %1088 = vector.broadcast %1087 : f32 to vector<2x1x256xf32>
    %1089 = arith.mulf %196, %1088 : vector<2x1x256xf32>
    %1090 = arith.addf %1086, %1089 : vector<2x1x256xf32>
    %c5_524 = arith.constant 5 : index
    %c7_525 = arith.constant 7 : index
    %1091 = memref.load %arg4[%c5_524, %c7_525] : memref<16x8xf32, #tpu.memory_space<smem>>
    %1092 = vector.broadcast %1091 : f32 to vector<2x1x256xf32>
    %1093 = arith.mulf %232, %1092 : vector<2x1x256xf32>
    %1094 = arith.addf %1090, %1093 : vector<2x1x256xf32>
    %c6_526 = arith.constant 6 : index
    %c7_527 = arith.constant 7 : index
    %1095 = memref.load %arg4[%c6_526, %c7_527] : memref<16x8xf32, #tpu.memory_space<smem>>
    %1096 = vector.broadcast %1095 : f32 to vector<2x1x256xf32>
    %1097 = arith.mulf %268, %1096 : vector<2x1x256xf32>
    %1098 = arith.addf %1094, %1097 : vector<2x1x256xf32>
    %c7_528 = arith.constant 7 : index
    %c7_529 = arith.constant 7 : index
    %1099 = memref.load %arg4[%c7_528, %c7_529] : memref<16x8xf32, #tpu.memory_space<smem>>
    %1100 = vector.broadcast %1099 : f32 to vector<2x1x256xf32>
    %1101 = arith.mulf %304, %1100 : vector<2x1x256xf32>
    %1102 = arith.addf %1098, %1101 : vector<2x1x256xf32>
    %c8_530 = arith.constant 8 : index
    %c7_531 = arith.constant 7 : index
    %1103 = memref.load %arg4[%c8_530, %c7_531] : memref<16x8xf32, #tpu.memory_space<smem>>
    %1104 = vector.broadcast %1103 : f32 to vector<2x1x256xf32>
    %1105 = arith.mulf %340, %1104 : vector<2x1x256xf32>
    %1106 = arith.addf %1102, %1105 : vector<2x1x256xf32>
    %c9_532 = arith.constant 9 : index
    %c7_533 = arith.constant 7 : index
    %1107 = memref.load %arg4[%c9_532, %c7_533] : memref<16x8xf32, #tpu.memory_space<smem>>
    %1108 = vector.broadcast %1107 : f32 to vector<2x1x256xf32>
    %1109 = arith.mulf %376, %1108 : vector<2x1x256xf32>
    %1110 = arith.addf %1106, %1109 : vector<2x1x256xf32>
    %c10_534 = arith.constant 10 : index
    %c7_535 = arith.constant 7 : index
    %1111 = memref.load %arg4[%c10_534, %c7_535] : memref<16x8xf32, #tpu.memory_space<smem>>
    %1112 = vector.broadcast %1111 : f32 to vector<2x1x256xf32>
    %1113 = arith.mulf %412, %1112 : vector<2x1x256xf32>
    %1114 = arith.addf %1110, %1113 : vector<2x1x256xf32>
    %c11_536 = arith.constant 11 : index
    %c7_537 = arith.constant 7 : index
    %1115 = memref.load %arg4[%c11_536, %c7_537] : memref<16x8xf32, #tpu.memory_space<smem>>
    %1116 = vector.broadcast %1115 : f32 to vector<2x1x256xf32>
    %1117 = arith.mulf %448, %1116 : vector<2x1x256xf32>
    %1118 = arith.addf %1114, %1117 : vector<2x1x256xf32>
    %c12_538 = arith.constant 12 : index
    %c7_539 = arith.constant 7 : index
    %1119 = memref.load %arg4[%c12_538, %c7_539] : memref<16x8xf32, #tpu.memory_space<smem>>
    %1120 = vector.broadcast %1119 : f32 to vector<2x1x256xf32>
    %1121 = arith.mulf %484, %1120 : vector<2x1x256xf32>
    %1122 = arith.addf %1118, %1121 : vector<2x1x256xf32>
    %c13_540 = arith.constant 13 : index
    %c7_541 = arith.constant 7 : index
    %1123 = memref.load %arg4[%c13_540, %c7_541] : memref<16x8xf32, #tpu.memory_space<smem>>
    %1124 = vector.broadcast %1123 : f32 to vector<2x1x256xf32>
    %1125 = arith.mulf %520, %1124 : vector<2x1x256xf32>
    %1126 = arith.addf %1122, %1125 : vector<2x1x256xf32>
    %c14_542 = arith.constant 14 : index
    %c7_543 = arith.constant 7 : index
    %1127 = memref.load %arg4[%c14_542, %c7_543] : memref<16x8xf32, #tpu.memory_space<smem>>
    %1128 = vector.broadcast %1127 : f32 to vector<2x1x256xf32>
    %1129 = arith.mulf %556, %1128 : vector<2x1x256xf32>
    %1130 = arith.addf %1126, %1129 : vector<2x1x256xf32>
    %c15_544 = arith.constant 15 : index
    %c7_545 = arith.constant 7 : index
    %1131 = memref.load %arg4[%c15_544, %c7_545] : memref<16x8xf32, #tpu.memory_space<smem>>
    %1132 = vector.broadcast %1131 : f32 to vector<2x1x256xf32>
    %1133 = arith.mulf %592, %1132 : vector<2x1x256xf32>
    %1134 = arith.addf %1130, %1133 : vector<2x1x256xf32>
    %cst_546 = arith.constant 0.000000e+00 : f32
    %1135 = vector.broadcast %cst_546 : f32 to vector<2x1x256xf32>
    %1136 = arith.maximumf %1134, %1135 : vector<2x1x256xf32>
    %c0_547 = arith.constant 0 : index
    %c0_548 = arith.constant 0 : index
    %1137 = memref.load %arg6[%c0_547, %c0_548] : memref<8x4xf32, #tpu.memory_space<smem>>
    %1138 = vector.broadcast %1137 : f32 to vector<2x1x256xf32>
    %1139 = arith.mulf %660, %1138 : vector<2x1x256xf32>
    %c0_549 = arith.constant 0 : index
    %1140 = memref.load %arg7[%c0_549] : memref<4xf32, #tpu.memory_space<smem>>
    %1141 = vector.broadcast %1140 : f32 to vector<2x1x256xf32>
    %1142 = arith.addf %1139, %1141 : vector<2x1x256xf32>
    %c1_550 = arith.constant 1 : index
    %c0_551 = arith.constant 0 : index
    %1143 = memref.load %arg6[%c1_550, %c0_551] : memref<8x4xf32, #tpu.memory_space<smem>>
    %1144 = vector.broadcast %1143 : f32 to vector<2x1x256xf32>
    %1145 = arith.mulf %728, %1144 : vector<2x1x256xf32>
    %1146 = arith.addf %1142, %1145 : vector<2x1x256xf32>
    %c2_552 = arith.constant 2 : index
    %c0_553 = arith.constant 0 : index
    %1147 = memref.load %arg6[%c2_552, %c0_553] : memref<8x4xf32, #tpu.memory_space<smem>>
    %1148 = vector.broadcast %1147 : f32 to vector<2x1x256xf32>
    %1149 = arith.mulf %796, %1148 : vector<2x1x256xf32>
    %1150 = arith.addf %1146, %1149 : vector<2x1x256xf32>
    %c3_554 = arith.constant 3 : index
    %c0_555 = arith.constant 0 : index
    %1151 = memref.load %arg6[%c3_554, %c0_555] : memref<8x4xf32, #tpu.memory_space<smem>>
    %1152 = vector.broadcast %1151 : f32 to vector<2x1x256xf32>
    %1153 = arith.mulf %864, %1152 : vector<2x1x256xf32>
    %1154 = arith.addf %1150, %1153 : vector<2x1x256xf32>
    %c4_556 = arith.constant 4 : index
    %c0_557 = arith.constant 0 : index
    %1155 = memref.load %arg6[%c4_556, %c0_557] : memref<8x4xf32, #tpu.memory_space<smem>>
    %1156 = vector.broadcast %1155 : f32 to vector<2x1x256xf32>
    %1157 = arith.mulf %932, %1156 : vector<2x1x256xf32>
    %1158 = arith.addf %1154, %1157 : vector<2x1x256xf32>
    %c5_558 = arith.constant 5 : index
    %c0_559 = arith.constant 0 : index
    %1159 = memref.load %arg6[%c5_558, %c0_559] : memref<8x4xf32, #tpu.memory_space<smem>>
    %1160 = vector.broadcast %1159 : f32 to vector<2x1x256xf32>
    %1161 = arith.mulf %1000, %1160 : vector<2x1x256xf32>
    %1162 = arith.addf %1158, %1161 : vector<2x1x256xf32>
    %c6_560 = arith.constant 6 : index
    %c0_561 = arith.constant 0 : index
    %1163 = memref.load %arg6[%c6_560, %c0_561] : memref<8x4xf32, #tpu.memory_space<smem>>
    %1164 = vector.broadcast %1163 : f32 to vector<2x1x256xf32>
    %1165 = arith.mulf %1068, %1164 : vector<2x1x256xf32>
    %1166 = arith.addf %1162, %1165 : vector<2x1x256xf32>
    %c7_562 = arith.constant 7 : index
    %c0_563 = arith.constant 0 : index
    %1167 = memref.load %arg6[%c7_562, %c0_563] : memref<8x4xf32, #tpu.memory_space<smem>>
    %1168 = vector.broadcast %1167 : f32 to vector<2x1x256xf32>
    %1169 = arith.mulf %1136, %1168 : vector<2x1x256xf32>
    %1170 = arith.addf %1166, %1169 : vector<2x1x256xf32>
    %cst_564 = arith.constant 0.000000e+00 : f32
    %1171 = vector.broadcast %cst_564 : f32 to vector<2x1x256xf32>
    %1172 = arith.maximumf %1170, %1171 : vector<2x1x256xf32>
    %c0_565 = arith.constant 0 : index
    %c1_566 = arith.constant 1 : index
    %1173 = memref.load %arg6[%c0_565, %c1_566] : memref<8x4xf32, #tpu.memory_space<smem>>
    %1174 = vector.broadcast %1173 : f32 to vector<2x1x256xf32>
    %1175 = arith.mulf %660, %1174 : vector<2x1x256xf32>
    %c1_567 = arith.constant 1 : index
    %1176 = memref.load %arg7[%c1_567] : memref<4xf32, #tpu.memory_space<smem>>
    %1177 = vector.broadcast %1176 : f32 to vector<2x1x256xf32>
    %1178 = arith.addf %1175, %1177 : vector<2x1x256xf32>
    %c1_568 = arith.constant 1 : index
    %c1_569 = arith.constant 1 : index
    %1179 = memref.load %arg6[%c1_568, %c1_569] : memref<8x4xf32, #tpu.memory_space<smem>>
    %1180 = vector.broadcast %1179 : f32 to vector<2x1x256xf32>
    %1181 = arith.mulf %728, %1180 : vector<2x1x256xf32>
    %1182 = arith.addf %1178, %1181 : vector<2x1x256xf32>
    %c2_570 = arith.constant 2 : index
    %c1_571 = arith.constant 1 : index
    %1183 = memref.load %arg6[%c2_570, %c1_571] : memref<8x4xf32, #tpu.memory_space<smem>>
    %1184 = vector.broadcast %1183 : f32 to vector<2x1x256xf32>
    %1185 = arith.mulf %796, %1184 : vector<2x1x256xf32>
    %1186 = arith.addf %1182, %1185 : vector<2x1x256xf32>
    %c3_572 = arith.constant 3 : index
    %c1_573 = arith.constant 1 : index
    %1187 = memref.load %arg6[%c3_572, %c1_573] : memref<8x4xf32, #tpu.memory_space<smem>>
    %1188 = vector.broadcast %1187 : f32 to vector<2x1x256xf32>
    %1189 = arith.mulf %864, %1188 : vector<2x1x256xf32>
    %1190 = arith.addf %1186, %1189 : vector<2x1x256xf32>
    %c4_574 = arith.constant 4 : index
    %c1_575 = arith.constant 1 : index
    %1191 = memref.load %arg6[%c4_574, %c1_575] : memref<8x4xf32, #tpu.memory_space<smem>>
    %1192 = vector.broadcast %1191 : f32 to vector<2x1x256xf32>
    %1193 = arith.mulf %932, %1192 : vector<2x1x256xf32>
    %1194 = arith.addf %1190, %1193 : vector<2x1x256xf32>
    %c5_576 = arith.constant 5 : index
    %c1_577 = arith.constant 1 : index
    %1195 = memref.load %arg6[%c5_576, %c1_577] : memref<8x4xf32, #tpu.memory_space<smem>>
    %1196 = vector.broadcast %1195 : f32 to vector<2x1x256xf32>
    %1197 = arith.mulf %1000, %1196 : vector<2x1x256xf32>
    %1198 = arith.addf %1194, %1197 : vector<2x1x256xf32>
    %c6_578 = arith.constant 6 : index
    %c1_579 = arith.constant 1 : index
    %1199 = memref.load %arg6[%c6_578, %c1_579] : memref<8x4xf32, #tpu.memory_space<smem>>
    %1200 = vector.broadcast %1199 : f32 to vector<2x1x256xf32>
    %1201 = arith.mulf %1068, %1200 : vector<2x1x256xf32>
    %1202 = arith.addf %1198, %1201 : vector<2x1x256xf32>
    %c7_580 = arith.constant 7 : index
    %c1_581 = arith.constant 1 : index
    %1203 = memref.load %arg6[%c7_580, %c1_581] : memref<8x4xf32, #tpu.memory_space<smem>>
    %1204 = vector.broadcast %1203 : f32 to vector<2x1x256xf32>
    %1205 = arith.mulf %1136, %1204 : vector<2x1x256xf32>
    %1206 = arith.addf %1202, %1205 : vector<2x1x256xf32>
    %cst_582 = arith.constant 0.000000e+00 : f32
    %1207 = vector.broadcast %cst_582 : f32 to vector<2x1x256xf32>
    %1208 = arith.maximumf %1206, %1207 : vector<2x1x256xf32>
    %c0_583 = arith.constant 0 : index
    %c2_584 = arith.constant 2 : index
    %1209 = memref.load %arg6[%c0_583, %c2_584] : memref<8x4xf32, #tpu.memory_space<smem>>
    %1210 = vector.broadcast %1209 : f32 to vector<2x1x256xf32>
    %1211 = arith.mulf %660, %1210 : vector<2x1x256xf32>
    %c2_585 = arith.constant 2 : index
    %1212 = memref.load %arg7[%c2_585] : memref<4xf32, #tpu.memory_space<smem>>
    %1213 = vector.broadcast %1212 : f32 to vector<2x1x256xf32>
    %1214 = arith.addf %1211, %1213 : vector<2x1x256xf32>
    %c1_586 = arith.constant 1 : index
    %c2_587 = arith.constant 2 : index
    %1215 = memref.load %arg6[%c1_586, %c2_587] : memref<8x4xf32, #tpu.memory_space<smem>>
    %1216 = vector.broadcast %1215 : f32 to vector<2x1x256xf32>
    %1217 = arith.mulf %728, %1216 : vector<2x1x256xf32>
    %1218 = arith.addf %1214, %1217 : vector<2x1x256xf32>
    %c2_588 = arith.constant 2 : index
    %c2_589 = arith.constant 2 : index
    %1219 = memref.load %arg6[%c2_588, %c2_589] : memref<8x4xf32, #tpu.memory_space<smem>>
    %1220 = vector.broadcast %1219 : f32 to vector<2x1x256xf32>
    %1221 = arith.mulf %796, %1220 : vector<2x1x256xf32>
    %1222 = arith.addf %1218, %1221 : vector<2x1x256xf32>
    %c3_590 = arith.constant 3 : index
    %c2_591 = arith.constant 2 : index
    %1223 = memref.load %arg6[%c3_590, %c2_591] : memref<8x4xf32, #tpu.memory_space<smem>>
    %1224 = vector.broadcast %1223 : f32 to vector<2x1x256xf32>
    %1225 = arith.mulf %864, %1224 : vector<2x1x256xf32>
    %1226 = arith.addf %1222, %1225 : vector<2x1x256xf32>
    %c4_592 = arith.constant 4 : index
    %c2_593 = arith.constant 2 : index
    %1227 = memref.load %arg6[%c4_592, %c2_593] : memref<8x4xf32, #tpu.memory_space<smem>>
    %1228 = vector.broadcast %1227 : f32 to vector<2x1x256xf32>
    %1229 = arith.mulf %932, %1228 : vector<2x1x256xf32>
    %1230 = arith.addf %1226, %1229 : vector<2x1x256xf32>
    %c5_594 = arith.constant 5 : index
    %c2_595 = arith.constant 2 : index
    %1231 = memref.load %arg6[%c5_594, %c2_595] : memref<8x4xf32, #tpu.memory_space<smem>>
    %1232 = vector.broadcast %1231 : f32 to vector<2x1x256xf32>
    %1233 = arith.mulf %1000, %1232 : vector<2x1x256xf32>
    %1234 = arith.addf %1230, %1233 : vector<2x1x256xf32>
    %c6_596 = arith.constant 6 : index
    %c2_597 = arith.constant 2 : index
    %1235 = memref.load %arg6[%c6_596, %c2_597] : memref<8x4xf32, #tpu.memory_space<smem>>
    %1236 = vector.broadcast %1235 : f32 to vector<2x1x256xf32>
    %1237 = arith.mulf %1068, %1236 : vector<2x1x256xf32>
    %1238 = arith.addf %1234, %1237 : vector<2x1x256xf32>
    %c7_598 = arith.constant 7 : index
    %c2_599 = arith.constant 2 : index
    %1239 = memref.load %arg6[%c7_598, %c2_599] : memref<8x4xf32, #tpu.memory_space<smem>>
    %1240 = vector.broadcast %1239 : f32 to vector<2x1x256xf32>
    %1241 = arith.mulf %1136, %1240 : vector<2x1x256xf32>
    %1242 = arith.addf %1238, %1241 : vector<2x1x256xf32>
    %cst_600 = arith.constant 0.000000e+00 : f32
    %1243 = vector.broadcast %cst_600 : f32 to vector<2x1x256xf32>
    %1244 = arith.maximumf %1242, %1243 : vector<2x1x256xf32>
    %c0_601 = arith.constant 0 : index
    %c3_602 = arith.constant 3 : index
    %1245 = memref.load %arg6[%c0_601, %c3_602] : memref<8x4xf32, #tpu.memory_space<smem>>
    %1246 = vector.broadcast %1245 : f32 to vector<2x1x256xf32>
    %1247 = arith.mulf %660, %1246 : vector<2x1x256xf32>
    %c3_603 = arith.constant 3 : index
    %1248 = memref.load %arg7[%c3_603] : memref<4xf32, #tpu.memory_space<smem>>
    %1249 = vector.broadcast %1248 : f32 to vector<2x1x256xf32>
    %1250 = arith.addf %1247, %1249 : vector<2x1x256xf32>
    %c1_604 = arith.constant 1 : index
    %c3_605 = arith.constant 3 : index
    %1251 = memref.load %arg6[%c1_604, %c3_605] : memref<8x4xf32, #tpu.memory_space<smem>>
    %1252 = vector.broadcast %1251 : f32 to vector<2x1x256xf32>
    %1253 = arith.mulf %728, %1252 : vector<2x1x256xf32>
    %1254 = arith.addf %1250, %1253 : vector<2x1x256xf32>
    %c2_606 = arith.constant 2 : index
    %c3_607 = arith.constant 3 : index
    %1255 = memref.load %arg6[%c2_606, %c3_607] : memref<8x4xf32, #tpu.memory_space<smem>>
    %1256 = vector.broadcast %1255 : f32 to vector<2x1x256xf32>
    %1257 = arith.mulf %796, %1256 : vector<2x1x256xf32>
    %1258 = arith.addf %1254, %1257 : vector<2x1x256xf32>
    %c3_608 = arith.constant 3 : index
    %c3_609 = arith.constant 3 : index
    %1259 = memref.load %arg6[%c3_608, %c3_609] : memref<8x4xf32, #tpu.memory_space<smem>>
    %1260 = vector.broadcast %1259 : f32 to vector<2x1x256xf32>
    %1261 = arith.mulf %864, %1260 : vector<2x1x256xf32>
    %1262 = arith.addf %1258, %1261 : vector<2x1x256xf32>
    %c4_610 = arith.constant 4 : index
    %c3_611 = arith.constant 3 : index
    %1263 = memref.load %arg6[%c4_610, %c3_611] : memref<8x4xf32, #tpu.memory_space<smem>>
    %1264 = vector.broadcast %1263 : f32 to vector<2x1x256xf32>
    %1265 = arith.mulf %932, %1264 : vector<2x1x256xf32>
    %1266 = arith.addf %1262, %1265 : vector<2x1x256xf32>
    %c5_612 = arith.constant 5 : index
    %c3_613 = arith.constant 3 : index
    %1267 = memref.load %arg6[%c5_612, %c3_613] : memref<8x4xf32, #tpu.memory_space<smem>>
    %1268 = vector.broadcast %1267 : f32 to vector<2x1x256xf32>
    %1269 = arith.mulf %1000, %1268 : vector<2x1x256xf32>
    %1270 = arith.addf %1266, %1269 : vector<2x1x256xf32>
    %c6_614 = arith.constant 6 : index
    %c3_615 = arith.constant 3 : index
    %1271 = memref.load %arg6[%c6_614, %c3_615] : memref<8x4xf32, #tpu.memory_space<smem>>
    %1272 = vector.broadcast %1271 : f32 to vector<2x1x256xf32>
    %1273 = arith.mulf %1068, %1272 : vector<2x1x256xf32>
    %1274 = arith.addf %1270, %1273 : vector<2x1x256xf32>
    %c7_616 = arith.constant 7 : index
    %c3_617 = arith.constant 3 : index
    %1275 = memref.load %arg6[%c7_616, %c3_617] : memref<8x4xf32, #tpu.memory_space<smem>>
    %1276 = vector.broadcast %1275 : f32 to vector<2x1x256xf32>
    %1277 = arith.mulf %1136, %1276 : vector<2x1x256xf32>
    %1278 = arith.addf %1274, %1277 : vector<2x1x256xf32>
    %cst_618 = arith.constant 0.000000e+00 : f32
    %1279 = vector.broadcast %cst_618 : f32 to vector<2x1x256xf32>
    %1280 = arith.maximumf %1278, %1279 : vector<2x1x256xf32>
    %c0_619 = arith.constant 0 : index
    %1281 = memref.load %arg8[%c0_619] : memref<4xf32, #tpu.memory_space<smem>>
    %1282 = vector.broadcast %1281 : f32 to vector<2x1x256xf32>
    %1283 = arith.mulf %1172, %1282 : vector<2x1x256xf32>
    %c0_620 = arith.constant 0 : index
    %1284 = memref.load %arg9[%c0_620] : memref<1xf32, #tpu.memory_space<smem>>
    %1285 = vector.broadcast %1284 : f32 to vector<2x1x256xf32>
    %1286 = arith.addf %1283, %1285 : vector<2x1x256xf32>
    %c1_621 = arith.constant 1 : index
    %1287 = memref.load %arg8[%c1_621] : memref<4xf32, #tpu.memory_space<smem>>
    %1288 = vector.broadcast %1287 : f32 to vector<2x1x256xf32>
    %1289 = arith.mulf %1208, %1288 : vector<2x1x256xf32>
    %1290 = arith.addf %1286, %1289 : vector<2x1x256xf32>
    %c2_622 = arith.constant 2 : index
    %1291 = memref.load %arg8[%c2_622] : memref<4xf32, #tpu.memory_space<smem>>
    %1292 = vector.broadcast %1291 : f32 to vector<2x1x256xf32>
    %1293 = arith.mulf %1244, %1292 : vector<2x1x256xf32>
    %1294 = arith.addf %1290, %1293 : vector<2x1x256xf32>
    %c3_623 = arith.constant 3 : index
    %1295 = memref.load %arg8[%c3_623] : memref<4xf32, #tpu.memory_space<smem>>
    %1296 = vector.broadcast %1295 : f32 to vector<2x1x256xf32>
    %1297 = arith.mulf %1280, %1296 : vector<2x1x256xf32>
    %1298 = arith.addf %1294, %1297 : vector<2x1x256xf32>
    %cst_624 = arith.constant 0.000000e+00 : f32
    %1299 = vector.broadcast %cst_624 : f32 to vector<2x1x256xf32>
    %1300 = arith.maximumf %1298, %1299 : vector<2x1x256xf32>
    %cst_625 = arith.constant dense<0xFF800000> : vector<1x256xf32>
    %1301 = vector.multi_reduction <maximumf>, %1300, %cst_625 [0] : vector<2x1x256xf32> to vector<1x256xf32>
    %1302 = vector.shape_cast %1301 : vector<1x256xf32> to vector<1x1x256xf32>
    %1303 = vector.broadcast %1302 : vector<1x1x256xf32> to vector<2x1x256xf32>
    %1304 = arith.subf %1300, %1303 : vector<2x1x256xf32>
    %1305 = math.exp %1304 : vector<2x1x256xf32>
    %cst_626 = arith.constant dense<0.000000e+00> : vector<1x256xf32>
    %1306 = vector.multi_reduction <add>, %1305, %cst_626 [0] : vector<2x1x256xf32> to vector<1x256xf32>
    %1307 = vector.shape_cast %1306 : vector<1x256xf32> to vector<1x1x256xf32>
    %1308 = tpu.reciprocal %1307 {approx = true} : vector<1x1x256xf32> -> vector<1x1x256xf32>
    %1309 = vector.broadcast %1308 : vector<1x1x256xf32> to vector<2x1x256xf32>
    %1310 = arith.mulf %1305, %1309 : vector<2x1x256xf32>
    %c0_627 = arith.constant 0 : index
    %c0_628 = arith.constant 0 : index
    %c0_629 = arith.constant 0 : index
    %1311 = vector.load %arg10[%c0_627, %c0_628, %c0_629] : memref<2x1x256xf32, #tpu.memory_space<vmem>>, vector<2x1x256xf32>
    tpu.vector_store %arg10[%c0_627, %c0_628, %c0_629], %1310 {strides = array<i32>} : memref<2x1x256xf32, #tpu.memory_space<vmem>>, vector<2x1x256xf32>,
    return
  }
  func.func @transform_0(%arg0: i32) -> (i32, i32, i32, i32) {
    %c0_i32 = arith.constant 0 : i32
    %c0_i32_0 = arith.constant 0 : i32
    %c0_i32_1 = arith.constant 0 : i32
    %c0_i32_2 = arith.constant 0 : i32
    return %c0_i32, %c0_i32_0, %arg0, %c0_i32_1 : i32, i32, i32, i32
  }
  func.func @transform_1(%arg0: i32) -> (i32, i32) {
    %c0_i32 = arith.constant 0 : i32
    %c0_i32_0 = arith.constant 0 : i32
    %c0_i32_1 = arith.constant 0 : i32
    return %c0_i32, %c0_i32_0 : i32, i32
  }
  func.func @transform_2(%arg0: i32) -> i32 {
    %c0_i32 = arith.constant 0 : i32
    %c0_i32_0 = arith.constant 0 : i32
    return %c0_i32 : i32
  }
  func.func @transform_3(%arg0: i32) -> (i32, i32) {
    %c0_i32 = arith.constant 0 : i32
    %c0_i32_0 = arith.constant 0 : i32
    %c0_i32_1 = arith.constant 0 : i32
    return %c0_i32, %c0_i32_0 : i32, i32
  }
  func.func @transform_4(%arg0: i32) -> i32 {
    %c0_i32 = arith.constant 0 : i32
    %c0_i32_0 = arith.constant 0 : i32
    return %c0_i32 : i32
  }
  func.func @transform_5(%arg0: i32) -> (i32, i32) {
    %c0_i32 = arith.constant 0 : i32
    %c0_i32_0 = arith.constant 0 : i32
    %c0_i32_1 = arith.constant 0 : i32
    return %c0_i32, %c0_i32_0 : i32, i32
  }
  func.func @transform_6(%arg0: i32) -> i32 {
    %c0_i32 = arith.constant 0 : i32
    %c0_i32_0 = arith.constant 0 : i32
    return %c0_i32 : i32
  }
  func.func @transform_7(%arg0: i32) -> i32 {
    %c0_i32 = arith.constant 0 : i32
    %c0_i32_0 = arith.constant 0 : i32
    return %c0_i32 : i32
  }
  func.func @transform_8(%arg0: i32) -> i32 {
    %c0_i32 = arith.constant 0 : i32
    %c0_i32_0 = arith.constant 0 : i32
    return %c0_i32 : i32
  }
  func.func @transform_9(%arg0: i32) -> (i32, i32, i32) {
    %c0_i32 = arith.constant 0 : i32
    %c0_i32_0 = arith.constant 0 : i32
    %c0_i32_1 = arith.constant 0 : i32
    return %c0_i32, %arg0, %c0_i32_0 : i32, i32, i32
  }
}

</mosaic_0001>

<bundles_post_ra>
// kernel: tpu_custom_call.1
= control target key start
LH: loop header
LB: loop body
LE: loop exit
PB: predicated region body
PF: predicated region fallthrough
CT: control target
= control target key end

     0   :  { %15 = vsyncpa [#allocation5], 0  ;;  %s4507_s0 = inlined_call_operand.vmem [shape: f32[2,8,1,256], index: 0, kind: input, shape index: {}]   ;;  %s4508_s1 = inlined_call_operand.hbm [shape: f32[8,16], index: 1, kind: input, shape index: {}]   ;;  %s4509_s2 = inlined_call_operand.vmem [shape: f32[16], index: 2, kind: input, shape index: {}]   ;;  %s4510_s3 = inlined_call_operand.vmem [shape: f32[16,8], index: 3, kind: input, shape index: {}]   ;;  %s4511_s4 = inlined_call_operand.vmem [shape: f32[8], index: 4, kind: input, shape index: {}]   ;;  %s4512_s5 = inlined_call_operand.vmem [shape: f32[8,4], index: 5, kind: input, shape index: {}]   ;;  %s4513_s6 = inlined_call_operand.vmem [shape: f32[4], index: 6, kind: input, shape index: {}]   ;;  %s4514_s7 = inlined_call_operand.vmem [shape: f32[4], index: 7, kind: input, shape index: {}]   ;;  %s4515_s8 = inlined_call_operand.<no memory space> [shape: f32[1], index: 8, kind: input, shape index: {}]   ;;  %s4516_s9 = inlined_call_operand.hbm [shape: f32[2,1,256], index: 9, kind: output, shape index: {}]  }
   0x1   :  { %16 = vsyncpa [#allocation6], 0 }
   0x2   :  { %17 = vsyncpa [#allocation9], 0 }
   0x3   :  { %18 = vsyncpa [#allocation12], 0 }
   0x4   :  { %19 = vsyncpa [#allocation15], 0  ;;  %s46_s11 = sshll.u32 %s4510_s3, 4  ;;  %s47_s11 = int_to_ptr.vmem [resolvable:$true] %s46_s11 }
   0x5   :  { %20 = vsyncpa [#allocation4], 0  ;;  %s69_s14 = sshll.u32 %s4512_s5, 4  ;;  %s2438_s15 = scalar_lea.vmem %s47_s11, 256  ;;  %s70_s14 = int_to_ptr.vmem [resolvable:$true] %s69_s14 }
   0x6   :  { %p2439_p0 = scmp.ne.s32.totalorder %s47_s11, %s2438_s15  ;;  %p2443_p1 = scmp.lt.s32.totalorder %s47_s11, %s47_s11 }
   0x7   :  { %p2444_p2 = scmp.lt.s32.totalorder %s2438_s15, %s2438_s15 }
   0x9   :  { %p2445_p3 = por %p2444_p2, %p2443_p1 }
   0xb   :  { %p2446_p4 = pnand %p2445_p3, %p2439_p0 }
   0xd   :  { %2449 = shalt.err (!%p2446_p4)
}
   0xe   :  { %s2554_s16 = smov [#allocation8]   ;;  %s2555_s17 = smov 128  }
   0xf   :  { %s2556_s18 = smov 8   ;;  %s2450_s19 = scalar_lea.vmem %s70_s14, 128 }
  0x10   :  { %52 = dma.vmem_to_smem %s47_s11, 256, %s2554_s16, [#allocation9], %s2555_s17, %s2555_s17, %s2556_s18  }
  0x11   :  { %p2451_p5 = scmp.ne.s32.totalorder %s70_s14, %s2450_s19  ;;  %p2455_p6 = scmp.lt.s32.totalorder %s70_s14, %s70_s14 }
  0x12   :  { %p2456_p7 = scmp.lt.s32.totalorder %s2450_s19, %s2450_s19 }
  0x14   :  { %p2457_p8 = por %p2456_p7, %p2455_p6 }
  0x16   :  { %p2458_p9 = pnand %p2457_p8, %p2451_p5 }
  0x18   :  { %2461 = shalt.err (!%p2458_p9)
}
  0x19   :  { %s2557_s3 = smov [#allocation11]   ;;  %s37_s21 = sshll.u32 %s4509_s2, 4  ;;  %s38_s21 = int_to_ptr.vmem [resolvable:$true] %s37_s21 }
  0x1a   :  { %72 = dma.vmem_to_smem %s70_s14, 128, %s2557_s3, [#allocation12]  }
  0x1b   :  { %s2462_s24 = scalar_lea.hbm %s4508_s1, 128 }
  0x1c   :  { %p2463_p10 = scmp.ne.s32.totalorder %s4508_s1, %s2462_s24  ;;  %p2466_p11 = scmp.lt.u32.totalorder %s2462_s24, %s4508_s1 }
  0x1e   :  { %p2468_p12 = pnand %p2466_p11, %p2463_p10 }
  0x20   :  { %2471 = shalt.err (!%p2468_p12)
}
  0x21   :  { %s2558_s29 = smov [#allocation3]   ;;  %s2472_s2 = scalar_lea.vmem %s38_s21, 16 }
  0x22   :  { %30 = dma.hbm_to_smem %s4508_s1, 128, %s2558_s29, [#allocation5]  }
  0x23   :  { %p2473_p13 = scmp.ne.s32.totalorder %s38_s21, %s2472_s2  ;;  %p2477_p0 = scmp.lt.s32.totalorder %s38_s21, %s38_s21 }
  0x24   :  { %p2478_p1 = scmp.lt.s32.totalorder %s2472_s2, %s2472_s2 }
  0x26   :  { %p2479_p2 = por %p2478_p1, %p2477_p0 }
  0x28   :  { %p2480_p3 = pnand %p2479_p2, %p2473_p13 }
  0x2a   :  { %2483 = shalt.err (!%p2480_p3)
}
  0x2b   :  { %s2559_s11 = smov [#allocation7]   ;;  %s59_s14 = sshll.u32 %s4511_s4, 4  ;;  %s60_s14 = int_to_ptr.vmem [resolvable:$true] %s59_s14 }
  0x2c   :  { %40 = dma.vmem_to_smem %s38_s21, 16, %s2559_s11, [#allocation6]  }
  0x2d   :  { %s79_s17 = sshll.u32 %s4513_s6, 4  ;;  %s2484_s1 = scalar_lea.vmem %s60_s14, 16  ;;  %s80_s17 = int_to_ptr.vmem [resolvable:$true] %s79_s17 }
  0x2e   :  { %p2485_p4 = scmp.ne.s32.totalorder %s60_s14, %s2484_s1  ;;  %p2489_p5 = scmp.lt.s32.totalorder %s60_s14, %s60_s14 }
  0x2f   :  { %p2490_p6 = scmp.lt.s32.totalorder %s2484_s1, %s2484_s1 }
  0x31   :  { %p2491_p7 = por %p2490_p6, %p2489_p5 }
  0x33   :  { %p2492_p8 = pnand %p2491_p7, %p2485_p4 }
  0x35   :  { %2495 = shalt.err (!%p2492_p8)
}
  0x36   :  { %s2560_s18 = smov [#allocation10]   ;;  %s2496_s19 = scalar_lea.vmem %s80_s17, 16 }
  0x37   :  { %62 = dma.vmem_to_smem %s60_s14, 16, %s2560_s18, [#allocation9]  }
  0x38   :  { %p2497_p9 = scmp.ne.s32.totalorder %s80_s17, %s2496_s19  ;;  %p2501_p10 = scmp.lt.s32.totalorder %s80_s17, %s80_s17 }
  0x39   :  { %p2502_p11 = scmp.lt.s32.totalorder %s2496_s19, %s2496_s19 }
  0x3b   :  { %p2503_p12 = por %p2502_p11, %p2501_p10 }
  0x3d   :  { %p2504_p13 = pnand %p2503_p12, %p2497_p9 }
  0x3f   :  { %2507 = shalt.err (!%p2504_p13)
}
  0x40   :  { %s2561_s4 = smov [#allocation13]   ;;  %s89_s5 = sshll.u32 %s4514_s7, 4  ;;  %s90_s5 = int_to_ptr.vmem [resolvable:$true] %s89_s5 }
  0x41   :  { %82 = dma.vmem_to_smem %s80_s17, 16, %s2561_s4, [#allocation12]  }
  0x42   :  { %s2508_s20 = scalar_lea.vmem %s90_s5, 16  ;;  %p2513_p1 = scmp.lt.s32.totalorder %s90_s5, %s90_s5 }
  0x43   :  { %p2509_p0 = scmp.ne.s32.totalorder %s90_s5, %s2508_s20  ;;  %p2514_p2 = scmp.lt.s32.totalorder %s2508_s20, %s2508_s20 }
  0x45   :  { %p2515_p3 = por %p2514_p2, %p2513_p1 }
  0x47   :  { %p2516_p4 = pnand %p2515_p3, %p2509_p0 }
  0x49   :  { %2519 = shalt.err (!%p2516_p4)
}
  0x4a   :  { %s2562_s21 = smov [#allocation14]  }
  0x4b   :  { %92 = dma.vmem_to_smem %s90_s5, 16, %s2562_s21, [#allocation15]  }
  0x4c   :  { %2542 = dma.done.wait [#allocation5], 128  }
  0x4d   :  { %2543 = vsyncadd [#allocation5], 4294967168 }
  0x4e   :  { %2544 = dma.done.wait [#allocation6], 16  }
  0x4f   :  { %2545 = vsyncadd [#allocation6], 4294967280 }
  0x50   :  { %2546 = dma.done.wait [#allocation9], 272  }
  0x51   :  { %2547 = vsyncadd [#allocation9], 4294967024 }
  0x52   :  { %2548 = dma.done.wait [#allocation12], 144  }
  0x53   :  { %2549 = vsyncadd [#allocation12], 4294967152 }
  0x54   :  { %2550 = dma.done.wait [#allocation15], 16  }
  0x55   :  { %2551 = vsyncadd [#allocation15], 4294967280 }
  0x56   :  { %116 = sfence }
  0x57   :  { %s133_s7 = sld [smem:[#allocation3]]  ;;  %v2654_v0 = vld [vmem:[%s4507_s0] sm:$0x3]  ;;  %v2663_v1 = vld [vmem:[%s4507_s0 + $0x2] sm:$0x3]  ;;  %s2696_s6 = sld [smem:[#allocation3 + $0x1]] }
  0x58   :  { %s2647_s22 = sld [smem:[#allocation7]]  ;;  %v2672_v2 = vld [vmem:[%s4507_s0 + $0x4] sm:$0x3]  ;;  %v2677_v3 = vld [vmem:[%s4507_s0 + $0x10] sm:$0x3]  ;;  %s2717_s29 = sld [smem:[#allocation7 + $0x1]] }
  0x59   :  { %s2088_s23 = sld [smem:[#allocation3 + $0x80]]  ;;  %v2682_v4 = vld [vmem:[%s4507_s0 + $0x12] sm:$0x3]  ;;  %v2687_v5 = vld [vmem:[%s4507_s0 + $0x6] sm:$0x3]  ;;  %s2719_s30 = sld [smem:[#allocation3 + $0x81]] }
  0x5a   :  { %s2649_s24 = sld [smem:[#allocation3 + $0x100]]  ;;  %v2692_v6 = vld [vmem:[%s4507_s0 + $0x14] sm:$0x3]  ;;  %v2701_v7 = vld [vmem:[%s4507_s0 + $0x8] sm:$0x3]  ;;  %s2747_s15 = sld [smem:[#allocation3 + $0x101]] }
  0x5b   :  { %s2656_s27 = sld [smem:[#allocation3 + $0x180]]  ;;  %v2706_v8 = vld [vmem:[%s4507_s0 + $0x16] sm:$0x3]  ;;  %v2712_v11 = vld [vmem:[%s4507_s0 + $0x18] sm:$0x3]  ;;  %s2749_s16 = sld [smem:[#allocation3 + $0x181]] }
  0x5c   :  { %s2658_s28 = sld [smem:[#allocation3 + $0x200]]  ;;  %v2724_v16 = vld [vmem:[%s4507_s0 + $0xa] sm:$0x3]  ;;  %v2729_v17 = vld [vmem:[%s4507_s0 + $0xc] sm:$0x3]  ;;  %s2771_s18 = sld [smem:[#allocation3 + $0x201]] }
  0x5d   :  { %s2665_s10 = sld [smem:[#allocation3 + $0x280]]  ;;  %v134_v9 = vstv %s133_s7  ;;  %v2734_v18 = vld [vmem:[%s4507_s0 + $0x1a] sm:$0x3]  ;;  %v2743_v23 = vld [vmem:[%s4507_s0 + $0x1c] sm:$0x3]  ;;  %s2773_s19 = sld [smem:[#allocation3 + $0x281]]  ;;  %v186_v45 = vstv %s2696_s6 }
  0x5e   :  { %s2667_s2 = sld [smem:[#allocation3 + $0x300]]  ;;  %v138_v10 = vstv %s2647_s22  ;;  %v135_v12 = vmul.f32 %v134_v9, %v2654_v0  ;;  %v136_v13 = vmul.f32 %v134_v9, %v2677_v3  ;;  %v2758_v32 = vld [vmem:[%s4507_s0 + $0xe] sm:$0x3]  ;;  %v2763_v33 = vld [vmem:[%s4507_s0 + $0x1e] sm:$0x3]  ;;  %v187_v48 = vmul.f32 %v186_v45, %v2654_v0  ;;  %s2795_s6 = sld [smem:[#allocation7 + $0x2]] }
  0x5f   :  { %s2694_s4 = sld [smem:[#allocation3 + $0x380]]  ;;  %v142_v14 = vstv %s2088_s23  ;;  %v188_v49 = vmul.f32 %v186_v45, %v2677_v3  ;;  %v190_v52 = vstv %s2717_s29  ;;  %v194_v53 = vstv %s2719_s30  ;;  %s2799_s3 = sld [smem:[#allocation3 + $0x82]] }
  0x60   :  { %v148_v15 = vstv %s2649_s24  ;;  %v143_v19 = vmul.f32 %v142_v14, %v2663_v1  ;;  %v144_v20 = vmul.f32 %v142_v14, %v2682_v4  ;;  %v139_v24 = vadd.f32 %v138_v10, %v135_v12  ;;  %s2801_s5 = sld [smem:[#allocation3 + $0x102]]  ;;  %s2835_s30 = sld [smem:[#allocation3 + $0x3]] }
  0x61   :  { %v149_v21 = vmul.f32 %v148_v15, %v2672_v2  ;;  %v150_v22 = vmul.f32 %v148_v15, %v2692_v6  ;;  %v140_v25 = vadd.f32 %v138_v10, %v136_v13  ;;  %v154_v26 = vstv %s2656_s27  ;;  %s2809_s20 = sld [smem:[#allocation3 + $0x182]]  ;;  %s2841_s11 = sld [smem:[#allocation7 + $0x3]] }
  0x62   :  { %v160_v27 = vstv %s2658_s28  ;;  %v155_v28 = vmul.f32 %v154_v26, %v2687_v5  ;;  %v156_v29 = vmul.f32 %v154_v26, %v2706_v8  ;;  %v145_v34 = vadd.f32 %v143_v19, %v139_v24  ;;  %s2811_s21 = sld [smem:[#allocation3 + $0x202]]  ;;  %s2843_s7 = sld [smem:[#allocation3 + $0x83]] }
  0x63   :  { %v161_v30 = vmul.f32 %v160_v27, %v2701_v7  ;;  %v162_v31 = vmul.f32 %v160_v27, %v2712_v11  ;;  %v146_v35 = vadd.f32 %v144_v20, %v140_v25  ;;  %v166_v36 = vstv %s2665_s10  ;;  %s2783_s10 = sld [smem:[#allocation3 + $0x301]]  ;;  %s2823_s25 = sld [smem:[#allocation3 + $0x282]] }
  0x64   :  { %v172_v37 = vstv %s2667_s2  ;;  %v167_v38 = vmul.f32 %v166_v36, %v2724_v16  ;;  %v168_v39 = vmul.f32 %v166_v36, %v2734_v18  ;;  %v151_v42 = vadd.f32 %v149_v21, %v145_v34  ;;  %s2785_s2 = sld [smem:[#allocation3 + $0x381]]  ;;  %s2825_s26 = sld [smem:[#allocation3 + $0x302]] }
  0x65   :  { %v173_v40 = vmul.f32 %v172_v37, %v2729_v17  ;;  %v174_v41 = vmul.f32 %v172_v37, %v2743_v23  ;;  %v152_v43 = vadd.f32 %v150_v22, %v146_v35  ;;  %v178_v44 = vstv %s2694_s4  ;;  %s2793_s4 = sld [smem:[#allocation3 + $0x2]]  ;;  %s2849_s22 = sld [smem:[#allocation3 + $0x103]] }
  0x66   :  { %v179_v46 = vmul.f32 %v178_v44, %v2758_v32  ;;  %v180_v47 = vmul.f32 %v178_v44, %v2763_v33  ;;  %v157_v50 = vadd.f32 %v155_v28, %v151_v42  ;;  %v191_v54 = vadd.f32 %v190_v52, %v187_v48  ;;  %s2833_s29 = sld [smem:[#allocation3 + $0x382]]  ;;  %s2851_s12 = sld [smem:[#allocation3 + $0x183]] }
  0x67   :  { %v158_v51 = vadd.f32 %v156_v29, %v152_v43  ;;  %v192_v55 = vadd.f32 %v190_v52, %v188_v49  ;;  %v195_v56 = vmul.f32 %v194_v53, %v2663_v1  ;;  %v196_v57 = vmul.f32 %v194_v53, %v2682_v4  ;;  %s2865_s13 = sld [smem:[#allocation3 + $0x203]]  ;;  %s2891_s17 = sld [smem:[#allocation3 + $0x84]] }
  0x68   :  { %v163_v58 = vadd.f32 %v161_v30, %v157_v50  ;;  %v200_v60 = vstv %s2747_s15  ;;  %v206_v61 = vstv %s2749_s16  ;;  %v212_v21 = vstv %s2771_s18  ;;  %s2867_s14 = sld [smem:[#allocation3 + $0x283]]  ;;  %s2885_s15 = sld [smem:[#allocation3 + $0x4]] }
  0x69   :  { %v164_v59 = vadd.f32 %v162_v31, %v158_v51  ;;  %v197_v62 = vadd.f32 %v195_v56, %v191_v54  ;;  %v198_v63 = vadd.f32 %v196_v57, %v192_v55  ;;  %v201_v9 = vmul.f32 %v200_v60, %v2672_v2  ;;  %s2877_s23 = sld [smem:[#allocation3 + $0x303]]  ;;  %s2887_s16 = sld [smem:[#allocation7 + $0x4]] }
  0x6a   :  { %v202_v10 = vmul.f32 %v200_v60, %v2692_v6  ;;  %v169_v12 = vadd.f32 %v167_v38, %v163_v58  ;;  %v207_v14 = vmul.f32 %v206_v61, %v2687_v5  ;;  %v208_v15 = vmul.f32 %v206_v61, %v2706_v8  ;;  %s2879_s24 = sld [smem:[#allocation3 + $0x383]]  ;;  %s2893_s1 = sld [smem:[#allocation3 + $0x104]] }
  0x6b   :  { %v170_v13 = vadd.f32 %v168_v39, %v164_v59  ;;  %v203_v19 = vadd.f32 %v201_v9, %v197_v62  ;;  %v218_v22 = vstv %s2773_s19  ;;  %v213_v26 = vmul.f32 %v212_v21, %v2701_v7  ;;  %s2897_s27 = sld [smem:[#allocation3 + $0x184]] }
  0x6c   :  { %v204_v20 = vadd.f32 %v202_v10, %v198_v63  ;;  %v175_v24 = vadd.f32 %v173_v40, %v169_v12  ;;  %v214_v27 = vmul.f32 %v212_v21, %v2712_v11  ;;  %v219_v30 = vmul.f32 %v218_v22, %v2724_v16  ;;  %s2899_s28 = sld [smem:[#allocation3 + $0x204]] }
  0x6d   :  { %v176_v25 = vadd.f32 %v174_v41, %v170_v13  ;;  %v209_v28 = vadd.f32 %v207_v14, %v203_v19  ;;  %v220_v31 = vmul.f32 %v218_v22, %v2734_v18  ;;  %v224_v36 = vstv %s2783_s10  ;;  %s2915_s18 = sld [smem:[#allocation3 + $0x284]] }
  0x6e   :  { %v210_v29 = vadd.f32 %v208_v15, %v204_v20  ;;  %v181_v34 = vadd.f32 %v179_v46, %v175_v24  ;;  %v230_v37 = vstv %s2785_s2  ;;  %v225_v40 = vmul.f32 %v224_v36, %v2729_v17  ;;  %s2917_s19 = sld [smem:[#allocation3 + $0x304]]  ;;  %s2927_s2 = sld [smem:[#allocation3 + $0x5]] }
  0x6f   :  { %v182_v35 = vadd.f32 %v180_v47, %v176_v25  ;;  %v215_v38 = vadd.f32 %v213_v26, %v209_v28  ;;  %v226_v41 = vmul.f32 %v224_v36, %v2743_v23  ;;  %v231_v44 = vmul.f32 %v230_v37, %v2758_v32  ;;  %s2925_s10 = sld [smem:[#allocation3 + $0x384]] }
  0x70   :  { %v216_v39 = vadd.f32 %v214_v27, %v210_v29  ;;  %v2817_v42 = vmax.f32 %v181_v34, 0.0  ;;  %v232_v45 = vmul.f32 %v230_v37, %v2763_v33  ;;  %v238_v48 = vstv %s2793_s4  ;;  %s2933_s4 = sld [smem:[#allocation7 + $0x5]] }
  0x71   :  { %v2819_v43 = vmax.f32 %v182_v35, 0.0  ;;  %v221_v46 = vadd.f32 %v219_v30, %v215_v38  ;;  %v242_v49 = vstv %s2795_s6  ;;  %v239_v50 = vmul.f32 %v238_v48, %v2654_v0  ;;  %s2935_s6 = sld [smem:[#allocation3 + $0x85]] }
  0x72   :  { %4541 = vst [vmem:[#allocation23_spill] sm:$0xff] %v2817_v42  ;;  %v222_v47 = vadd.f32 %v220_v31, %v216_v39  ;;  %v240_v51 = vmul.f32 %v238_v48, %v2677_v3  ;;  %v246_v52 = vstv %s2799_s3  ;;  %v252_v53 = vstv %s2801_s5  ;;  %s2943_s3 = sld [smem:[#allocation3 + $0x105]] }
  0x73   :  { %4542 = vst [vmem:[#allocation24_spill] sm:$0xff] %v2819_v43  ;;  %v227_v54 = vadd.f32 %v225_v40, %v221_v46  ;;  %v247_v56 = vmul.f32 %v246_v52, %v2663_v1  ;;  %v248_v57 = vmul.f32 %v246_v52, %v2682_v4  ;;  %v243_v58 = vadd.f32 %v242_v49, %v239_v50  ;;  %s2945_s5 = sld [smem:[#allocation3 + $0x185]] }
  0x74   :  { %v228_v55 = vadd.f32 %v226_v41, %v222_v47  ;;  %v244_v59 = vadd.f32 %v242_v49, %v240_v51  ;;  %v253_v60 = vmul.f32 %v252_v53, %v2672_v2  ;;  %v254_v61 = vmul.f32 %v252_v53, %v2692_v6 }
  0x75   :  { %v233_v62 = vadd.f32 %v231_v44, %v227_v54  ;;  %v258_v9 = vstv %s2809_s20  ;;  %v264_v10 = vstv %s2811_s21  ;;  %v249_v12 = vadd.f32 %v247_v56, %v243_v58  ;;  %s2957_s20 = sld [smem:[#allocation3 + $0x205]] }
  0x76   :  { %v234_v63 = vadd.f32 %v232_v45, %v228_v55  ;;  %v250_v13 = vadd.f32 %v248_v57, %v244_v59  ;;  %v259_v14 = vmul.f32 %v258_v9, %v2687_v5  ;;  %v260_v15 = vmul.f32 %v258_v9, %v2706_v8  ;;  %s2959_s21 = sld [smem:[#allocation3 + $0x285]] }
  0x77   :  { %v2853_v19 = vmax.f32 %v233_v62, 0.0  ;;  %v265_v21 = vmul.f32 %v264_v10, %v2701_v7  ;;  %v266_v22 = vmul.f32 %v264_v10, %v2712_v11  ;;  %v255_v24 = vadd.f32 %v253_v60, %v249_v12 }
  0x78   :  { %v2855_v20 = vmax.f32 %v234_v63, 0.0  ;;  %v256_v25 = vadd.f32 %v254_v61, %v250_v13  ;;  %v270_v26 = vstv %s2823_s25  ;;  %v276_v27 = vstv %s2825_s26  ;;  %s2971_s25 = sld [smem:[#allocation3 + $0x305]] }
  0x79   :  { %v271_v28 = vmul.f32 %v270_v26, %v2724_v16  ;;  %v272_v29 = vmul.f32 %v270_v26, %v2734_v18  ;;  %v277_v30 = vmul.f32 %v276_v27, %v2729_v17  ;;  %v278_v31 = vmul.f32 %v276_v27, %v2743_v23  ;;  %s2973_s26 = sld [smem:[#allocation3 + $0x385]] }
  0x7a   :  { %4543 = vst [vmem:[#allocation25_spill] sm:$0xff] %v2855_v20  ;;  %v261_v34 = vadd.f32 %v259_v14, %v255_v24  ;;  %v262_v35 = vadd.f32 %v260_v15, %v256_v25  ;;  %v282_v36 = vstv %s2833_s29  ;;  %v290_v37 = vstv %s2835_s30  ;;  %s2979_s29 = sld [smem:[#allocation3 + $0x6]] }
  0x7b   :  { %v283_v38 = vmul.f32 %v282_v36, %v2758_v32  ;;  %v284_v39 = vmul.f32 %v282_v36, %v2763_v33  ;;  %v291_v40 = vmul.f32 %v290_v37, %v2654_v0  ;;  %v292_v41 = vmul.f32 %v290_v37, %v2677_v3  ;;  %s2981_s30 = sld [smem:[#allocation7 + $0x6]] }
  0x7c   :  { %v267_v44 = vadd.f32 %v265_v21, %v261_v34  ;;  %v268_v45 = vadd.f32 %v266_v22, %v262_v35  ;;  %v294_v46 = vstv %s2841_s11  ;;  %v298_v47 = vstv %s2843_s7  ;;  %s2985_s11 = sld [smem:[#allocation3 + $0x86]] }
  0x7d   :  { %v295_v48 = vadd.f32 %v294_v46, %v291_v40  ;;  %v296_v49 = vadd.f32 %v294_v46, %v292_v41  ;;  %v299_v50 = vmul.f32 %v298_v47, %v2663_v1  ;;  %v300_v51 = vmul.f32 %v298_v47, %v2682_v4  ;;  %s2987_s7 = sld [smem:[#allocation3 + $0x106]] }
  0x7e   :  { %v273_v52 = vadd.f32 %v271_v28, %v267_v44  ;;  %v274_v53 = vadd.f32 %v272_v29, %v268_v45  ;;  %v304_v54 = vstv %s2849_s22  ;;  %v310_v55 = vstv %s2851_s12  ;;  %s2995_s22 = sld [smem:[#allocation3 + $0x186]] }
  0x7f   :  { %v301_v56 = vadd.f32 %v299_v50, %v295_v48  ;;  %v302_v57 = vadd.f32 %v300_v51, %v296_v49  ;;  %v305_v58 = vmul.f32 %v304_v54, %v2672_v2  ;;  %v306_v59 = vmul.f32 %v304_v54, %v2692_v6  ;;  %s2997_s12 = sld [smem:[#allocation3 + $0x206]] }
  0x80   :  { %v279_v60 = vadd.f32 %v277_v30, %v273_v52  ;;  %v280_v61 = vadd.f32 %v278_v31, %v274_v53  ;;  %v311_v62 = vmul.f32 %v310_v55, %v2687_v5  ;;  %v312_v63 = vmul.f32 %v310_v55, %v2706_v8 }
  0x81   :  { %v307_v9 = vadd.f32 %v305_v58, %v301_v56  ;;  %v308_v10 = vadd.f32 %v306_v59, %v302_v57  ;;  %v316_v12 = vstv %s2865_s13  ;;  %v322_v13 = vstv %s2867_s14  ;;  %s3001_s13 = sld [smem:[#allocation3 + $0x286]] }
  0x82   :  { %v285_v14 = vadd.f32 %v283_v38, %v279_v60  ;;  %v286_v15 = vadd.f32 %v284_v39, %v280_v61  ;;  %v317_v21 = vmul.f32 %v316_v12, %v2701_v7  ;;  %v318_v22 = vmul.f32 %v316_v12, %v2712_v11  ;;  %s3003_s14 = sld [smem:[#allocation3 + $0x306]] }
  0x83   :  { %v313_v24 = vadd.f32 %v311_v62, %v307_v9  ;;  %v314_v25 = vadd.f32 %v312_v63, %v308_v10  ;;  %v323_v26 = vmul.f32 %v322_v13, %v2724_v16  ;;  %v324_v27 = vmul.f32 %v322_v13, %v2734_v18 }
  0x84   :  { %v2907_v28 = vmax.f32 %v285_v14, 0.0  ;;  %v2909_v29 = vmax.f32 %v286_v15, 0.0  ;;  %v328_v30 = vstv %s2877_s23  ;;  %v334_v31 = vstv %s2879_s24  ;;  %s3021_s23 = sld [smem:[#allocation3 + $0x386]]  ;;  %s3023_s24 = sld [smem:[#allocation3 + $0x7]] }
  0x85   :  { %v319_v34 = vadd.f32 %v317_v21, %v313_v24  ;;  %v320_v35 = vadd.f32 %v318_v22, %v314_v25  ;;  %v329_v36 = vmul.f32 %v328_v30, %v2729_v17  ;;  %v330_v37 = vmul.f32 %v328_v30, %v2743_v23 }
  0x86   :  { %4544 = vst [vmem:[#allocation26_spill] sm:$0xff] %v2907_v28  ;;  %4545 = vst [vmem:[#allocation27_spill] sm:$0xff] %v2909_v29  ;;  %v335_v38 = vmul.f32 %v334_v31, %v2758_v32  ;;  %v336_v39 = vmul.f32 %v334_v31, %v2763_v33  ;;  %v342_v40 = vstv %s2885_s15  ;;  %v346_v41 = vstv %s2887_s16  ;;  %s3029_s15 = sld [smem:[#allocation7 + $0x7]] }
  0x87   :  { %v325_v44 = vadd.f32 %v323_v26, %v319_v34  ;;  %v326_v45 = vadd.f32 %v324_v27, %v320_v35  ;;  %v343_v46 = vmul.f32 %v342_v40, %v2654_v0  ;;  %v344_v47 = vmul.f32 %v342_v40, %v2677_v3  ;;  %s3031_s16 = sld [smem:[#allocation3 + $0x87]] }
  0x88   :  { %v350_v48 = vstv %s2891_s17  ;;  %v356_v49 = vstv %s2893_s1  ;;  %v362_v50 = vstv %s2897_s27  ;;  %v368_v51 = vstv %s2899_s28  ;;  %s3037_s17 = sld [smem:[#allocation3 + $0x107]] }
  0x89   :  { %v331_v52 = vadd.f32 %v329_v36, %v325_v44  ;;  %v332_v53 = vadd.f32 %v330_v37, %v326_v45  ;;  %v347_v54 = vadd.f32 %v346_v41, %v343_v46  ;;  %v348_v55 = vadd.f32 %v346_v41, %v344_v47  ;;  %s3039_s1 = sld [smem:[#allocation3 + $0x187]] }
  0x8a   :  { %v351_v56 = vmul.f32 %v350_v48, %v2663_v1  ;;  %v352_v57 = vmul.f32 %v350_v48, %v2682_v4  ;;  %v357_v58 = vmul.f32 %v356_v49, %v2672_v2  ;;  %v358_v59 = vmul.f32 %v356_v49, %v2692_v6  ;;  %s3053_s27 = sld [smem:[#allocation3 + $0x207]] }
  0x8b   :  { %v337_v60 = vadd.f32 %v335_v38, %v331_v52  ;;  %v338_v61 = vadd.f32 %v336_v39, %v332_v53  ;;  %v363_v62 = vmul.f32 %v362_v50, %v2687_v5  ;;  %v364_v63 = vmul.f32 %v362_v50, %v2706_v8  ;;  %s3055_s28 = sld [smem:[#allocation3 + $0x287]] }
  0x8c   :  { %v353_v9 = vadd.f32 %v351_v56, %v347_v54  ;;  %v354_v10 = vadd.f32 %v352_v57, %v348_v55  ;;  %v369_v12 = vmul.f32 %v368_v51, %v2701_v7  ;;  %v370_v13 = vmul.f32 %v368_v51, %v2712_v11 }
  0x8d   :  { %v2949_v14 = vmax.f32 %v337_v60, 0.0  ;;  %v2951_v15 = vmax.f32 %v338_v61, 0.0  ;;  %v374_v21 = vstv %s2915_s18  ;;  %v380_v22 = vstv %s2917_s19  ;;  %s3065_s18 = sld [smem:[#allocation3 + $0x307]] }
  0x8e   :  { %v359_v24 = vadd.f32 %v357_v58, %v353_v9  ;;  %v360_v25 = vadd.f32 %v358_v59, %v354_v10  ;;  %v375_v26 = vmul.f32 %v374_v21, %v2724_v16  ;;  %v376_v27 = vmul.f32 %v374_v21, %v2734_v18  ;;  %s3067_s19 = sld [smem:[#allocation3 + $0x387]] }
  0x8f   :  { %v381_v30 = vmul.f32 %v380_v22, %v2729_v17  ;;  %v382_v31 = vmul.f32 %v380_v22, %v2743_v23  ;;  %v386_v34 = vstv %s2925_s10  ;;  %v394_v35 = vstv %s2927_s2  ;;  %s3073_s10 = sld [smem:[#allocation3 + $0x8]] }
  0x90   :  { %v365_v36 = vadd.f32 %v363_v62, %v359_v24  ;;  %v366_v37 = vadd.f32 %v364_v63, %v360_v25  ;;  %v387_v38 = vmul.f32 %v386_v34, %v2758_v32  ;;  %v388_v39 = vmul.f32 %v386_v34, %v2763_v33  ;;  %s3075_s2 = sld [smem:[#allocation7 + $0x8]] }
  0x91   :  { %v395_v40 = vmul.f32 %v394_v35, %v2654_v0  ;;  %v396_v41 = vmul.f32 %v394_v35, %v2677_v3  ;;  %v398_v44 = vstv %s2933_s4  ;;  %v402_v45 = vstv %s2935_s6  ;;  %s3079_s4 = sld [smem:[#allocation3 + $0x88]] }
  0x92   :  { %v371_v46 = vadd.f32 %v369_v12, %v365_v36  ;;  %v372_v47 = vadd.f32 %v370_v13, %v366_v37  ;;  %v403_v48 = vmul.f32 %v402_v45, %v2663_v1  ;;  %v404_v49 = vmul.f32 %v402_v45, %v2682_v4  ;;  %s3081_s6 = sld [smem:[#allocation3 + $0x108]] }
  0x93   :  { %v399_v50 = vadd.f32 %v398_v44, %v395_v40  ;;  %v400_v51 = vadd.f32 %v398_v44, %v396_v41  ;;  %v408_v52 = vstv %s2943_s3  ;;  %v414_v53 = vstv %s2945_s5  ;;  %s3085_s3 = sld [smem:[#allocation3 + $0x188]] }
  0x94   :  { %v377_v54 = vadd.f32 %v375_v26, %v371_v46  ;;  %v378_v55 = vadd.f32 %v376_v27, %v372_v47  ;;  %v409_v56 = vmul.f32 %v408_v52, %v2672_v2  ;;  %v410_v57 = vmul.f32 %v408_v52, %v2692_v6  ;;  %s3087_s5 = sld [smem:[#allocation3 + $0x208]] }
  0x95   :  { %v405_v58 = vadd.f32 %v403_v48, %v399_v50  ;;  %v406_v59 = vadd.f32 %v404_v49, %v400_v51  ;;  %v415_v60 = vmul.f32 %v414_v53, %v2687_v5  ;;  %v416_v61 = vmul.f32 %v414_v53, %v2706_v8 }
  0x96   :  { %v383_v62 = vadd.f32 %v381_v30, %v377_v54  ;;  %v384_v63 = vadd.f32 %v382_v31, %v378_v55  ;;  %v420_v9 = vstv %s2957_s20  ;;  %v426_v10 = vstv %s2959_s21  ;;  %s3103_s20 = sld [smem:[#allocation3 + $0x288]] }
  0x97   :  { %v411_v12 = vadd.f32 %v409_v56, %v405_v58  ;;  %v412_v13 = vadd.f32 %v410_v57, %v406_v59  ;;  %v421_v21 = vmul.f32 %v420_v9, %v2701_v7  ;;  %v422_v22 = vmul.f32 %v420_v9, %v2712_v11  ;;  %s3105_s21 = sld [smem:[#allocation3 + $0x308]] }
  0x98   :  { %v389_v24 = vadd.f32 %v387_v38, %v383_v62  ;;  %v390_v25 = vadd.f32 %v388_v39, %v384_v63  ;;  %v427_v26 = vmul.f32 %v426_v10, %v2724_v16  ;;  %v428_v27 = vmul.f32 %v426_v10, %v2734_v18 }
  0x99   :  { %v417_v30 = vadd.f32 %v415_v60, %v411_v12  ;;  %v418_v31 = vadd.f32 %v416_v61, %v412_v13  ;;  %v432_v34 = vstv %s2971_s25  ;;  %v438_v35 = vstv %s2973_s26  ;;  %s3113_s25 = sld [smem:[#allocation3 + $0x388]]  ;;  %s3115_s26 = sld [smem:[#allocation3 + $0x9]] }
  0x9a   :  { %v3007_v36 = vmax.f32 %v389_v24, 0.0  ;;  %v3009_v37 = vmax.f32 %v390_v25, 0.0  ;;  %v433_v38 = vmul.f32 %v432_v34, %v2729_v17  ;;  %v434_v39 = vmul.f32 %v432_v34, %v2743_v23 }
  0x9b   :  { %v423_v40 = vadd.f32 %v421_v21, %v417_v30  ;;  %v424_v41 = vadd.f32 %v422_v22, %v418_v31  ;;  %v439_v44 = vmul.f32 %v438_v35, %v2758_v32  ;;  %v440_v45 = vmul.f32 %v438_v35, %v2763_v33 }
  0x9c   :  { %v446_v46 = vstv %s2979_s29  ;;  %v450_v47 = vstv %s2981_s30  ;;  %v454_v48 = vstv %s2985_s11  ;;  %v460_v49 = vstv %s2987_s7  ;;  %s3121_s29 = sld [smem:[#allocation7 + $0x9]] }
  0x9d   :  { %v429_v50 = vadd.f32 %v427_v26, %v423_v40  ;;  %v430_v51 = vadd.f32 %v428_v27, %v424_v41  ;;  %v447_v52 = vmul.f32 %v446_v46, %v2654_v0  ;;  %v448_v53 = vmul.f32 %v446_v46, %v2677_v3  ;;  %s3123_s30 = sld [smem:[#allocation3 + $0x89]] }
  0x9e   :  { %v455_v54 = vmul.f32 %v454_v48, %v2663_v1  ;;  %v456_v55 = vmul.f32 %v454_v48, %v2682_v4  ;;  %v461_v56 = vmul.f32 %v460_v49, %v2672_v2  ;;  %v462_v57 = vmul.f32 %v460_v49, %v2692_v6  ;;  %s3131_s11 = sld [smem:[#allocation3 + $0x109]] }
  0x9f   :  { %v435_v58 = vadd.f32 %v433_v38, %v429_v50  ;;  %v436_v59 = vadd.f32 %v434_v39, %v430_v51  ;;  %v451_v60 = vadd.f32 %v450_v47, %v447_v52  ;;  %v452_v61 = vadd.f32 %v450_v47, %v448_v53  ;;  %s3133_s7 = sld [smem:[#allocation3 + $0x189]] }
  0xa0   :  { %v466_v62 = vstv %s2995_s22  ;;  %v472_v63 = vstv %s2997_s12  ;;  %v478_v9 = vstv %s3001_s13  ;;  %v484_v10 = vstv %s3003_s14  ;;  %s3145_s22 = sld [smem:[#allocation3 + $0x209]] }
  0xa1   :  { %v441_v12 = vadd.f32 %v439_v44, %v435_v58  ;;  %v442_v13 = vadd.f32 %v440_v45, %v436_v59  ;;  %v457_v21 = vadd.f32 %v455_v54, %v451_v60  ;;  %v458_v22 = vadd.f32 %v456_v55, %v452_v61  ;;  %s3147_s12 = sld [smem:[#allocation3 + $0x289]] }
  0xa2   :  { %v467_v24 = vmul.f32 %v466_v62, %v2687_v5  ;;  %v468_v25 = vmul.f32 %v466_v62, %v2706_v8  ;;  %v473_v26 = vmul.f32 %v472_v63, %v2701_v7  ;;  %v474_v27 = vmul.f32 %v472_v63, %v2712_v11  ;;  %s3159_s13 = sld [smem:[#allocation3 + $0x309]] }
  0xa3   :  { %v3045_v30 = vmax.f32 %v441_v12, 0.0  ;;  %v3047_v31 = vmax.f32 %v442_v13, 0.0  ;;  %v463_v34 = vadd.f32 %v461_v56, %v457_v21  ;;  %v464_v35 = vadd.f32 %v462_v57, %v458_v22  ;;  %s3161_s14 = sld [smem:[#allocation3 + $0x389]] }
  0xa4   :  { %v479_v38 = vmul.f32 %v478_v9, %v2724_v16  ;;  %v480_v39 = vmul.f32 %v478_v9, %v2734_v18  ;;  %v485_v40 = vmul.f32 %v484_v10, %v2729_v17  ;;  %v486_v41 = vmul.f32 %v484_v10, %v2743_v23 }
  0xa5   :  { %v469_v44 = vadd.f32 %v467_v24, %v463_v34  ;;  %v470_v45 = vadd.f32 %v468_v25, %v464_v35  ;;  %v490_v46 = vstv %s3021_s23  ;;  %v498_v47 = vstv %s3023_s24  ;;  %s3167_s23 = sld [smem:[#allocation3 + $0xa]] }
  0xa6   :  { %v491_v48 = vmul.f32 %v490_v46, %v2758_v32  ;;  %v492_v49 = vmul.f32 %v490_v46, %v2763_v33  ;;  %v499_v50 = vmul.f32 %v498_v47, %v2654_v0  ;;  %v500_v51 = vmul.f32 %v498_v47, %v2677_v3  ;;  %s3169_s24 = sld [smem:[#allocation7 + $0xa]] }
  0xa7   :  { %v475_v52 = vadd.f32 %v473_v26, %v469_v44  ;;  %v476_v53 = vadd.f32 %v474_v27, %v470_v45  ;;  %v502_v54 = vstv %s3029_s15  ;;  %v506_v55 = vstv %s3031_s16  ;;  %s3173_s15 = sld [smem:[#allocation3 + $0x8a]] }
  0xa8   :  { %v503_v56 = vadd.f32 %v502_v54, %v499_v50  ;;  %v504_v57 = vadd.f32 %v502_v54, %v500_v51  ;;  %v507_v58 = vmul.f32 %v506_v55, %v2663_v1  ;;  %v508_v59 = vmul.f32 %v506_v55, %v2682_v4  ;;  %s3175_s16 = sld [smem:[#allocation3 + $0x10a]] }
  0xa9   :  { %v481_v60 = vadd.f32 %v479_v38, %v475_v52  ;;  %v482_v61 = vadd.f32 %v480_v39, %v476_v53  ;;  %v512_v62 = vstv %s3037_s17  ;;  %v518_v63 = vstv %s3039_s1  ;;  %s3183_s17 = sld [smem:[#allocation3 + $0x18a]] }
  0xaa   :  { %v509_v9 = vadd.f32 %v507_v58, %v503_v56  ;;  %v510_v10 = vadd.f32 %v508_v59, %v504_v57  ;;  %v513_v12 = vmul.f32 %v512_v62, %v2672_v2  ;;  %v514_v13 = vmul.f32 %v512_v62, %v2692_v6  ;;  %s3185_s1 = sld [smem:[#allocation3 + $0x20a]] }
  0xab   :  { %v487_v21 = vadd.f32 %v485_v40, %v481_v60  ;;  %v488_v22 = vadd.f32 %v486_v41, %v482_v61  ;;  %v519_v24 = vmul.f32 %v518_v63, %v2687_v5  ;;  %v520_v25 = vmul.f32 %v518_v63, %v2706_v8 }
  0xac   :  { %v515_v26 = vadd.f32 %v513_v12, %v509_v9  ;;  %v516_v27 = vadd.f32 %v514_v13, %v510_v10  ;;  %v524_v34 = vstv %s3053_s27  ;;  %v530_v35 = vstv %s3055_s28  ;;  %s3189_s27 = sld [smem:[#allocation3 + $0x28a]] }
  0xad   :  { %v493_v38 = vadd.f32 %v491_v48, %v487_v21  ;;  %v494_v39 = vadd.f32 %v492_v49, %v488_v22  ;;  %v525_v44 = vmul.f32 %v524_v34, %v2701_v7  ;;  %v526_v40 = vmul.f32 %v524_v34, %v2712_v11  ;;  %s3191_s28 = sld [smem:[#allocation3 + $0x30a]] }
  0xae   :  { %v521_v41 = vadd.f32 %v519_v24, %v515_v26  ;;  %v522_v45 = vadd.f32 %v520_v25, %v516_v27  ;;  %v531_v46 = vmul.f32 %v530_v35, %v2724_v16  ;;  %v532_v47 = vmul.f32 %v530_v35, %v2734_v18 }
  0xaf   :  { %v3095_v50 = vmax.f32 %v493_v38, 0.0  ;;  %v3097_v51 = vmax.f32 %v494_v39, 0.0  ;;  %v536_v52 = vstv %s3065_s18  ;;  %v542_v53 = vstv %s3067_s19  ;;  %s3415_s18 = sld [smem:[#allocation3 + $0x28d]] }
  0xb0   :  { %v527_v48 = vadd.f32 %v525_v44, %v521_v41  ;;  %v528_v49 = vadd.f32 %v526_v40, %v522_v45  ;;  %v537_v54 = vmul.f32 %v536_v52, %v2729_v17  ;;  %v538_v55 = vmul.f32 %v536_v52, %v2743_v23  ;;  %s3427_s19 = sld [smem:[#allocation3 + $0x30d]] }
  0xb1   :  { %v543_v56 = vmul.f32 %v542_v53, %v2758_v32  ;;  %v544_v57 = vmul.f32 %v542_v53, %v2763_v33  ;;  %v550_v58 = vstv %s3073_s10  ;;  %v554_v59 = vstv %s3075_s2  ;;  %s3429_s10 = sld [smem:[#allocation3 + $0x38d]]  ;;  %s3435_s2 = sld [smem:[#allocation3 + $0xe]] }
  0xb2   :  { %v533_v60 = vadd.f32 %v531_v46, %v527_v48  ;;  %v534_v61 = vadd.f32 %v532_v47, %v528_v49  ;;  %v551_v62 = vmul.f32 %v550_v58, %v2654_v0  ;;  %v552_v63 = vmul.f32 %v550_v58, %v2677_v3 }
  0xb3   :  { %v558_v9 = vstv %s3079_s4  ;;  %v564_v10 = vstv %s3081_s6  ;;  %v570_v12 = vstv %s3085_s3  ;;  %v576_v13 = vstv %s3087_s5  ;;  %s3219_s4 = sld [smem:[#allocation3 + $0x38a]]  ;;  %s3221_s6 = sld [smem:[#allocation3 + $0xb]] }
  0xb4   :  { %v539_v21 = vadd.f32 %v537_v54, %v533_v60  ;;  %v540_v22 = vadd.f32 %v538_v55, %v534_v61  ;;  %v555_v24 = vadd.f32 %v554_v59, %v551_v62  ;;  %v556_v25 = vadd.f32 %v554_v59, %v552_v63  ;;  %s3437_s3 = sld [smem:[#allocation7 + $0xe]] }
  0xb5   :  { %v559_v26 = vmul.f32 %v558_v9, %v2663_v1  ;;  %v560_v27 = vmul.f32 %v558_v9, %v2682_v4  ;;  %v565_v34 = vmul.f32 %v564_v10, %v2672_v2  ;;  %v566_v35 = vmul.f32 %v564_v10, %v2692_v6  ;;  %s3441_s5 = sld [smem:[#allocation3 + $0x8e]] }
  0xb6   :  { %v545_v38 = vadd.f32 %v543_v56, %v539_v21  ;;  %v546_v39 = vadd.f32 %v544_v57, %v540_v22  ;;  %v571_v44 = vmul.f32 %v570_v12, %v2687_v5  ;;  %v572_v40 = vmul.f32 %v570_v12, %v2706_v8 }
  0xb7   :  { %v561_v41 = vadd.f32 %v559_v26, %v555_v24  ;;  %v562_v45 = vadd.f32 %v560_v27, %v556_v25  ;;  %v577_v46 = vmul.f32 %v576_v13, %v2701_v7  ;;  %v578_v47 = vmul.f32 %v576_v13, %v2712_v11 }
  0xb8   :  { %v3137_v52 = vmax.f32 %v545_v38, 0.0  ;;  %v3139_v53 = vmax.f32 %v546_v39, 0.0  ;;  %v582_v48 = vstv %s3103_s20  ;;  %v588_v49 = vstv %s3105_s21  ;;  %s3311_s20 = sld [smem:[#allocation3 + $0x20b]] }
  0xb9   :  { %v567_v54 = vadd.f32 %v565_v34, %v561_v41  ;;  %v568_v55 = vadd.f32 %v566_v35, %v562_v45  ;;  %v583_v56 = vmul.f32 %v582_v48, %v2724_v16  ;;  %v584_v57 = vmul.f32 %v582_v48, %v2734_v18  ;;  %s3313_s21 = sld [smem:[#allocation3 + $0x28b]] }
  0xba   :  { %v589_v58 = vmul.f32 %v588_v49, %v2729_v17  ;;  %v590_v59 = vmul.f32 %v588_v49, %v2743_v23  ;;  %v594_v60 = vstv %s3113_s25  ;;  %v602_v61 = vstv %s3115_s26  ;;  %s3453_s25 = sld [smem:[#allocation3 + $0x20e]] }
  0xbb   :  { %v573_v62 = vadd.f32 %v571_v44, %v567_v54  ;;  %v574_v63 = vadd.f32 %v572_v40, %v568_v55  ;;  %v595_v9 = vmul.f32 %v594_v60, %v2758_v32  ;;  %v596_v10 = vmul.f32 %v594_v60, %v2763_v33  ;;  %s3457_s26 = sld [smem:[#allocation3 + $0x28e]] }
  0xbc   :  { %v603_v12 = vmul.f32 %v602_v61, %v2654_v0  ;;  %v604_v13 = vmul.f32 %v602_v61, %v2677_v3  ;;  %v606_v21 = vstv %s3121_s29  ;;  %v610_v22 = vstv %s3123_s30  ;;  %s3459_s29 = sld [smem:[#allocation3 + $0x30e]] }
  0xbd   :  { %v579_v24 = vadd.f32 %v577_v46, %v573_v62  ;;  %v580_v25 = vadd.f32 %v578_v47, %v574_v63  ;;  %v611_v26 = vmul.f32 %v610_v22, %v2663_v1  ;;  %v612_v27 = vmul.f32 %v610_v22, %v2682_v4  ;;  %s3477_s30 = sld [smem:[#allocation3 + $0x38e]] }
  0xbe   :  { %v607_v34 = vadd.f32 %v606_v21, %v603_v12  ;;  %v608_v35 = vadd.f32 %v606_v21, %v604_v13  ;;  %v616_v38 = vstv %s3131_s11  ;;  %v622_v39 = vstv %s3133_s7  ;;  %s3247_s11 = sld [smem:[#allocation7 + $0xb]] }
  0xbf   :  { %v585_v0 = vadd.f32 %v583_v56, %v579_v24  ;;  %v586_v3 = vadd.f32 %v584_v57, %v580_v25  ;;  %v617_v44 = vmul.f32 %v616_v38, %v2672_v2  ;;  %v618_v40 = vmul.f32 %v616_v38, %v2692_v6  ;;  %v3238_v38 = vld [vmem:[%s4507_s0 + $0x4] sm:$0x3]  ;;  %s3249_s7 = sld [smem:[#allocation3 + $0x8b]] }
  0xc0   :  { %v613_v1 = vadd.f32 %v611_v26, %v607_v34  ;;  %v614_v4 = vadd.f32 %v612_v27, %v608_v35  ;;  %v623_v41 = vmul.f32 %v622_v39, %v2687_v5  ;;  %v624_v45 = vmul.f32 %v622_v39, %v2706_v8  ;;  %v3210_v26 = vld [vmem:[%s4507_s0] sm:$0x3]  ;;  %v3232_v34 = vld [vmem:[%s4507_s0 + $0x12] sm:$0x3] }
  0xc1   :  { %v591_v46 = vadd.f32 %v589_v58, %v585_v0  ;;  %v592_v47 = vadd.f32 %v590_v59, %v586_v3  ;;  %v628_v48 = vstv %s3145_s22  ;;  %v634_v49 = vstv %s3147_s12  ;;  %v3244_v0 = vld [vmem:[%s4507_s0 + $0x14] sm:$0x3]  ;;  %s3255_s22 = sld [smem:[#allocation3 + $0x10b]] }
  0xc2   :  { %v619_v54 = vadd.f32 %v617_v44, %v613_v1  ;;  %v620_v2 = vadd.f32 %v618_v40, %v614_v4  ;;  %v629_v6 = vmul.f32 %v628_v48, %v2701_v7  ;;  %v630_v55 = vmul.f32 %v628_v48, %v2712_v11  ;;  %s3257_s12 = sld [smem:[#allocation3 + $0x18b]] }
  0xc3   :  { %v597_v56 = vadd.f32 %v595_v9, %v591_v46  ;;  %v598_v5 = vadd.f32 %v596_v10, %v592_v47  ;;  %v635_v8 = vmul.f32 %v634_v49, %v2724_v16  ;;  %v636_v57 = vmul.f32 %v634_v49, %v2734_v18 }
  0xc4   :  { %v625_v7 = vadd.f32 %v623_v41, %v619_v54  ;;  %v626_v11 = vadd.f32 %v624_v45, %v620_v2  ;;  %v640_v58 = vstv %s3159_s13  ;;  %v646_v59 = vstv %s3161_s14  ;;  %s3343_s13 = sld [smem:[#allocation7 + $0xc]] }
  0xc5   :  { %v3195_v60 = vmax.f32 %v597_v56, 0.0  ;;  %v3197_v61 = vmax.f32 %v598_v5, 0.0  ;;  %v641_v16 = vmul.f32 %v640_v58, %v2729_v17  ;;  %v642_v62 = vmul.f32 %v640_v58, %v2743_v23  ;;  %v3216_v23 = vld [vmem:[%s4507_s0 + $0x10] sm:$0x3]  ;;  %v3268_v56 = vld [vmem:[%s4507_s0 + $0x16] sm:$0x3] }
  0xc6   :  { %v631_v18 = vadd.f32 %v629_v6, %v625_v7  ;;  %v632_v63 = vadd.f32 %v630_v55, %v626_v11  ;;  %v647_v9 = vmul.f32 %v646_v59, %v2758_v32  ;;  %v648_v10 = vmul.f32 %v646_v59, %v2763_v33  ;;  %v3226_v33 = vld [vmem:[%s4507_s0 + $0x2] sm:$0x3]  ;;  %v3262_v6 = vld [vmem:[%s4507_s0 + $0x6] sm:$0x3]  ;;  %v3280_v7 = vld [vmem:[%s4507_s0 + $0x18] sm:$0x3] }
  0xc7   :  { %v654_v12 = vstv %s3167_s23  ;;  %v658_v13 = vstv %s3169_s24  ;;  %v662_v21 = vstv %s3173_s15  ;;  %v668_v22 = vstv %s3175_s16  ;;  %s3371_s14 = sld [smem:[#allocation3 + $0x28c]]  ;;  %s3383_s15 = sld [smem:[#allocation3 + $0xd]] }
  0xc8   :  { %v637_v24 = vadd.f32 %v635_v8, %v631_v18  ;;  %v638_v25 = vadd.f32 %v636_v57, %v632_v63  ;;  %v655_v17 = vmul.f32 %v3210_v26, %v654_v12  ;;  %v656_v32 = vmul.f32 %v3216_v23, %v654_v12  ;;  %v3274_v8 = vld [vmem:[%s4507_s0 + $0x8] sm:$0x3]  ;;  %v3290_v18 = vld [vmem:[%s4507_s0 + $0xa] sm:$0x3]  ;;  %v3302_v12 = vld [vmem:[%s4507_s0 + $0xc] sm:$0x3] }
  0xc9   :  { %v663_v27 = vmul.f32 %v3226_v33, %v662_v21  ;;  %v664_v35 = vmul.f32 %v3232_v34, %v662_v21  ;;  %v669_v39 = vmul.f32 %v3238_v38, %v668_v22  ;;  %v670_v3 = vmul.f32 %v3244_v0, %v668_v22  ;;  %v3308_v21 = vld [vmem:[%s4507_s0 + $0x1c] sm:$0x3]  ;;  %s3373_s23 = sld [smem:[#allocation3 + $0x30c]]  ;;  %s3389_s16 = sld [smem:[#allocation7 + $0xd]] }
  0xca   :  { %v643_v44 = vadd.f32 %v641_v16, %v637_v24  ;;  %v644_v40 = vadd.f32 %v642_v62, %v638_v25  ;;  %v659_v1 = vadd.f32 %v658_v13, %v655_v17  ;;  %v660_v4 = vadd.f32 %v658_v13, %v656_v32  ;;  %s3381_s24 = sld [smem:[#allocation3 + $0x38c]] }
  0xcb   :  { %v674_v41 = vstv %s3183_s17  ;;  %v680_v45 = vstv %s3185_s1  ;;  %v686_v46 = vstv %s3189_s27  ;;  %v692_v47 = vstv %s3191_s28  ;;  %s3391_s17 = sld [smem:[#allocation3 + $0x8d]] }
  0xcc   :  { %v649_v48 = vadd.f32 %v647_v9, %v643_v44  ;;  %v650_v49 = vadd.f32 %v648_v10, %v644_v40  ;;  %v665_v54 = vadd.f32 %v663_v27, %v659_v1  ;;  %v666_v2 = vadd.f32 %v664_v35, %v660_v4  ;;  %v3296_v9 = vld [vmem:[%s4507_s0 + $0x1a] sm:$0x3]  ;;  %v3320_v27 = vld [vmem:[%s4507_s0 + $0xe] sm:$0x3]  ;;  %s3399_s1 = sld [smem:[#allocation3 + $0x10d]] }
  0xcd   :  { %v675_v55 = vmul.f32 %v3262_v6, %v674_v41  ;;  %v676_v5 = vmul.f32 %v3268_v56, %v674_v41  ;;  %v681_v57 = vmul.f32 %v3274_v8, %v680_v45  ;;  %v682_v11 = vmul.f32 %v3280_v7, %v680_v45  ;;  %s3401_s27 = sld [smem:[#allocation3 + $0x18d]] }
  0xce   :  { %v3283_v58 = vmax.f32 %v649_v48, 0.0  ;;  %v3285_v59 = vmax.f32 %v650_v49, 0.0  ;;  %v671_v16 = vadd.f32 %v669_v39, %v665_v54  ;;  %v672_v62 = vadd.f32 %v670_v3, %v666_v2  ;;  %v3326_v39 = vld [vmem:[%s4507_s0 + $0x1e] sm:$0x3]  ;;  %s3341_s0 = sld [smem:[#allocation3 + $0xc]]  ;;  %s3413_s28 = sld [smem:[#allocation3 + $0x20d]] }
  0xcf   :  { %v687_v63 = vmul.f32 %v3290_v18, %v686_v46  ;;  %v688_v10 = vmul.f32 %v3296_v9, %v686_v46  ;;  %v693_v13 = vmul.f32 %v3302_v12, %v692_v47  ;;  %v694_v22 = vmul.f32 %v3308_v21, %v692_v47 }
  0xd0   :  { %v677_v24 = vadd.f32 %v675_v55, %v671_v16  ;;  %v678_v25 = vadd.f32 %v676_v5, %v672_v62  ;;  %v698_v17 = vstv %s3219_s4  ;;  %v706_v32 = vstv %s3221_s6  ;;  %s3333_s4 = sld [smem:[#allocation3 + $0x30b]] }
  0xd1   :  { %v699_v35 = vmul.f32 %v3320_v27, %v698_v17  ;;  %v700_v3 = vmul.f32 %v3326_v39, %v698_v17  ;;  %v707_v44 = vmul.f32 %v3210_v26, %v706_v32  ;;  %v708_v40 = vmul.f32 %v3216_v23, %v706_v32  ;;  %s3335_s6 = sld [smem:[#allocation3 + $0x38b]] }
  0xd2   :  { %v683_v1 = vadd.f32 %v681_v57, %v677_v24  ;;  %v684_v4 = vadd.f32 %v682_v11, %v678_v25  ;;  %v710_v41 = vstv %s3247_s11  ;;  %v714_v45 = vstv %s3249_s7  ;;  %s3347_s11 = sld [smem:[#allocation3 + $0x8c]] }
  0xd3   :  { %v711_v46 = vadd.f32 %v710_v41, %v707_v44  ;;  %v712_v47 = vadd.f32 %v710_v41, %v708_v40  ;;  %v715_v48 = vmul.f32 %v3226_v33, %v714_v45  ;;  %v716_v49 = vmul.f32 %v3232_v34, %v714_v45  ;;  %s3349_s7 = sld [smem:[#allocation3 + $0x10c]] }
  0xd4   :  { %v689_v54 = vadd.f32 %v687_v63, %v683_v1  ;;  %v690_v2 = vadd.f32 %v688_v10, %v684_v4  ;;  %v720_v55 = vstv %s3255_s22  ;;  %v726_v5 = vstv %s3257_s12  ;;  %s3353_s22 = sld [smem:[#allocation3 + $0x18c]] }
  0xd5   :  { %v717_v57 = vadd.f32 %v715_v48, %v711_v46  ;;  %v718_v11 = vadd.f32 %v716_v49, %v712_v47  ;;  %v721_v16 = vmul.f32 %v3238_v38, %v720_v55  ;;  %v722_v62 = vmul.f32 %v3244_v0, %v720_v55  ;;  %s3355_s12 = sld [smem:[#allocation3 + $0x20c]] }
  0xd6   :  { %v695_v63 = vadd.f32 %v693_v13, %v689_v54  ;;  %v696_v10 = vadd.f32 %v694_v22, %v690_v2  ;;  %v727_v24 = vmul.f32 %v3262_v6, %v726_v5  ;;  %v728_v25 = vmul.f32 %v3268_v56, %v726_v5 }
  0xd7   :  { %v723_v17 = vadd.f32 %v721_v16, %v717_v57  ;;  %v724_v32 = vadd.f32 %v722_v62, %v718_v11  ;;  %v732_v44 = vstv %s3311_s20  ;;  %v738_v40 = vstv %s3313_s21  ;;  %s3443_s20 = sld [smem:[#allocation3 + $0x10e]] }
  0xd8   :  { %v701_v1 = vadd.f32 %v699_v35, %v695_v63  ;;  %v702_v4 = vadd.f32 %v700_v3, %v696_v10  ;;  %v733_v41 = vmul.f32 %v3274_v8, %v732_v44  ;;  %v734_v13 = vmul.f32 %v3280_v7, %v732_v44  ;;  %s3451_s21 = sld [smem:[#allocation3 + $0x18e]] }
  0xd9   :  { %v729_v22 = vadd.f32 %v727_v24, %v723_v17  ;;  %v730_v45 = vadd.f32 %v728_v25, %v724_v32  ;;  %v739_v46 = vmul.f32 %v3290_v18, %v738_v40  ;;  %v740_v47 = vmul.f32 %v3296_v9, %v738_v40 }
  0xda   :  { %v3363_v48 = vmax.f32 %v701_v1, 0.0  ;;  %v3365_v49 = vmax.f32 %v702_v4, 0.0  ;;  %v744_v54 = vstv %s3333_s4  ;;  %v750_v2 = vstv %s3335_s6  ;;  %s3479_s4 = sld [smem:[#allocation3 + $0xf]] }
  0xdb   :  { %v735_v35 = vadd.f32 %v733_v41, %v729_v22  ;;  %v736_v3 = vadd.f32 %v734_v13, %v730_v45  ;;  %v745_v55 = vmul.f32 %v3302_v12, %v744_v54  ;;  %v746_v5 = vmul.f32 %v3308_v21, %v744_v54  ;;  %s3485_s6 = sld [smem:[#allocation7 + $0xf]] }
  0xdc   :  { %v751_v57 = vmul.f32 %v3320_v27, %v750_v2  ;;  %v752_v11 = vmul.f32 %v3326_v39, %v750_v2  ;;  %v758_v16 = vstv %s3341_s0  ;;  %v762_v62 = vstv %s3343_s13  ;;  %s3487_s0 = sld [smem:[#allocation3 + $0x8f]] }
  0xdd   :  { %v741_v63 = vadd.f32 %v739_v46, %v735_v35  ;;  %v742_v10 = vadd.f32 %v740_v47, %v736_v3  ;;  %v759_v24 = vmul.f32 %v3210_v26, %v758_v16  ;;  %v760_v25 = vmul.f32 %v3216_v23, %v758_v16  ;;  %s3493_s13 = sld [smem:[#allocation3 + $0x10f]] }
  0xde   :  { %v766_v17 = vstv %s3347_s11  ;;  %v772_v32 = vstv %s3349_s7  ;;  %v778_v44 = vstv %s3353_s22  ;;  %v784_v40 = vstv %s3355_s12  ;;  %s3495_s11 = sld [smem:[#allocation3 + $0x18f]] }
  0xdf   :  { %v747_v1 = vadd.f32 %v745_v55, %v741_v63  ;;  %v748_v4 = vadd.f32 %v746_v5, %v742_v10  ;;  %v763_v41 = vadd.f32 %v762_v62, %v759_v24  ;;  %v764_v13 = vadd.f32 %v762_v62, %v760_v25  ;;  %s3509_s7 = sld [smem:[#allocation3 + $0x20f]] }
  0xe0   :  { %v767_v22 = vmul.f32 %v3226_v33, %v766_v17  ;;  %v768_v45 = vmul.f32 %v3232_v34, %v766_v17  ;;  %v773_v46 = vmul.f32 %v3238_v38, %v772_v32  ;;  %v774_v47 = vmul.f32 %v3244_v0, %v772_v32  ;;  %s3511_s22 = sld [smem:[#allocation3 + $0x28f]] }
  0xe1   :  { %v753_v54 = vadd.f32 %v751_v57, %v747_v1  ;;  %v754_v2 = vadd.f32 %v752_v11, %v748_v4  ;;  %v779_v35 = vmul.f32 %v3262_v6, %v778_v44  ;;  %v780_v3 = vmul.f32 %v3268_v56, %v778_v44  ;;  %s3521_s12 = sld [smem:[#allocation3 + $0x30f]] }
  0xe2   :  { %v769_v55 = vadd.f32 %v767_v22, %v763_v41  ;;  %v770_v5 = vadd.f32 %v768_v45, %v764_v13  ;;  %v785_v16 = vmul.f32 %v3274_v8, %v784_v40  ;;  %v786_v62 = vmul.f32 %v3280_v7, %v784_v40 }
  0xe3   :  { %v3405_v63 = vmax.f32 %v753_v54, 0.0  ;;  %v3407_v57 = vmax.f32 %v754_v2, 0.0  ;;  %v790_v11 = vstv %s3371_s14  ;;  %v796_v10 = vstv %s3373_s23  ;;  %s3523_s14 = sld [smem:[#allocation3 + $0x38f]]  ;;  %s3529_s23 = sld [smem:[#allocation8]] }
  0xe4   :  { %v775_v24 = vadd.f32 %v773_v46, %v769_v55  ;;  %v776_v25 = vadd.f32 %v774_v47, %v770_v5  ;;  %v791_v17 = vmul.f32 %v3290_v18, %v790_v11  ;;  %v792_v32 = vmul.f32 %v3296_v9, %v790_v11 }
  0xe5   :  { %4546 = vst [vmem:[#allocation28_spill] sm:$0xff] %v3405_v63  ;;  %4547 = vst [vmem:[#allocation29_spill] sm:$0xff] %v3407_v57  ;;  %v797_v44 = vmul.f32 %v3302_v12, %v796_v10  ;;  %v798_v40 = vmul.f32 %v3308_v21, %v796_v10  ;;  %v802_v1 = vstv %s3381_s24  ;;  %v810_v4 = vstv %s3383_s15  ;;  %s3531_s24 = sld [smem:[#allocation10]] }
  0xe6   :  { %v781_v41 = vadd.f32 %v779_v35, %v775_v24  ;;  %v782_v13 = vadd.f32 %v780_v3, %v776_v25  ;;  %v803_v22 = vmul.f32 %v3320_v27, %v802_v1  ;;  %v804_v45 = vmul.f32 %v3326_v39, %v802_v1  ;;  %s3535_s15 = sld [smem:[#allocation8 + $0x80]] }
  0xe7   :  { %v811_v46 = vmul.f32 %v3210_v26, %v810_v4  ;;  %v812_v47 = vmul.f32 %v3216_v23, %v810_v4  ;;  %v814_v54 = vstv %s3389_s16  ;;  %v818_v2 = vstv %s3391_s17  ;;  %s3537_s16 = sld [smem:[#allocation8 + $0x100]] }
  0xe8   :  { %v787_v55 = vadd.f32 %v785_v16, %v781_v41  ;;  %v788_v5 = vadd.f32 %v786_v62, %v782_v13  ;;  %v819_v35 = vmul.f32 %v3226_v33, %v818_v2  ;;  %v820_v3 = vmul.f32 %v3232_v34, %v818_v2  ;;  %s3541_s17 = sld [smem:[#allocation8 + $0x180]] }
  0xe9   :  { %v815_v11 = vadd.f32 %v814_v54, %v811_v46  ;;  %v816_v10 = vadd.f32 %v814_v54, %v812_v47  ;;  %v824_v24 = vstv %s3399_s1  ;;  %v830_v25 = vstv %s3401_s27  ;;  %s3543_s1 = sld [smem:[#allocation8 + $0x200]] }
  0xea   :  { %v793_v1 = vadd.f32 %v791_v17, %v787_v55  ;;  %v794_v4 = vadd.f32 %v792_v32, %v788_v5  ;;  %v825_v57 = vmul.f32 %v3238_v38, %v824_v24  ;;  %v826_v16 = vmul.f32 %v3244_v0, %v824_v24  ;;  %s3559_s27 = sld [smem:[#allocation8 + $0x280]] }
  0xeb   :  { %v821_v62 = vadd.f32 %v819_v35, %v815_v11  ;;  %v822_v41 = vadd.f32 %v820_v3, %v816_v10  ;;  %v831_v13 = vmul.f32 %v3262_v6, %v830_v25  ;;  %v832_v46 = vmul.f32 %v3268_v56, %v830_v25 }
  0xec   :  { %v799_v47 = vadd.f32 %v797_v44, %v793_v1  ;;  %v800_v54 = vadd.f32 %v798_v40, %v794_v4  ;;  %v836_v2 = vstv %s3413_s28  ;;  %v842_v17 = vstv %s3415_s18  ;;  %s3561_s28 = sld [smem:[#allocation8 + $0x300]] }
  0xed   :  { %v827_v32 = vadd.f32 %v825_v57, %v821_v62  ;;  %v828_v55 = vadd.f32 %v826_v16, %v822_v41  ;;  %v837_v5 = vmul.f32 %v3274_v8, %v836_v2  ;;  %v838_v24 = vmul.f32 %v3280_v7, %v836_v2  ;;  %s3569_s18 = sld [smem:[#allocation8 + $0x380]] }
  0xee   :  { %v805_v35 = vadd.f32 %v803_v22, %v799_v47  ;;  %v806_v3 = vadd.f32 %v804_v45, %v800_v54  ;;  %v843_v11 = vmul.f32 %v3290_v18, %v842_v17  ;;  %v844_v44 = vmul.f32 %v3296_v9, %v842_v17 }
  0xef   :  { %v833_v57 = vadd.f32 %v831_v13, %v827_v32  ;;  %v834_v40 = vadd.f32 %v832_v46, %v828_v55  ;;  %v848_v10 = vstv %s3427_s19  ;;  %v854_v25 = vstv %s3429_s10  ;;  %s3571_s19 = sld [smem:[#allocation8 + $0x400]] }
  0xf0   :  { %v3463_v1 = vmax.f32 %v805_v35, 0.0  ;;  %v3465_v22 = vmax.f32 %v806_v3, 0.0  ;;  %v849_v45 = vmul.f32 %v3302_v12, %v848_v10  ;;  %v850_v4 = vmul.f32 %v3308_v21, %v848_v10  ;;  %s3577_s10 = sld [smem:[#allocation8 + $0x480]] }
  0xf1   :  { %v839_v16 = vadd.f32 %v837_v5, %v833_v57  ;;  %v840_v62 = vadd.f32 %v838_v24, %v834_v40  ;;  %v855_v41 = vmul.f32 %v3320_v27, %v854_v25  ;;  %v856_v47 = vmul.f32 %v3326_v39, %v854_v25 }
  0xf2   :  { %4548 = vst [vmem:[#allocation30_spill] sm:$0xff] %v3463_v1  ;;  %4549 = vst [vmem:[#allocation31_spill] sm:$0xff] %v3465_v22  ;;  %v862_v54 = vstv %s3435_s2  ;;  %v866_v2 = vstv %s3437_s3  ;;  %v870_v13 = vstv %s3441_s5  ;;  %v876_v46 = vstv %s3443_s20  ;;  %s3579_s2 = sld [smem:[#allocation8 + $0x500]] }
  0xf3   :  { %v845_v17 = vadd.f32 %v843_v11, %v839_v16  ;;  %v846_v32 = vadd.f32 %v844_v44, %v840_v62  ;;  %v863_v55 = vmul.f32 %v3210_v26, %v862_v54  ;;  %v864_v35 = vmul.f32 %v3216_v23, %v862_v54  ;;  %s3587_s3 = sld [smem:[#allocation8 + $0x580]] }
  0xf4   :  { %v871_v5 = vmul.f32 %v3226_v33, %v870_v13  ;;  %v872_v24 = vmul.f32 %v3232_v34, %v870_v13  ;;  %v877_v3 = vmul.f32 %v3238_v38, %v876_v46  ;;  %v878_v11 = vmul.f32 %v3244_v0, %v876_v46  ;;  %s3589_s5 = sld [smem:[#allocation8 + $0x600]] }
  0xf5   :  { %v851_v44 = vadd.f32 %v849_v45, %v845_v17  ;;  %v852_v57 = vadd.f32 %v850_v4, %v846_v32  ;;  %v867_v40 = vadd.f32 %v866_v2, %v863_v55  ;;  %v868_v10 = vadd.f32 %v866_v2, %v864_v35  ;;  %s3599_s20 = sld [smem:[#allocation8 + $0x680]] }
  0xf6   :  { %v882_v25 = vstv %s3451_s21  ;;  %v888_v16 = vstv %s3453_s25  ;;  %v894_v62 = vstv %s3457_s26  ;;  %v900_v54 = vstv %s3459_s29  ;;  %s3601_s21 = sld [smem:[#allocation8 + $0x700]]  ;;  %s3611_s26 = sld [smem:[#allocation8 + $0x1]] }
  0xf7   :  { %v857_v22 = vadd.f32 %v855_v41, %v851_v44  ;;  %v858_v1 = vadd.f32 %v856_v47, %v852_v57  ;;  %v873_v63 = vadd.f32 %v871_v5, %v867_v40  ;;  %v874_v13 = vadd.f32 %v872_v24, %v868_v10  ;;  %s3609_s25 = sld [smem:[#allocation8 + $0x780]]  ;;  %s3619_s29 = sld [smem:[#allocation10 + $0x1]] }
  0xf8   :  { %v883_v45 = vmul.f32 %v3262_v6, %v882_v25  ;;  %v884_v4 = vmul.f32 %v3268_v56, %v882_v25  ;;  %v889_v2 = vmul.f32 %v3274_v8, %v888_v16  ;;  %v890_v46 = vmul.f32 %v3280_v7, %v888_v16 }
  0xf9   :  { %v3501_v17 = vmax.f32 %v857_v22, 0.0  ;;  %v3503_v41 = vmax.f32 %v858_v1, 0.0  ;;  %v879_v47 = vadd.f32 %v877_v3, %v873_v63  ;;  %v880_v32 = vadd.f32 %v878_v11, %v874_v13 }
  0xfa   :  { %v895_v55 = vmul.f32 %v3290_v18, %v894_v62  ;;  %v896_v35 = vmul.f32 %v3296_v9, %v894_v62  ;;  %v901_v5 = vmul.f32 %v3302_v12, %v900_v54  ;;  %v902_v24 = vmul.f32 %v3308_v21, %v900_v54 }
  0xfb   :  { %v885_v22 = vadd.f32 %v883_v45, %v879_v47  ;;  %v886_v44 = vadd.f32 %v884_v4, %v880_v32  ;;  %v906_v1 = vstv %s3477_s30  ;;  %v914_v57 = vstv %s3479_s4  ;;  %s3621_s30 = sld [smem:[#allocation8 + $0x81]] }
  0xfc   :  { %v907_v63 = vmul.f32 %v3320_v27, %v906_v1  ;;  %v908_v3 = vmul.f32 %v3326_v39, %v906_v1  ;;  %v915_v11 = vmul.f32 %v3210_v26, %v914_v57  ;;  %v916_v40 = vmul.f32 %v3216_v23, %v914_v57  ;;  %s3629_s4 = sld [smem:[#allocation8 + $0x101]] }
  0xfd   :  { %v891_v10 = vadd.f32 %v889_v2, %v885_v22  ;;  %v892_v25 = vadd.f32 %v890_v46, %v886_v44  ;;  %v918_v16 = vstv %s3485_s6  ;;  %v922_v62 = vstv %s3487_s0  ;;  %s3631_s6 = sld [smem:[#allocation8 + $0x181]] }
  0xfe   :  { %v919_v54 = vadd.f32 %v918_v16, %v915_v11  ;;  %v920_v13 = vadd.f32 %v918_v16, %v916_v40  ;;  %v923_v45 = vmul.f32 %v3226_v33, %v922_v62  ;;  %v924_v4 = vmul.f32 %v3232_v34, %v922_v62  ;;  %s3645_s0 = sld [smem:[#allocation8 + $0x201]] }
  0xff   :  { %v897_v47 = vadd.f32 %v895_v55, %v891_v10  ;;  %v898_v32 = vadd.f32 %v896_v35, %v892_v25  ;;  %v928_v1 = vstv %s3493_s13  ;;  %v934_v26 = vstv %s3495_s11  ;;  %s3647_s13 = sld [smem:[#allocation8 + $0x281]] }
 0x100   :  { %v925_v23 = vadd.f32 %v923_v45, %v919_v54  ;;  %v926_v2 = vadd.f32 %v924_v4, %v920_v13  ;;  %v929_v46 = vmul.f32 %v3238_v38, %v928_v1  ;;  %v930_v22 = vmul.f32 %v3244_v0, %v928_v1  ;;  %s3667_s11 = sld [smem:[#allocation8 + $0x301]] }
 0x101   :  { %v903_v33 = vadd.f32 %v901_v5, %v897_v47  ;;  %v904_v34 = vadd.f32 %v902_v24, %v898_v32  ;;  %v935_v55 = vmul.f32 %v3262_v6, %v934_v26  ;;  %v936_v35 = vmul.f32 %v3268_v56, %v934_v26 }
 0x102   :  { %v931_v44 = vadd.f32 %v929_v46, %v925_v23  ;;  %v932_v38 = vadd.f32 %v930_v22, %v926_v2  ;;  %v940_v57 = vstv %s3509_s7  ;;  %v946_v0 = vstv %s3511_s22  ;;  %s3669_s7 = sld [smem:[#allocation8 + $0x381]] }
 0x103   :  { %v909_v11 = vadd.f32 %v907_v63, %v903_v33  ;;  %v910_v40 = vadd.f32 %v908_v3, %v904_v34  ;;  %v941_v10 = vmul.f32 %v3274_v8, %v940_v57  ;;  %v942_v5 = vmul.f32 %v3280_v7, %v940_v57  ;;  %s3677_s22 = sld [smem:[#allocation8 + $0x401]] }
 0x104   :  { %v937_v24 = vadd.f32 %v935_v55, %v931_v44  ;;  %v938_v6 = vadd.f32 %v936_v35, %v932_v38  ;;  %v947_v56 = vmul.f32 %v3290_v18, %v946_v0  ;;  %v948_v25 = vmul.f32 %v3296_v9, %v946_v0 }
 0x105   :  { %v3551_v16 = vmax.f32 %v909_v11, 0.0  ;;  %v3553_v62 = vmax.f32 %v910_v40, 0.0  ;;  %v952_v54 = vstv %s3521_s12  ;;  %v958_v13 = vstv %s3523_s14  ;;  %s3679_s12 = sld [smem:[#allocation8 + $0x481]] }
 0x106   :  { %v943_v63 = vadd.f32 %v941_v10, %v937_v24  ;;  %v944_v3 = vadd.f32 %v942_v5, %v938_v6  ;;  %v953_v8 = vmul.f32 %v3302_v12, %v952_v54  ;;  %v954_v7 = vmul.f32 %v3308_v21, %v952_v54  ;;  %s3687_s14 = sld [smem:[#allocation8 + $0x501]] }
 0x107   :  { %v959_v18 = vmul.f32 %v3320_v27, %v958_v13  ;;  %v960_v9 = vmul.f32 %v3326_v39, %v958_v13  ;;  %v966_v45 = vstv %s3529_s23  ;;  %v970_v4 = vstv %s3531_s24  ;;  %s3689_s23 = sld [smem:[#allocation8 + $0x581]] }
 0x108   :  { %v949_v47 = vadd.f32 %v947_v56, %v943_v63  ;;  %v950_v32 = vadd.f32 %v948_v25, %v944_v3  ;;  %v967_v1 = vmul.f32 %v966_v45, %v2817_v42  ;;  %v968_v12 = vmul.f32 %v966_v45, %v2819_v43  ;;  %s3697_s24 = sld [smem:[#allocation8 + $0x601]] }
 0x109   :  { %v974_v21 = vstv %s3535_s15  ;;  %v980_v26 = vstv %s3537_s16  ;;  %v986_v23 = vstv %s3541_s17  ;;  %v992_v2 = vstv %s3543_s1  ;;  %s3699_s15 = sld [smem:[#allocation8 + $0x681]]  ;;  %s3717_s1 = sld [smem:[#allocation8 + $0x2]] }
 0x10a   :  { %v955_v46 = vadd.f32 %v953_v8, %v949_v47  ;;  %v956_v27 = vadd.f32 %v954_v7, %v950_v32  ;;  %v971_v22 = vadd.f32 %v970_v4, %v967_v1  ;;  %v972_v39 = vadd.f32 %v970_v4, %v968_v12  ;;  %s3707_s16 = sld [smem:[#allocation8 + $0x701]] }
 0x10b   :  { %v975_v33 = vmul.f32 %v974_v21, %v2853_v19  ;;  %v976_v34 = vmul.f32 %v974_v21, %v2855_v20  ;;  %v981_v55 = vmul.f32 %v980_v26, %v2907_v28  ;;  %v982_v35 = vmul.f32 %v980_v26, %v2909_v29  ;;  %s3709_s17 = sld [smem:[#allocation8 + $0x781]] }
 0x10c   :  { %v961_v44 = vadd.f32 %v959_v18, %v955_v46  ;;  %v962_v38 = vadd.f32 %v960_v9, %v956_v27  ;;  %v987_v57 = vmul.f32 %v986_v23, %v2949_v14  ;;  %v988_v0 = vmul.f32 %v986_v23, %v2951_v15 }
 0x10d   :  { %v977_v11 = vadd.f32 %v975_v33, %v971_v22  ;;  %v978_v40 = vadd.f32 %v976_v34, %v972_v39  ;;  %v993_v10 = vmul.f32 %v992_v2, %v3007_v36  ;;  %v994_v5 = vmul.f32 %v992_v2, %v3009_v37 }
 0x10e   :  { %v3593_v24 = vmax.f32 %v961_v44, 0.0  ;;  %v3595_v6 = vmax.f32 %v962_v38, 0.0  ;;  %v998_v56 = vstv %s3559_s27  ;;  %v1004_v25 = vstv %s3561_s28  ;;  %v4550_v44 = vld [vmem:[#allocation28_spill] sm:$0xff]  ;;  %s3719_s27 = sld [smem:[#allocation10 + $0x2]] }
 0x10f   :  { %v983_v54 = vadd.f32 %v981_v55, %v977_v11  ;;  %v984_v13 = vadd.f32 %v982_v35, %v978_v40  ;;  %v999_v63 = vmul.f32 %v998_v56, %v3045_v30  ;;  %v1000_v3 = vmul.f32 %v998_v56, %v3047_v31  ;;  %v4552_v11 = vld [vmem:[#allocation30_spill] sm:$0xff]  ;;  %s3723_s28 = sld [smem:[#allocation8 + $0x82]] }
 0x110   :  { %v1005_v8 = vmul.f32 %v1004_v25, %v3095_v50  ;;  %v1006_v7 = vmul.f32 %v1004_v25, %v3097_v51  ;;  %v1010_v18 = vstv %s3569_s18  ;;  %v1016_v9 = vstv %s3571_s19  ;;  %s3725_s18 = sld [smem:[#allocation8 + $0x102]] }
 0x111   :  { %v989_v45 = vadd.f32 %v987_v57, %v983_v54  ;;  %v990_v4 = vadd.f32 %v988_v0, %v984_v13  ;;  %v1011_v47 = vmul.f32 %v1010_v18, %v3137_v52  ;;  %v1012_v32 = vmul.f32 %v1010_v18, %v3139_v53  ;;  %v4551_v57 = vld [vmem:[#allocation29_spill] sm:$0xff]  ;;  %s3731_s19 = sld [smem:[#allocation8 + $0x182]] }
 0x112   :  { %v1017_v1 = vmul.f32 %v1016_v9, %v3195_v60  ;;  %v1018_v12 = vmul.f32 %v1016_v9, %v3197_v61  ;;  %v1022_v21 = vstv %s3577_s10  ;;  %v1028_v26 = vstv %s3579_s2  ;;  %s3733_s10 = sld [smem:[#allocation8 + $0x202]] }
 0x113   :  { %v995_v23 = vadd.f32 %v993_v10, %v989_v45  ;;  %v996_v2 = vadd.f32 %v994_v5, %v990_v4  ;;  %v1023_v46 = vmul.f32 %v1022_v21, %v3283_v58  ;;  %v1024_v27 = vmul.f32 %v1022_v21, %v3285_v59  ;;  %v4553_v10 = vld [vmem:[#allocation31_spill] sm:$0xff]  ;;  %s3751_s2 = sld [smem:[#allocation8 + $0x282]] }
 0x114   :  { %v1029_v22 = vmul.f32 %v1028_v26, %v3363_v48  ;;  %v1030_v39 = vmul.f32 %v1028_v26, %v3365_v49  ;;  %v1034_v33 = vstv %s3587_s3  ;;  %v1040_v34 = vstv %s3589_s5  ;;  %s3753_s3 = sld [smem:[#allocation8 + $0x302]] }
 0x115   :  { %v1001_v55 = vadd.f32 %v999_v63, %v995_v23  ;;  %v1002_v35 = vadd.f32 %v1000_v3, %v996_v2  ;;  %v1035_v38 = vmul.f32 %v1034_v33, %v4550_v44  ;;  %v1036_v0 = vmul.f32 %v1034_v33, %v4551_v57  ;;  %s3765_s5 = sld [smem:[#allocation8 + $0x382]] }
 0x116   :  { %v1041_v40 = vmul.f32 %v1040_v34, %v4552_v11  ;;  %v1042_v5 = vmul.f32 %v1040_v34, %v4553_v10  ;;  %v1046_v56 = vstv %s3599_s20  ;;  %v1052_v25 = vstv %s3601_s21  ;;  %s3767_s20 = sld [smem:[#allocation8 + $0x402]] }
 0x117   :  { %v1007_v54 = vadd.f32 %v1005_v8, %v1001_v55  ;;  %v1008_v13 = vadd.f32 %v1006_v7, %v1002_v35  ;;  %v3640_v18 = vmul.f32 %v1046_v56, %v3501_v17  ;;  %v3643_v63 = vmul.f32 %v1046_v56, %v3503_v41  ;;  %s3775_s21 = sld [smem:[#allocation8 + $0x482]] }
 0x118   :  { %v3650_v3 = vmul.f32 %v1052_v25, %v3551_v16  ;;  %v3653_v9 = vmul.f32 %v1052_v25, %v3553_v62  ;;  %v1058_v8 = vstv %s3609_s25  ;;  %v1066_v45 = vstv %s3611_s26  ;;  %s3777_s25 = sld [smem:[#allocation8 + $0x502]] }
 0x119   :  { %v1013_v7 = vadd.f32 %v1011_v47, %v1007_v54  ;;  %v1014_v4 = vadd.f32 %v1012_v32, %v1008_v13  ;;  %v3658_v21 = vmul.f32 %v1058_v8, %v3593_v24  ;;  %v3661_v26 = vmul.f32 %v1058_v8, %v3595_v6  ;;  %s3783_s26 = sld [smem:[#allocation8 + $0x582]] }
 0x11a   :  { %v1067_v23 = vmul.f32 %v1066_v45, %v2817_v42  ;;  %v1068_v2 = vmul.f32 %v1066_v45, %v2819_v43  ;;  %v1070_v33 = vstv %s3619_s29  ;;  %v1074_v34 = vstv %s3621_s30  ;;  %s3785_s29 = sld [smem:[#allocation8 + $0x602]] }
 0x11b   :  { %v1019_v47 = vadd.f32 %v1017_v1, %v1013_v7  ;;  %v1020_v55 = vadd.f32 %v1018_v12, %v1014_v4  ;;  %v1075_v32 = vmul.f32 %v1074_v34, %v2853_v19  ;;  %v1076_v35 = vmul.f32 %v1074_v34, %v2855_v20  ;;  %s3791_s30 = sld [smem:[#allocation8 + $0x682]] }
 0x11c   :  { %v1071_v56 = vadd.f32 %v1070_v33, %v1067_v23  ;;  %v1072_v25 = vadd.f32 %v1070_v33, %v1068_v2  ;;  %v1080_v54 = vstv %s3629_s4  ;;  %v1086_v13 = vstv %s3631_s6  ;;  %s3793_s4 = sld [smem:[#allocation8 + $0x702]] }
 0x11d   :  { %v1025_v8 = vadd.f32 %v1023_v46, %v1019_v47  ;;  %v1026_v45 = vadd.f32 %v1024_v27, %v1020_v55  ;;  %v1081_v43 = vmul.f32 %v1080_v54, %v2907_v28  ;;  %v1082_v42 = vmul.f32 %v1080_v54, %v2909_v29  ;;  %s3799_s6 = sld [smem:[#allocation8 + $0x782]] }
 0x11e   :  { %v1077_v1 = vadd.f32 %v1075_v32, %v1071_v56  ;;  %v1078_v12 = vadd.f32 %v1076_v35, %v1072_v25  ;;  %v1087_v7 = vmul.f32 %v1086_v13, %v2949_v14  ;;  %v1088_v4 = vmul.f32 %v1086_v13, %v2951_v15 }
 0x11f   :  { %v1031_v23 = vadd.f32 %v1029_v22, %v1025_v8  ;;  %v1032_v2 = vadd.f32 %v1030_v39, %v1026_v45  ;;  %v1092_v46 = vstv %s3645_s0  ;;  %v1098_v27 = vstv %s3647_s13  ;;  %s3801_s0 = sld [smem:[#allocation8 + $0x3]] }
 0x120   :  { %v1083_v33 = vadd.f32 %v1081_v43, %v1077_v1  ;;  %v1084_v34 = vadd.f32 %v1082_v42, %v1078_v12  ;;  %v1093_v47 = vmul.f32 %v1092_v46, %v3007_v36  ;;  %v1094_v55 = vmul.f32 %v1092_v46, %v3009_v37  ;;  %s3811_s13 = sld [smem:[#allocation10 + $0x3]] }
 0x121   :  { %v1037_v32 = vadd.f32 %v1035_v38, %v1031_v23  ;;  %v1038_v35 = vadd.f32 %v1036_v0, %v1032_v2  ;;  %v1099_v56 = vmul.f32 %v1098_v27, %v3045_v30  ;;  %v1100_v22 = vmul.f32 %v1098_v27, %v3047_v31 }
 0x122   :  { %v1089_v39 = vadd.f32 %v1087_v7, %v1083_v33  ;;  %v1090_v25 = vadd.f32 %v1088_v4, %v1084_v34  ;;  %v1104_v43 = vstv %s3667_s11  ;;  %v1110_v42 = vstv %s3669_s7  ;;  %s3813_s11 = sld [smem:[#allocation8 + $0x83]] }
 0x123   :  { %v1043_v54 = vadd.f32 %v1041_v40, %v1037_v32  ;;  %v1044_v13 = vadd.f32 %v1042_v5, %v1038_v35  ;;  %v1105_v8 = vmul.f32 %v1104_v43, %v3095_v50  ;;  %v1106_v45 = vmul.f32 %v1104_v43, %v3097_v51  ;;  %s3821_s7 = sld [smem:[#allocation8 + $0x103]] }
 0x124   :  { %v1095_v38 = vadd.f32 %v1093_v47, %v1089_v39  ;;  %v1096_v0 = vadd.f32 %v1094_v55, %v1090_v25  ;;  %v1111_v1 = vmul.f32 %v1110_v42, %v3137_v52  ;;  %v1112_v12 = vmul.f32 %v1110_v42, %v3139_v53 }
 0x125   :  { %v1049_v7 = vadd.f32 %v3640_v18, %v1043_v54  ;;  %v1050_v4 = vadd.f32 %v3643_v63, %v1044_v13  ;;  %v1116_v40 = vstv %s3677_s22  ;;  %v1122_v5 = vstv %s3679_s12  ;;  %s3823_s22 = sld [smem:[#allocation8 + $0x183]] }
 0x126   :  { %v1101_v23 = vadd.f32 %v1099_v56, %v1095_v38  ;;  %v1102_v2 = vadd.f32 %v1100_v22, %v1096_v0  ;;  %v1117_v46 = vmul.f32 %v1116_v40, %v3195_v60  ;;  %v1118_v27 = vmul.f32 %v1116_v40, %v3197_v61  ;;  %s3833_s12 = sld [smem:[#allocation8 + $0x203]] }
 0x127   :  { %v1055_v33 = vadd.f32 %v3650_v3, %v1049_v7  ;;  %v1056_v18 = vadd.f32 %v3653_v9, %v1050_v4  ;;  %v1123_v63 = vmul.f32 %v1122_v5, %v3283_v58  ;;  %v1124_v34 = vmul.f32 %v1122_v5, %v3285_v59 }
 0x128   :  { %v1107_v47 = vadd.f32 %v1105_v8, %v1101_v23  ;;  %v1108_v55 = vadd.f32 %v1106_v45, %v1102_v2  ;;  %v1128_v32 = vstv %s3687_s14  ;;  %v1134_v35 = vstv %s3689_s23  ;;  %s3835_s14 = sld [smem:[#allocation8 + $0x283]] }
 0x129   :  { %v1061_v3 = vadd.f32 %v3658_v21, %v1055_v33  ;;  %v1062_v9 = vadd.f32 %v3661_v26, %v1056_v18  ;;  %v1129_v56 = vmul.f32 %v1128_v32, %v3363_v48  ;;  %v1130_v22 = vmul.f32 %v1128_v32, %v3365_v49  ;;  %s3851_s23 = sld [smem:[#allocation8 + $0x303]] }
 0x12a   :  { %v1113_v39 = vadd.f32 %v1111_v1, %v1107_v47  ;;  %v1114_v25 = vadd.f32 %v1112_v12, %v1108_v55  ;;  %v1135_v43 = vmul.f32 %v1134_v35, %v4550_v44  ;;  %v1136_v42 = vmul.f32 %v1134_v35, %v4551_v57 }
 0x12b   :  { %v3737_v54 = vmax.f32 %v1061_v3, 0.0  ;;  %v3739_v21 = vmax.f32 %v1062_v9, 0.0  ;;  %v1140_v26 = vstv %s3697_s24  ;;  %v1146_v13 = vstv %s3699_s15  ;;  %s3853_s24 = sld [smem:[#allocation8 + $0x383]] }
 0x12c   :  { %v1119_v8 = vadd.f32 %v1117_v46, %v1113_v39  ;;  %v1120_v45 = vadd.f32 %v1118_v27, %v1114_v25  ;;  %v1141_v38 = vmul.f32 %v1140_v26, %v4552_v11  ;;  %v1142_v0 = vmul.f32 %v1140_v26, %v4553_v10  ;;  %s3861_s15 = sld [smem:[#allocation8 + $0x403]] }
 0x12d   :  { %4554 = vst [vmem:[#allocation28_spill] sm:$0xff] %v3737_v54  ;;  %4555 = vst [vmem:[#allocation29_spill] sm:$0xff] %v3739_v21  ;;  %v1147_v1 = vmul.f32 %v1146_v13, %v3501_v17  ;;  %v1148_v12 = vmul.f32 %v1146_v13, %v3503_v41  ;;  %v1152_v7 = vstv %s3707_s16  ;;  %v1158_v4 = vstv %s3709_s17  ;;  %s3863_s16 = sld [smem:[#allocation8 + $0x483]] }
 0x12e   :  { %v1125_v40 = vadd.f32 %v1123_v63, %v1119_v8  ;;  %v1126_v5 = vadd.f32 %v1124_v34, %v1120_v45  ;;  %v1153_v23 = vmul.f32 %v1152_v7, %v3551_v16  ;;  %v1154_v2 = vmul.f32 %v1152_v7, %v3553_v62  ;;  %v4556_v63 = vld [vmem:[#allocation23_spill] sm:$0xff]  ;;  %v4557_v34 = vld [vmem:[#allocation24_spill] sm:$0xff]  ;;  %s3871_s17 = sld [smem:[#allocation8 + $0x503]] }
 0x12f   :  { %v1159_v46 = vmul.f32 %v1158_v4, %v3593_v24  ;;  %v1160_v27 = vmul.f32 %v1158_v4, %v3595_v6  ;;  %v1166_v33 = vstv %s3717_s1  ;;  %v1170_v18 = vstv %s3719_s27  ;;  %s3873_s1 = sld [smem:[#allocation8 + $0x583]] }
 0x130   :  { %v1131_v47 = vadd.f32 %v1129_v56, %v1125_v40  ;;  %v1132_v55 = vadd.f32 %v1130_v22, %v1126_v5  ;;  %v1167_v32 = vmul.f32 %v1166_v33, %v4556_v63  ;;  %v1168_v35 = vmul.f32 %v1166_v33, %v4557_v34  ;;  %s3879_s27 = sld [smem:[#allocation8 + $0x603]] }
 0x131   :  { %v1174_v3 = vstv %s3723_s28  ;;  %v1180_v9 = vstv %s3725_s18  ;;  %v1186_v39 = vstv %s3731_s19  ;;  %v1192_v25 = vstv %s3733_s10  ;;  %s3881_s28 = sld [smem:[#allocation8 + $0x683]]  ;;  %s3895_s10 = sld [smem:[#allocation8 + $0x4]] }
 0x132   :  { %v1137_v26 = vadd.f32 %v1135_v43, %v1131_v47  ;;  %v1138_v13 = vadd.f32 %v1136_v42, %v1132_v55  ;;  %v1171_v8 = vadd.f32 %v1170_v18, %v1167_v32  ;;  %v1172_v45 = vadd.f32 %v1170_v18, %v1168_v35  ;;  %s3885_s18 = sld [smem:[#allocation8 + $0x703]] }
 0x133   :  { %v1175_v7 = vmul.f32 %v1174_v3, %v2853_v19  ;;  %v1176_v56 = vmul.f32 %v1174_v3, %v2855_v20  ;;  %v1181_v22 = vmul.f32 %v1180_v9, %v2907_v28  ;;  %v1182_v4 = vmul.f32 %v1180_v9, %v2909_v29  ;;  %s3887_s19 = sld [smem:[#allocation8 + $0x783]] }
 0x134   :  { %v1143_v40 = vadd.f32 %v1141_v38, %v1137_v26  ;;  %v1144_v5 = vadd.f32 %v1142_v0, %v1138_v13  ;;  %v1187_v33 = vmul.f32 %v1186_v39, %v2949_v14  ;;  %v1188_v21 = vmul.f32 %v1186_v39, %v2951_v15 }
 0x135   :  { %v1177_v43 = vadd.f32 %v1175_v7, %v1171_v8  ;;  %v1178_v42 = vadd.f32 %v1176_v56, %v1172_v45  ;;  %v1193_v18 = vmul.f32 %v1192_v25, %v3007_v36  ;;  %v1194_v47 = vmul.f32 %v1192_v25, %v3009_v37 }
 0x136   :  { %v1149_v55 = vadd.f32 %v1147_v1, %v1143_v40  ;;  %v1150_v32 = vadd.f32 %v1148_v12, %v1144_v5  ;;  %v1198_v35 = vstv %s3751_s2  ;;  %v1204_v38 = vstv %s3753_s3  ;;  %s3897_s2 = sld [smem:[#allocation10 + $0x4]] }
 0x137   :  { %v1183_v0 = vadd.f32 %v1181_v22, %v1177_v43  ;;  %v1184_v3 = vadd.f32 %v1182_v4, %v1178_v42  ;;  %v1199_v9 = vmul.f32 %v1198_v35, %v3045_v30  ;;  %v1200_v39 = vmul.f32 %v1198_v35, %v3047_v31  ;;  %s3903_s3 = sld [smem:[#allocation8 + $0x84]] }
 0x138   :  { %v1155_v26 = vadd.f32 %v1153_v23, %v1149_v55  ;;  %v1156_v13 = vadd.f32 %v1154_v2, %v1150_v32  ;;  %v1205_v25 = vmul.f32 %v1204_v38, %v3095_v50  ;;  %v1206_v1 = vmul.f32 %v1204_v38, %v3097_v51 }
 0x139   :  { %v1189_v12 = vadd.f32 %v1187_v33, %v1183_v0  ;;  %v1190_v8 = vadd.f32 %v1188_v21, %v1184_v3  ;;  %v1210_v45 = vstv %s3765_s5  ;;  %v1216_v7 = vstv %s3767_s20  ;;  %s3905_s5 = sld [smem:[#allocation8 + $0x104]] }
 0x13a   :  { %v1161_v56 = vadd.f32 %v1159_v46, %v1155_v26  ;;  %v1162_v22 = vadd.f32 %v1160_v27, %v1156_v13  ;;  %v1211_v4 = vmul.f32 %v1210_v45, %v3137_v52  ;;  %v1212_v23 = vmul.f32 %v1210_v45, %v3139_v53  ;;  %s3917_s20 = sld [smem:[#allocation8 + $0x184]] }
 0x13b   :  { %v1195_v2 = vadd.f32 %v1193_v18, %v1189_v12  ;;  %v1196_v40 = vadd.f32 %v1194_v47, %v1190_v8  ;;  %v1217_v5 = vmul.f32 %v1216_v7, %v3195_v60  ;;  %v1218_v21 = vmul.f32 %v1216_v7, %v3197_v61 }
 0x13c   :  { %v3805_v33 = vmax.f32 %v1161_v56, 0.0  ;;  %v3807_v46 = vmax.f32 %v1162_v22, 0.0  ;;  %v1222_v27 = vstv %s3775_s21  ;;  %v1228_v43 = vstv %s3777_s25  ;;  %s3919_s21 = sld [smem:[#allocation8 + $0x204]] }
 0x13d   :  { %v1201_v42 = vadd.f32 %v1199_v9, %v1195_v2  ;;  %v1202_v18 = vadd.f32 %v1200_v39, %v1196_v40  ;;  %v1223_v47 = vmul.f32 %v1222_v27, %v3283_v58  ;;  %v1224_v55 = vmul.f32 %v1222_v27, %v3285_v59  ;;  %s3925_s25 = sld [smem:[#allocation8 + $0x284]] }
 0x13e   :  { %4558 = vst [vmem:[#allocation30_spill] sm:$0xff] %v3805_v33  ;;  %4559 = vst [vmem:[#allocation31_spill] sm:$0xff] %v3807_v46  ;;  %v1229_v32 = vmul.f32 %v1228_v43, %v3363_v48  ;;  %v1230_v35 = vmul.f32 %v1228_v43, %v3365_v49  ;;  %v1234_v38 = vstv %s3783_s26  ;;  %v1240_v0 = vstv %s3785_s29  ;;  %s3927_s26 = sld [smem:[#allocation8 + $0x304]] }
 0x13f   :  { %v1207_v3 = vadd.f32 %v1205_v25, %v1201_v42  ;;  %v1208_v9 = vadd.f32 %v1206_v1, %v1202_v18  ;;  %v1235_v39 = vmul.f32 %v1234_v38, %v4550_v44  ;;  %v1236_v26 = vmul.f32 %v1234_v38, %v4551_v57  ;;  %s3943_s29 = sld [smem:[#allocation8 + $0x384]] }
 0x140   :  { %v1241_v13 = vmul.f32 %v1240_v0, %v4552_v11  ;;  %v1242_v12 = vmul.f32 %v1240_v0, %v4553_v10  ;;  %v1246_v8 = vstv %s3791_s30  ;;  %v1252_v45 = vstv %s3793_s4  ;;  %s3945_s30 = sld [smem:[#allocation8 + $0x404]] }
 0x141   :  { %v1213_v7 = vadd.f32 %v1211_v4, %v1207_v3  ;;  %v1214_v56 = vadd.f32 %v1212_v23, %v1208_v9  ;;  %v1247_v22 = vmul.f32 %v1246_v8, %v3501_v17  ;;  %v1248_v25 = vmul.f32 %v1246_v8, %v3503_v41  ;;  %s3951_s4 = sld [smem:[#allocation8 + $0x484]] }
 0x142   :  { %v1253_v1 = vmul.f32 %v1252_v45, %v3551_v16  ;;  %v1254_v2 = vmul.f32 %v1252_v45, %v3553_v62  ;;  %v1258_v40 = vstv %s3799_s6  ;;  %v1266_v27 = vstv %s3801_s0  ;;  %s3953_s6 = sld [smem:[#allocation8 + $0x504]] }
 0x143   :  { %v1219_v43 = vadd.f32 %v1217_v5, %v1213_v7  ;;  %v1220_v4 = vadd.f32 %v1218_v21, %v1214_v56  ;;  %v3842_v23 = vmul.f32 %v1258_v40, %v3593_v24  ;;  %v3845_v42 = vmul.f32 %v1258_v40, %v3595_v6  ;;  %s3963_s0 = sld [smem:[#allocation8 + $0x584]] }
 0x144   :  { %v1267_v18 = vmul.f32 %v1266_v27, %v4556_v63  ;;  %v1268_v38 = vmul.f32 %v1266_v27, %v4557_v34  ;;  %v1270_v0 = vstv %s3811_s13  ;;  %v1274_v3 = vstv %s3813_s11  ;;  %s3965_s13 = sld [smem:[#allocation8 + $0x604]] }
 0x145   :  { %v1225_v5 = vadd.f32 %v1223_v47, %v1219_v43  ;;  %v1226_v9 = vadd.f32 %v1224_v55, %v1220_v4  ;;  %v1275_v21 = vmul.f32 %v1274_v3, %v2853_v19  ;;  %v1276_v8 = vmul.f32 %v1274_v3, %v2855_v20  ;;  %s3971_s11 = sld [smem:[#allocation8 + $0x684]] }
 0x146   :  { %v1271_v45 = vadd.f32 %v1270_v0, %v1267_v18  ;;  %v1272_v7 = vadd.f32 %v1270_v0, %v1268_v38  ;;  %v1280_v56 = vstv %s3821_s7  ;;  %v1286_v40 = vstv %s3823_s22  ;;  %s3973_s7 = sld [smem:[#allocation8 + $0x704]] }
 0x147   :  { %v1231_v46 = vadd.f32 %v1229_v32, %v1225_v5  ;;  %v1232_v27 = vadd.f32 %v1230_v35, %v1226_v9  ;;  %v1281_v33 = vmul.f32 %v1280_v56, %v2907_v28  ;;  %v1282_v54 = vmul.f32 %v1280_v56, %v2909_v29  ;;  %s3979_s22 = sld [smem:[#allocation8 + $0x784]] }
 0x148   :  { %v1277_v47 = vadd.f32 %v1275_v21, %v1271_v45  ;;  %v1278_v55 = vadd.f32 %v1276_v8, %v1272_v7  ;;  %v1287_v43 = vmul.f32 %v1286_v40, %v2949_v14  ;;  %v1288_v4 = vmul.f32 %v1286_v40, %v2951_v15 }
 0x149   :  { %v1237_v18 = vadd.f32 %v1235_v39, %v1231_v46  ;;  %v1238_v38 = vadd.f32 %v1236_v26, %v1232_v27  ;;  %v1292_v32 = vstv %s3833_s12  ;;  %v1298_v35 = vstv %s3835_s14  ;;  %s3981_s12 = sld [smem:[#allocation8 + $0x5]] }
 0x14a   :  { %v1283_v0 = vadd.f32 %v1281_v33, %v1277_v47  ;;  %v1284_v3 = vadd.f32 %v1282_v54, %v1278_v55  ;;  %v1293_v5 = vmul.f32 %v1292_v32, %v3007_v36  ;;  %v1294_v9 = vmul.f32 %v1292_v32, %v3009_v37  ;;  %s3991_s14 = sld [smem:[#allocation10 + $0x5]] }
 0x14b   :  { %v1243_v21 = vadd.f32 %v1241_v13, %v1237_v18  ;;  %v1244_v8 = vadd.f32 %v1242_v12, %v1238_v38  ;;  %v1299_v45 = vmul.f32 %v1298_v35, %v3045_v30  ;;  %v1300_v46 = vmul.f32 %v1298_v35, %v3047_v31 }
 0x14c   :  { %v1289_v39 = vadd.f32 %v1287_v43, %v1283_v0  ;;  %v1290_v26 = vadd.f32 %v1288_v4, %v1284_v3  ;;  %v1304_v7 = vstv %s3851_s23  ;;  %v1310_v33 = vstv %s3853_s24  ;;  %s3993_s23 = sld [smem:[#allocation8 + $0x85]] }
 0x14d   :  { %v1249_v54 = vadd.f32 %v1247_v22, %v1243_v21  ;;  %v1250_v56 = vadd.f32 %v1248_v25, %v1244_v8  ;;  %v1305_v40 = vmul.f32 %v1304_v7, %v3095_v50  ;;  %v1306_v13 = vmul.f32 %v1304_v7, %v3097_v51  ;;  %s4001_s24 = sld [smem:[#allocation8 + $0x105]] }
 0x14e   :  { %v1295_v12 = vadd.f32 %v1293_v5, %v1289_v39  ;;  %v1296_v27 = vadd.f32 %v1294_v9, %v1290_v26  ;;  %v1311_v47 = vmul.f32 %v1310_v33, %v3137_v52  ;;  %v1312_v55 = vmul.f32 %v1310_v33, %v3139_v53 }
 0x14f   :  { %v1255_v43 = vadd.f32 %v1253_v1, %v1249_v54  ;;  %v1256_v4 = vadd.f32 %v1254_v2, %v1250_v56  ;;  %v1316_v18 = vstv %s3861_s15  ;;  %v1322_v22 = vstv %s3863_s16  ;;  %s4003_s15 = sld [smem:[#allocation8 + $0x185]] }
 0x150   :  { %v1301_v25 = vadd.f32 %v1299_v45, %v1295_v12  ;;  %v1302_v38 = vadd.f32 %v1300_v46, %v1296_v27  ;;  %v1317_v32 = vmul.f32 %v1316_v18, %v3195_v60  ;;  %v1318_v35 = vmul.f32 %v1316_v18, %v3197_v61  ;;  %s4015_s16 = sld [smem:[#allocation8 + $0x205]] }
 0x151   :  { %v1261_v0 = vadd.f32 %v3842_v23, %v1255_v43  ;;  %v1262_v3 = vadd.f32 %v3845_v42, %v1256_v4  ;;  %v1323_v1 = vmul.f32 %v1322_v22, %v3283_v58  ;;  %v1324_v2 = vmul.f32 %v1322_v22, %v3285_v59 }
 0x152   :  { %v1307_v5 = vadd.f32 %v1305_v40, %v1301_v25  ;;  %v1308_v9 = vadd.f32 %v1306_v13, %v1302_v38  ;;  %v1328_v21 = vstv %s3871_s17  ;;  %v1334_v8 = vstv %s3873_s1  ;;  %s4017_s17 = sld [smem:[#allocation8 + $0x285]] }
 0x153   :  { %v3909_v45 = vmax.f32 %v1261_v0, 0.0  ;;  %v3911_v23 = vmax.f32 %v1262_v3, 0.0  ;;  %v1329_v42 = vmul.f32 %v1328_v21, %v3363_v48  ;;  %v1330_v46 = vmul.f32 %v1328_v21, %v3365_v49  ;;  %s4027_s1 = sld [smem:[#allocation8 + $0x305]] }
 0x154   :  { %v1313_v39 = vadd.f32 %v1311_v47, %v1307_v5  ;;  %v1314_v26 = vadd.f32 %v1312_v55, %v1308_v9  ;;  %v1335_v7 = vmul.f32 %v1334_v8, %v4550_v44  ;;  %v1336_v33 = vmul.f32 %v1334_v8, %v4551_v57 }
 0x155   :  { %4560 = vst [vmem:[#allocation23_spill] sm:$0xff] %v3909_v45  ;;  %4561 = vst [vmem:[#allocation24_spill] sm:$0xff] %v3911_v23  ;;  %v1340_v54 = vstv %s3879_s27  ;;  %v1346_v56 = vstv %s3881_s28  ;;  %v1352_v40 = vstv %s3885_s18  ;;  %v1358_v13 = vstv %s3887_s19  ;;  %s4029_s27 = sld [smem:[#allocation8 + $0x385]] }
 0x156   :  { %v1319_v12 = vadd.f32 %v1317_v32, %v1313_v39  ;;  %v1320_v27 = vadd.f32 %v1318_v35, %v1314_v26  ;;  %v1341_v47 = vmul.f32 %v1340_v54, %v4552_v11  ;;  %v1342_v55 = vmul.f32 %v1340_v54, %v4553_v10  ;;  %s4037_s28 = sld [smem:[#allocation8 + $0x405]] }
 0x157   :  { %v1347_v43 = vmul.f32 %v1346_v56, %v3501_v17  ;;  %v1348_v4 = vmul.f32 %v1346_v56, %v3503_v41  ;;  %v1353_v18 = vmul.f32 %v1352_v40, %v3551_v16  ;;  %v1354_v22 = vmul.f32 %v1352_v40, %v3553_v62  ;;  %s4039_s18 = sld [smem:[#allocation8 + $0x485]] }
 0x158   :  { %v1325_v25 = vadd.f32 %v1323_v1, %v1319_v12  ;;  %v1326_v38 = vadd.f32 %v1324_v2, %v1320_v27  ;;  %v1359_v0 = vmul.f32 %v1358_v13, %v3593_v24  ;;  %v1360_v3 = vmul.f32 %v1358_v13, %v3595_v6  ;;  %s4047_s19 = sld [smem:[#allocation8 + $0x505]] }
 0x159   :  { %v1366_v32 = vstv %s3895_s10  ;;  %v1370_v35 = vstv %s3897_s2  ;;  %v1374_v5 = vstv %s3903_s3  ;;  %v1380_v9 = vstv %s3905_s5  ;;  %s4049_s10 = sld [smem:[#allocation8 + $0x585]] }
 0x15a   :  { %v1331_v21 = vadd.f32 %v1329_v42, %v1325_v25  ;;  %v1332_v8 = vadd.f32 %v1330_v46, %v1326_v38  ;;  %v1367_v39 = vmul.f32 %v1366_v32, %v4556_v63  ;;  %v1368_v26 = vmul.f32 %v1366_v32, %v4557_v34  ;;  %s4055_s2 = sld [smem:[#allocation8 + $0x605]] }
 0x15b   :  { %v1375_v1 = vmul.f32 %v1374_v5, %v2853_v19  ;;  %v1376_v2 = vmul.f32 %v1374_v5, %v2855_v20  ;;  %v1381_v54 = vmul.f32 %v1380_v9, %v2907_v28  ;;  %v1382_v42 = vmul.f32 %v1380_v9, %v2909_v29  ;;  %s4057_s3 = sld [smem:[#allocation8 + $0x685]] }
 0x15c   :  { %v1337_v46 = vadd.f32 %v1335_v7, %v1331_v21  ;;  %v1338_v56 = vadd.f32 %v1336_v33, %v1332_v8  ;;  %v1371_v40 = vadd.f32 %v1370_v35, %v1367_v39  ;;  %v1372_v13 = vadd.f32 %v1370_v35, %v1368_v26  ;;  %s4063_s5 = sld [smem:[#allocation8 + $0x705]] }
 0x15d   :  { %v1386_v12 = vstv %s3917_s20  ;;  %v1392_v27 = vstv %s3919_s21  ;;  %v1398_v25 = vstv %s3925_s25  ;;  %v1404_v38 = vstv %s3927_s26  ;;  %s4065_s20 = sld [smem:[#allocation8 + $0x785]]  ;;  %s4071_s21 = sld [smem:[#allocation8 + $0x6]] }
 0x15e   :  { %v1343_v32 = vadd.f32 %v1341_v47, %v1337_v46  ;;  %v1344_v23 = vadd.f32 %v1342_v55, %v1338_v56  ;;  %v1377_v45 = vadd.f32 %v1375_v1, %v1371_v40  ;;  %v1378_v5 = vadd.f32 %v1376_v2, %v1372_v13  ;;  %s4073_s25 = sld [smem:[#allocation10 + $0x6]] }
 0x15f   :  { %v1387_v28 = vmul.f32 %v1386_v12, %v2949_v14  ;;  %v1388_v9 = vmul.f32 %v1386_v12, %v2951_v15  ;;  %v1393_v29 = vmul.f32 %v1392_v27, %v3007_v36  ;;  %v1394_v20 = vmul.f32 %v1392_v27, %v3009_v37  ;;  %s4077_s26 = sld [smem:[#allocation8 + $0x86]] }
 0x160   :  { %v1349_v7 = vadd.f32 %v1347_v43, %v1343_v32  ;;  %v1350_v33 = vadd.f32 %v1348_v4, %v1344_v23  ;;  %v1383_v35 = vadd.f32 %v1381_v54, %v1377_v45  ;;  %v1384_v21 = vadd.f32 %v1382_v42, %v1378_v5 }
 0x161   :  { %v1399_v47 = vmul.f32 %v1398_v25, %v3045_v30  ;;  %v1400_v55 = vmul.f32 %v1398_v25, %v3047_v31  ;;  %v1405_v8 = vmul.f32 %v1404_v38, %v3095_v50  ;;  %v1406_v39 = vmul.f32 %v1404_v38, %v3097_v51 }
 0x162   :  { %v1355_v43 = vadd.f32 %v1353_v18, %v1349_v7  ;;  %v1356_v26 = vadd.f32 %v1354_v22, %v1350_v33  ;;  %v1389_v23 = vadd.f32 %v1387_v28, %v1383_v35  ;;  %v1390_v4 = vadd.f32 %v1388_v9, %v1384_v21 }
 0x163   :  { %v1410_v45 = vstv %s3943_s29  ;;  %v1416_v1 = vstv %s3945_s30  ;;  %v1422_v2 = vstv %s3951_s4  ;;  %v1428_v54 = vstv %s3953_s6  ;;  %s4079_s29 = sld [smem:[#allocation8 + $0x106]] }
 0x164   :  { %v1361_v42 = vadd.f32 %v1359_v0, %v1355_v43  ;;  %v1362_v46 = vadd.f32 %v1360_v3, %v1356_v26  ;;  %v1395_v56 = vadd.f32 %v1393_v29, %v1389_v23  ;;  %v1396_v40 = vadd.f32 %v1394_v20, %v1390_v4  ;;  %s4087_s30 = sld [smem:[#allocation8 + $0x186]] }
 0x165   :  { %v1411_v18 = vmul.f32 %v1410_v45, %v3137_v52  ;;  %v1412_v28 = vmul.f32 %v1410_v45, %v3139_v53  ;;  %v1417_v22 = vmul.f32 %v1416_v1, %v3195_v60  ;;  %v1418_v13 = vmul.f32 %v1416_v1, %v3197_v61  ;;  %s4089_s4 = sld [smem:[#allocation8 + $0x206]] }
 0x166   :  { %v3987_v12 = vmax.f32 %v1361_v42, 0.0  ;;  %v3989_v0 = vmax.f32 %v1362_v46, 0.0  ;;  %v1401_v29 = vadd.f32 %v1399_v47, %v1395_v56  ;;  %v1402_v20 = vadd.f32 %v1400_v55, %v1396_v40  ;;  %s4105_s6 = sld [smem:[#allocation8 + $0x286]] }
 0x167   :  { %v1423_v3 = vmul.f32 %v1422_v2, %v3283_v58  ;;  %v1424_v27 = vmul.f32 %v1422_v2, %v3285_v59  ;;  %v1429_v25 = vmul.f32 %v1428_v54, %v3363_v48  ;;  %v1430_v38 = vmul.f32 %v1428_v54, %v3365_v49 }
 0x168   :  { %4562 = vst [vmem:[#allocation32_spill] sm:$0xff] %v3989_v0  ;;  %v1407_v32 = vadd.f32 %v1405_v8, %v1401_v29  ;;  %v1408_v5 = vadd.f32 %v1406_v39, %v1402_v20  ;;  %v1434_v9 = vstv %s3963_s0  ;;  %v1440_v7 = vstv %s3965_s13  ;;  %s4107_s0 = sld [smem:[#allocation8 + $0x306]] }
 0x169   :  { %v1435_v33 = vmul.f32 %v1434_v9, %v4550_v44  ;;  %v1436_v35 = vmul.f32 %v1434_v9, %v4551_v57  ;;  %v1441_v21 = vmul.f32 %v1440_v7, %v4552_v11  ;;  %v1442_v47 = vmul.f32 %v1440_v7, %v4553_v10  ;;  %v4563_v9 = vld [vmem:[#allocation25_spill] sm:$0xff]  ;;  %s4119_s13 = sld [smem:[#allocation8 + $0x386]] }
 0x16a   :  { %v1413_v55 = vadd.f32 %v1411_v18, %v1407_v32  ;;  %v1414_v43 = vadd.f32 %v1412_v28, %v1408_v5  ;;  %v1446_v8 = vstv %s3971_s11  ;;  %v1452_v39 = vstv %s3973_s7  ;;  %s4121_s11 = sld [smem:[#allocation8 + $0x406]] }
 0x16b   :  { %v1447_v26 = vmul.f32 %v1446_v8, %v3501_v17  ;;  %v1448_v23 = vmul.f32 %v1446_v8, %v3503_v41  ;;  %v1453_v4 = vmul.f32 %v1452_v39, %v3551_v16  ;;  %v1454_v45 = vmul.f32 %v1452_v39, %v3553_v62  ;;  %s4129_s7 = sld [smem:[#allocation8 + $0x486]] }
 0x16c   :  { %v1419_v1 = vadd.f32 %v1417_v22, %v1413_v55  ;;  %v1420_v2 = vadd.f32 %v1418_v13, %v1414_v43  ;;  %v1458_v54 = vstv %s3979_s22  ;;  %v1466_v42 = vstv %s3981_s12  ;;  %s4131_s22 = sld [smem:[#allocation8 + $0x506]] }
 0x16d   :  { %v1459_v46 = vmul.f32 %v1458_v54, %v3593_v24  ;;  %v1460_v56 = vmul.f32 %v1458_v54, %v3595_v6  ;;  %v1467_v40 = vmul.f32 %v1466_v42, %v4556_v63  ;;  %v1468_v18 = vmul.f32 %v1466_v42, %v4557_v34  ;;  %v4565_v54 = vld [vmem:[#allocation27_spill] sm:$0xff]  ;;  %s4137_s12 = sld [smem:[#allocation8 + $0x586]] }
 0x16e   :  { %v1425_v28 = vadd.f32 %v1423_v3, %v1419_v1  ;;  %v1426_v29 = vadd.f32 %v1424_v27, %v1420_v2  ;;  %v1470_v20 = vstv %s3991_s14  ;;  %v1474_v32 = vstv %s3993_s23  ;;  %v4564_v1 = vld [vmem:[#allocation26_spill] sm:$0xff]  ;;  %s4139_s14 = sld [smem:[#allocation8 + $0x606]] }
 0x16f   :  { %v1471_v22 = vadd.f32 %v1470_v20, %v1467_v40  ;;  %v1472_v13 = vadd.f32 %v1470_v20, %v1468_v18  ;;  %v1475_v5 = vmul.f32 %v1474_v32, %v2853_v19  ;;  %v1476_v7 = vmul.f32 %v1474_v32, %v4563_v9  ;;  %s4145_s23 = sld [smem:[#allocation8 + $0x686]] }
 0x170   :  { %v1431_v55 = vadd.f32 %v1429_v25, %v1425_v28  ;;  %v1432_v43 = vadd.f32 %v1430_v38, %v1426_v29  ;;  %v1480_v8 = vstv %s4001_s24  ;;  %v1486_v39 = vstv %s4003_s15  ;;  %s4147_s24 = sld [smem:[#allocation8 + $0x706]] }
 0x171   :  { %v1477_v3 = vadd.f32 %v1475_v5, %v1471_v22  ;;  %v1478_v27 = vadd.f32 %v1476_v7, %v1472_v13  ;;  %v1481_v2 = vmul.f32 %v1480_v8, %v4564_v1  ;;  %v1482_v42 = vmul.f32 %v1480_v8, %v4565_v54  ;;  %s4153_s15 = sld [smem:[#allocation8 + $0x786]] }
 0x172   :  { %v1437_v40 = vadd.f32 %v1435_v33, %v1431_v55  ;;  %v1438_v18 = vadd.f32 %v1436_v35, %v1432_v43  ;;  %v1487_v20 = vmul.f32 %v1486_v39, %v2949_v14  ;;  %v1488_v25 = vmul.f32 %v1486_v39, %v2951_v15 }
 0x173   :  { %v1483_v38 = vadd.f32 %v1481_v2, %v1477_v3  ;;  %v1484_v28 = vadd.f32 %v1482_v42, %v1478_v27  ;;  %v1492_v29 = vstv %s4015_s16  ;;  %v1498_v32 = vstv %s4017_s17  ;;  %s4155_s16 = sld [smem:[#allocation8 + $0x7]] }
 0x174   :  { %v1443_v22 = vadd.f32 %v1441_v21, %v1437_v40  ;;  %v1444_v13 = vadd.f32 %v1442_v47, %v1438_v18  ;;  %v1493_v5 = vmul.f32 %v1492_v29, %v3007_v36  ;;  %v1494_v7 = vmul.f32 %v1492_v29, %v3009_v37  ;;  %s4165_s17 = sld [smem:[#allocation10 + $0x7]] }
 0x175   :  { %v1489_v33 = vadd.f32 %v1487_v20, %v1483_v38  ;;  %v1490_v35 = vadd.f32 %v1488_v25, %v1484_v28  ;;  %v1499_v55 = vmul.f32 %v1498_v32, %v3045_v30  ;;  %v1500_v43 = vmul.f32 %v1498_v32, %v3047_v31 }
 0x176   :  { %v1449_v8 = vadd.f32 %v1447_v26, %v1443_v22  ;;  %v1450_v39 = vadd.f32 %v1448_v23, %v1444_v13  ;;  %v1504_v3 = vstv %s4027_s1  ;;  %v1510_v21 = vstv %s4029_s27  ;;  %s4167_s1 = sld [smem:[#allocation8 + $0x87]] }
 0x177   :  { %v1495_v47 = vadd.f32 %v1493_v5, %v1489_v33  ;;  %v1496_v27 = vadd.f32 %v1494_v7, %v1490_v35  ;;  %v1505_v2 = vmul.f32 %v1504_v3, %v3095_v50  ;;  %v1506_v42 = vmul.f32 %v1504_v3, %v3097_v51  ;;  %s4175_s27 = sld [smem:[#allocation8 + $0x107]] }
 0x178   :  { %v1455_v40 = vadd.f32 %v1453_v4, %v1449_v8  ;;  %v1456_v18 = vadd.f32 %v1454_v45, %v1450_v39  ;;  %v1511_v20 = vmul.f32 %v1510_v21, %v3137_v52  ;;  %v1512_v26 = vmul.f32 %v1510_v21, %v3139_v53 }
 0x179   :  { %v1501_v23 = vadd.f32 %v1499_v55, %v1495_v47  ;;  %v1502_v25 = vadd.f32 %v1500_v43, %v1496_v27  ;;  %v1516_v38 = vstv %s4037_s28  ;;  %v1522_v28 = vstv %s4039_s18  ;;  %s4177_s28 = sld [smem:[#allocation8 + $0x187]] }
 0x17a   :  { %v1461_v29 = vadd.f32 %v1459_v46, %v1455_v40  ;;  %v1462_v32 = vadd.f32 %v1460_v56, %v1456_v18  ;;  %v1517_v22 = vmul.f32 %v1516_v38, %v3195_v60  ;;  %v1518_v4 = vmul.f32 %v1516_v38, %v3197_v61  ;;  %s4187_s18 = sld [smem:[#allocation8 + $0x207]] }
 0x17b   :  { %v1507_v45 = vadd.f32 %v1505_v2, %v1501_v23  ;;  %v1508_v13 = vadd.f32 %v1506_v42, %v1502_v25  ;;  %v1523_v5 = vmul.f32 %v1522_v28, %v3283_v58  ;;  %v1524_v7 = vmul.f32 %v1522_v28, %v3285_v59 }
 0x17c   :  { %v4081_v46 = vmax.f32 %v1461_v29, 0.0  ;;  %v4083_v56 = vmax.f32 %v1462_v32, 0.0  ;;  %v1528_v33 = vstv %s4047_s19  ;;  %v1534_v35 = vstv %s4049_s10  ;;  %s4189_s19 = sld [smem:[#allocation8 + $0x287]] }
 0x17d   :  { %v1513_v55 = vadd.f32 %v1511_v20, %v1507_v45  ;;  %v1514_v43 = vadd.f32 %v1512_v26, %v1508_v13  ;;  %v1529_v8 = vmul.f32 %v1528_v33, %v3363_v48  ;;  %v1530_v39 = vmul.f32 %v1528_v33, %v3365_v49  ;;  %s4205_s10 = sld [smem:[#allocation8 + $0x307]] }
 0x17e   :  { %4566 = vst [vmem:[#allocation25_spill] sm:$0xff] %v4081_v46  ;;  %4567 = vst [vmem:[#allocation26_spill] sm:$0xff] %v4083_v56  ;;  %v1535_v3 = vmul.f32 %v1534_v35, %v4550_v44  ;;  %v1536_v21 = vmul.f32 %v1534_v35, %v4551_v57  ;;  %v1540_v47 = vstv %s4055_s2  ;;  %v1546_v27 = vstv %s4057_s3  ;;  %s4207_s2 = sld [smem:[#allocation8 + $0x387]] }
 0x17f   :  { %v1519_v2 = vadd.f32 %v1517_v22, %v1513_v55  ;;  %v1520_v42 = vadd.f32 %v1518_v4, %v1514_v43  ;;  %v1541_v40 = vmul.f32 %v1540_v47, %v4552_v11  ;;  %v1542_v18 = vmul.f32 %v1540_v47, %v4553_v10  ;;  %s4215_s3 = sld [smem:[#allocation8 + $0x407]] }
 0x180   :  { %v1547_v20 = vmul.f32 %v1546_v27, %v3501_v17  ;;  %v1548_v26 = vmul.f32 %v1546_v27, %v3503_v41  ;;  %v1552_v23 = vstv %s4063_s5  ;;  %v1558_v25 = vstv %s4065_s20  ;;  %s4217_s5 = sld [smem:[#allocation8 + $0x487]] }
 0x181   :  { %v1525_v38 = vadd.f32 %v1523_v5, %v1519_v2  ;;  %v1526_v28 = vadd.f32 %v1524_v7, %v1520_v42  ;;  %v1553_v29 = vmul.f32 %v1552_v23, %v3551_v16  ;;  %v1554_v32 = vmul.f32 %v1552_v23, %v3553_v62  ;;  %s4225_s20 = sld [smem:[#allocation8 + $0x507]] }
 0x182   :  { %v1559_v22 = vmul.f32 %v1558_v25, %v3593_v24  ;;  %v1560_v4 = vmul.f32 %v1558_v25, %v3595_v6  ;;  %v1566_v45 = vstv %s4071_s21  ;;  %v1570_v13 = vstv %s4073_s25  ;;  %s4227_s21 = sld [smem:[#allocation8 + $0x587]] }
 0x183   :  { %v1531_v33 = vadd.f32 %v1529_v8, %v1525_v38  ;;  %v1532_v35 = vadd.f32 %v1530_v39, %v1526_v28  ;;  %v1567_v5 = vmul.f32 %v1566_v45, %v4556_v63  ;;  %v1568_v7 = vmul.f32 %v1566_v45, %v4557_v34  ;;  %s4233_s25 = sld [smem:[#allocation8 + $0x607]] }
 0x184   :  { %v1574_v55 = vstv %s4077_s26  ;;  %v1580_v43 = vstv %s4079_s29  ;;  %v1586_v47 = vstv %s4087_s30  ;;  %v1592_v27 = vstv %s4089_s4  ;;  %s4235_s26 = sld [smem:[#allocation8 + $0x687]]  ;;  %s4249_s4 = sld [smem:[#allocation11]] }
 0x185   :  { %v1537_v2 = vadd.f32 %v1535_v3, %v1531_v33  ;;  %v1538_v42 = vadd.f32 %v1536_v21, %v1532_v35  ;;  %v1571_v23 = vadd.f32 %v1570_v13, %v1567_v5  ;;  %v1572_v25 = vadd.f32 %v1570_v13, %v1568_v7  ;;  %s4239_s29 = sld [smem:[#allocation8 + $0x707]] }
 0x186   :  { %v1575_v56 = vmul.f32 %v1574_v55, %v2853_v19  ;;  %v1576_v8 = vmul.f32 %v1574_v55, %v4563_v9  ;;  %v1581_v39 = vmul.f32 %v1580_v43, %v4564_v1  ;;  %v1582_v38 = vmul.f32 %v1580_v43, %v4565_v54  ;;  %s4241_s30 = sld [smem:[#allocation8 + $0x787]] }
 0x187   :  { %v1543_v28 = vadd.f32 %v1541_v40, %v1537_v2  ;;  %v1544_v45 = vadd.f32 %v1542_v18, %v1538_v42  ;;  %v1587_v46 = vmul.f32 %v1586_v47, %v2949_v14  ;;  %v1588_v0 = vmul.f32 %v1586_v47, %v2951_v15 }
 0x188   :  { %v1577_v3 = vadd.f32 %v1575_v56, %v1571_v23  ;;  %v1578_v21 = vadd.f32 %v1576_v8, %v1572_v25  ;;  %v1593_v13 = vmul.f32 %v1592_v27, %v3007_v36  ;;  %v1594_v33 = vmul.f32 %v1592_v27, %v3009_v37 }
 0x189   :  { %v1549_v35 = vadd.f32 %v1547_v20, %v1543_v28  ;;  %v1550_v5 = vadd.f32 %v1548_v26, %v1544_v45  ;;  %v1598_v7 = vstv %s4105_s6  ;;  %v1604_v40 = vstv %s4107_s0  ;;  %s4251_s6 = sld [smem:[#allocation13]] }
 0x18a   :  { %v1583_v18 = vadd.f32 %v1581_v39, %v1577_v3  ;;  %v1584_v55 = vadd.f32 %v1582_v38, %v1578_v21  ;;  %v1599_v43 = vmul.f32 %v1598_v7, %v3045_v30  ;;  %v1600_v56 = vmul.f32 %v1598_v7, %v3047_v31  ;;  %s4257_s0 = sld [smem:[#allocation11 + $0x80]] }
 0x18b   :  { %v1555_v47 = vadd.f32 %v1553_v29, %v1549_v35  ;;  %v1556_v2 = vadd.f32 %v1554_v32, %v1550_v5  ;;  %v1605_v27 = vmul.f32 %v1604_v40, %v3095_v50  ;;  %v1606_v20 = vmul.f32 %v1604_v40, %v3097_v51 }
 0x18c   :  { %v1589_v26 = vadd.f32 %v1587_v46, %v1583_v18  ;;  %v1590_v42 = vadd.f32 %v1588_v0, %v1584_v55  ;;  %v1610_v23 = vstv %s4119_s13  ;;  %v1616_v25 = vstv %s4121_s11  ;;  %s4259_s13 = sld [smem:[#allocation11 + $0x100]] }
 0x18d   :  { %v1561_v8 = vadd.f32 %v1559_v22, %v1555_v47  ;;  %v1562_v39 = vadd.f32 %v1560_v4, %v1556_v2  ;;  %v1611_v38 = vmul.f32 %v1610_v23, %v3137_v52  ;;  %v1612_v29 = vmul.f32 %v1610_v23, %v3139_v53  ;;  %s4271_s11 = sld [smem:[#allocation11 + $0x180]] }
 0x18e   :  { %v1595_v32 = vadd.f32 %v1593_v13, %v1589_v26  ;;  %v1596_v28 = vadd.f32 %v1594_v33, %v1590_v42  ;;  %v1617_v46 = vmul.f32 %v1616_v25, %v3195_v60  ;;  %v1618_v0 = vmul.f32 %v1616_v25, %v3197_v61 }
 0x18f   :  { %v4159_v45 = vmax.f32 %v1561_v8, 0.0  ;;  %v4161_v22 = vmax.f32 %v1562_v39, 0.0  ;;  %v1622_v4 = vstv %s4129_s7  ;;  %v1628_v3 = vstv %s4131_s22  ;;  %s4273_s7 = sld [smem:[#allocation11 + $0x200]] }
 0x190   :  { %v1601_v21 = vadd.f32 %v1599_v43, %v1595_v32  ;;  %v1602_v13 = vadd.f32 %v1600_v56, %v1596_v28  ;;  %v1623_v33 = vmul.f32 %v1622_v4, %v3283_v58  ;;  %v1624_v35 = vmul.f32 %v1622_v4, %v3285_v59  ;;  %s4279_s22 = sld [smem:[#allocation11 + $0x280]] }
 0x191   :  { %4568 = vst [vmem:[#allocation27_spill] sm:$0xff] %v4161_v22  ;;  %v1629_v5 = vmul.f32 %v1628_v3, %v3363_v48  ;;  %v1630_v7 = vmul.f32 %v1628_v3, %v3365_v49  ;;  %v1634_v40 = vstv %s4137_s12  ;;  %v1640_v18 = vstv %s4139_s14  ;;  %s4281_s12 = sld [smem:[#allocation11 + $0x300]]  ;;  %s4297_s14 = sld [smem:[#allocation11 + $0x1]] }
 0x192   :  { %v1607_v55 = vadd.f32 %v1605_v27, %v1601_v21  ;;  %v1608_v43 = vadd.f32 %v1606_v20, %v1602_v13  ;;  %v1635_v56 = vmul.f32 %v1634_v40, %v4550_v44  ;;  %v1636_v47 = vmul.f32 %v1634_v40, %v4551_v57 }
 0x193   :  { %v1641_v2 = vmul.f32 %v1640_v18, %v4552_v11  ;;  %v1642_v26 = vmul.f32 %v1640_v18, %v4553_v10  ;;  %v1646_v42 = vstv %s4145_s23  ;;  %v1652_v23 = vstv %s4147_s24  ;;  %s4299_s23 = sld [smem:[#allocation13 + $0x1]]  ;;  %s4305_s24 = sld [smem:[#allocation11 + $0x380]] }
 0x194   :  { %v1613_v25 = vadd.f32 %v1611_v38, %v1607_v55  ;;  %v1614_v8 = vadd.f32 %v1612_v29, %v1608_v43  ;;  %v1647_v39 = vmul.f32 %v1646_v42, %v3501_v17  ;;  %v1648_v27 = vmul.f32 %v1646_v42, %v3503_v41 }
 0x195   :  { %v1653_v20 = vmul.f32 %v1652_v23, %v3551_v16  ;;  %v1654_v32 = vmul.f32 %v1652_v23, %v3553_v62  ;;  %v1658_v28 = vstv %s4153_s15  ;;  %v1666_v4 = vstv %s4155_s16  ;;  %s4307_s15 = sld [smem:[#allocation11 + $0x81]] }
 0x196   :  { %v1619_v3 = vadd.f32 %v1617_v46, %v1613_v25  ;;  %v1620_v38 = vadd.f32 %v1618_v0, %v1614_v8  ;;  %v4196_v29 = vmul.f32 %v1658_v28, %v3593_v24  ;;  %v4199_v21 = vmul.f32 %v1658_v28, %v3595_v6  ;;  %s4317_s16 = sld [smem:[#allocation11 + $0x101]] }
 0x197   :  { %v1667_v13 = vmul.f32 %v1666_v4, %v4556_v63  ;;  %v1668_v40 = vmul.f32 %v1666_v4, %v4557_v34  ;;  %v1670_v18 = vstv %s4165_s17  ;;  %v1674_v55 = vstv %s4167_s1  ;;  %s4319_s17 = sld [smem:[#allocation11 + $0x181]] }
 0x198   :  { %v1625_v46 = vadd.f32 %v1623_v33, %v1619_v3  ;;  %v1626_v43 = vadd.f32 %v1624_v35, %v1620_v38  ;;  %v1675_v0 = vmul.f32 %v1674_v55, %v2853_v19  ;;  %v1676_v42 = vmul.f32 %v1674_v55, %v4563_v9  ;;  %s4329_s1 = sld [smem:[#allocation11 + $0x201]] }
 0x199   :  { %v1671_v23 = vadd.f32 %v1670_v18, %v1667_v13  ;;  %v1672_v25 = vadd.f32 %v1670_v18, %v1668_v40  ;;  %v1680_v8 = vstv %s4175_s27  ;;  %v1686_v63 = vstv %s4177_s28  ;;  %s4331_s27 = sld [smem:[#allocation11 + $0x281]] }
 0x19a   :  { %v1631_v28 = vadd.f32 %v1629_v5, %v1625_v46  ;;  %v1632_v34 = vadd.f32 %v1630_v7, %v1626_v43  ;;  %v1681_v4 = vmul.f32 %v1680_v8, %v4564_v1  ;;  %v1682_v22 = vmul.f32 %v1680_v8, %v4565_v54  ;;  %s4337_s28 = sld [smem:[#allocation11 + $0x301]] }
 0x19b   :  { %v1677_v33 = vadd.f32 %v1675_v0, %v1671_v23  ;;  %v1678_v19 = vadd.f32 %v1676_v42, %v1672_v25  ;;  %v1687_v9 = vmul.f32 %v1686_v63, %v2949_v14  ;;  %v1688_v35 = vmul.f32 %v1686_v63, %v2951_v15 }
 0x19c   :  { %v1637_v3 = vadd.f32 %v1635_v56, %v1631_v28  ;;  %v1638_v38 = vadd.f32 %v1636_v47, %v1632_v34  ;;  %v1692_v5 = vstv %s4187_s18  ;;  %v1698_v7 = vstv %s4189_s19  ;;  %s4339_s18 = sld [smem:[#allocation11 + $0x2]]  ;;  %s4345_s19 = sld [smem:[#allocation11 + $0x381]] }
 0x19d   :  { %v1683_v13 = vadd.f32 %v1681_v4, %v1677_v33  ;;  %v1684_v1 = vadd.f32 %v1682_v22, %v1678_v19  ;;  %v1693_v54 = vmul.f32 %v1692_v5, %v3007_v36  ;;  %v1694_v40 = vmul.f32 %v1692_v5, %v3009_v37 }
 0x19e   :  { %v1643_v18 = vadd.f32 %v1641_v2, %v1637_v3  ;;  %v1644_v14 = vadd.f32 %v1642_v26, %v1638_v38  ;;  %v1699_v15 = vmul.f32 %v1698_v7, %v3045_v30  ;;  %v1700_v56 = vmul.f32 %v1698_v7, %v3047_v31 }
 0x19f   :  { %v1689_v47 = vadd.f32 %v1687_v9, %v1683_v13  ;;  %v1690_v55 = vadd.f32 %v1688_v35, %v1684_v1  ;;  %v1704_v46 = vstv %s4205_s10  ;;  %v1710_v43 = vstv %s4207_s2  ;;  %s4347_s10 = sld [smem:[#allocation13 + $0x2]] }
 0x1a0   :  { %v1649_v36 = vadd.f32 %v1647_v39, %v1643_v18  ;;  %v1650_v37 = vadd.f32 %v1648_v27, %v1644_v14  ;;  %v1705_v22 = vmul.f32 %v1704_v46, %v3095_v50  ;;  %v1706_v2 = vmul.f32 %v1704_v46, %v3097_v51  ;;  %v4570_v46 = vld [vmem:[#allocation29_spill] sm:$0xff]  ;;  %s4355_s2 = sld [smem:[#allocation11 + $0x82]] }
 0x1a1   :  { %v1695_v30 = vadd.f32 %v1693_v54, %v1689_v47  ;;  %v1696_v31 = vadd.f32 %v1694_v40, %v1690_v55  ;;  %v1711_v26 = vmul.f32 %v1710_v43, %v3137_v52  ;;  %v1712_v0 = vmul.f32 %v1710_v43, %v3139_v53 }
 0x1a2   :  { %v1655_v42 = vadd.f32 %v1653_v20, %v1649_v36  ;;  %v1656_v23 = vadd.f32 %v1654_v32, %v1650_v37  ;;  %v1716_v25 = vstv %s4215_s3  ;;  %v1722_v39 = vstv %s4217_s5  ;;  %v4573_v36 = vld [vmem:[#allocation23_spill] sm:$0xff]  ;;  %s4357_s3 = sld [smem:[#allocation11 + $0x102]] }
 0x1a3   :  { %v1701_v27 = vadd.f32 %v1699_v15, %v1695_v30  ;;  %v1702_v50 = vadd.f32 %v1700_v56, %v1696_v31  ;;  %v1717_v51 = vmul.f32 %v1716_v25, %v3195_v60  ;;  %v1718_v8 = vmul.f32 %v1716_v25, %v3197_v61  ;;  %s4371_s5 = sld [smem:[#allocation11 + $0x182]] }
 0x1a4   :  { %v1661_v52 = vadd.f32 %v4196_v29, %v1655_v42  ;;  %v1662_v53 = vadd.f32 %v4199_v21, %v1656_v23  ;;  %v1723_v20 = vmul.f32 %v1722_v39, %v3283_v58  ;;  %v1724_v32 = vmul.f32 %v1722_v39, %v3285_v59 }
 0x1a5   :  { %v1707_v60 = vadd.f32 %v1705_v22, %v1701_v27  ;;  %v1708_v61 = vadd.f32 %v1706_v2, %v1702_v50  ;;  %v1728_v63 = vstv %s4225_s20  ;;  %v1734_v28 = vstv %s4227_s21  ;;  %v4574_v22 = vld [vmem:[#allocation24_spill] sm:$0xff]  ;;  %s4373_s20 = sld [smem:[#allocation11 + $0x202]] }
 0x1a6   :  { %v4263_v34 = vmax.f32 %v1661_v52, 0.0  ;;  %v4265_v29 = vmax.f32 %v1662_v53, 0.0  ;;  %v1729_v58 = vmul.f32 %v1728_v63, %v3363_v48  ;;  %v1730_v59 = vmul.f32 %v1728_v63, %v3365_v49  ;;  %v4575_v53 = vld [vmem:[#allocation32_spill] sm:$0xff]  ;;  %s4383_s21 = sld [smem:[#allocation11 + $0x282]] }
 0x1a7   :  { %v1713_v21 = vadd.f32 %v1711_v26, %v1707_v60  ;;  %v1714_v4 = vadd.f32 %v1712_v0, %v1708_v61  ;;  %v1735_v33 = vmul.f32 %v1734_v28, %v4550_v44  ;;  %v1736_v19 = vmul.f32 %v1734_v28, %v4551_v57  ;;  %v4577_v61 = vld [vmem:[#allocation26_spill] sm:$0xff] }
 0x1a8   :  { %v1740_v9 = vstv %s4233_s25  ;;  %v1746_v35 = vstv %s4235_s26  ;;  %v1752_v3 = vstv %s4239_s29  ;;  %v1758_v38 = vstv %s4241_s30  ;;  %s4385_s25 = sld [smem:[#allocation11 + $0x302]]  ;;  %s4395_s29 = sld [smem:[#allocation11 + $0x3]] }
 0x1a9   :  { %v1719_v48 = vadd.f32 %v1717_v51, %v1713_v21  ;;  %v1720_v49 = vadd.f32 %v1718_v8, %v1714_v4  ;;  %v1741_v44 = vmul.f32 %v1740_v9, %v4552_v11  ;;  %v1742_v57 = vmul.f32 %v1740_v9, %v4553_v10  ;;  %s4393_s26 = sld [smem:[#allocation11 + $0x382]]  ;;  %s4401_s30 = sld [smem:[#allocation13 + $0x3]] }
 0x1aa   :  { %v1747_v5 = vmul.f32 %v1746_v35, %v3501_v17  ;;  %v1748_v7 = vmul.f32 %v1746_v35, %v3503_v41  ;;  %v1753_v13 = vmul.f32 %v1752_v3, %v3551_v16  ;;  %v1754_v1 = vmul.f32 %v1752_v3, %v3553_v62  ;;  %v4569_v17 = vld [vmem:[#allocation28_spill] sm:$0xff]  ;;  %v4571_v62 = vld [vmem:[#allocation30_spill] sm:$0xff] }
 0x1ab   :  { %v1725_v54 = vadd.f32 %v1723_v20, %v1719_v48  ;;  %v1726_v40 = vadd.f32 %v1724_v32, %v1720_v49  ;;  %v1759_v18 = vmul.f32 %v1758_v38, %v3593_v24  ;;  %v1760_v14 = vmul.f32 %v1758_v38, %v3595_v6  ;;  %v4572_v6 = vld [vmem:[#allocation31_spill] sm:$0xff]  ;;  %v4576_v32 = vld [vmem:[#allocation25_spill] sm:$0xff] }
 0x1ac   :  { %v1766_v15 = vstv %s4249_s4  ;;  %v1770_v56 = vstv %s4251_s6  ;;  %v1774_v47 = vstv %s4257_s0  ;;  %v1780_v11 = vstv %s4259_s13  ;;  %s4403_s4 = sld [smem:[#allocation11 + $0x83]] }
 0x1ad   :  { %v1731_v55 = vadd.f32 %v1729_v58, %v1725_v54  ;;  %v1732_v10 = vadd.f32 %v1730_v59, %v1726_v40  ;;  %v1767_v41 = vmul.f32 %v1766_v15, %v4569_v17  ;;  %v1768_v16 = vmul.f32 %v1766_v15, %v4570_v46  ;;  %s4413_s6 = sld [smem:[#allocation11 + $0x103]] }
 0x1ae   :  { %v1775_v24 = vmul.f32 %v1774_v47, %v4571_v62  ;;  %v1776_v43 = vmul.f32 %v1774_v47, %v4572_v6  ;;  %v1781_v37 = vmul.f32 %v1780_v11, %v4573_v36  ;;  %v1782_v2 = vmul.f32 %v1780_v11, %v4574_v22  ;;  %s4415_s0 = sld [smem:[#allocation11 + $0x183]] }
 0x1af   :  { %v1737_v30 = vadd.f32 %v1735_v33, %v1731_v55  ;;  %v1738_v31 = vadd.f32 %v1736_v19, %v1732_v10  ;;  %v1771_v26 = vadd.f32 %v1770_v56, %v1767_v41  ;;  %v1772_v0 = vadd.f32 %v1770_v56, %v1768_v16  ;;  %v4578_v33 = vld [vmem:[#allocation27_spill] sm:$0xff]  ;;  %s4425_s13 = sld [smem:[#allocation11 + $0x203]] }
 0x1b0   :  { %v1786_v42 = vstv %s4271_s11  ;;  %v1792_v23 = vstv %s4273_s7  ;;  %v1798_v25 = vstv %s4279_s22  ;;  %v1804_v39 = vstv %s4281_s12  ;;  %s4427_s11 = sld [smem:[#allocation11 + $0x283]]  ;;  %s4447_s12 = sld [smem:[#allocation14]] }
 0x1b1   :  { %v1743_v27 = vadd.f32 %v1741_v44, %v1737_v30  ;;  %v1744_v50 = vadd.f32 %v1742_v57, %v1738_v31  ;;  %v1777_v51 = vadd.f32 %v1775_v24, %v1771_v26  ;;  %v1778_v8 = vadd.f32 %v1776_v43, %v1772_v0  ;;  %s4439_s7 = sld [smem:[#allocation11 + $0x303]] }
 0x1b2   :  { %v1787_v52 = vmul.f32 %v1786_v42, %v3987_v12  ;;  %v1788_v20 = vmul.f32 %v1786_v42, %v4575_v53  ;;  %v1793_v60 = vmul.f32 %v1792_v23, %v4576_v32  ;;  %v1794_v63 = vmul.f32 %v1792_v23, %v4577_v61  ;;  %s4441_s22 = sld [smem:[#allocation11 + $0x383]] }
 0x1b3   :  { %v1749_v28 = vadd.f32 %v1747_v5, %v1743_v27  ;;  %v1750_v58 = vadd.f32 %v1748_v7, %v1744_v50  ;;  %v1783_v59 = vadd.f32 %v1781_v37, %v1777_v51  ;;  %v1784_v21 = vadd.f32 %v1782_v2, %v1778_v8 }
 0x1b4   :  { %v1799_v4 = vmul.f32 %v1798_v25, %v4159_v45  ;;  %v1800_v19 = vmul.f32 %v1798_v25, %v4578_v33  ;;  %v1805_v9 = vmul.f32 %v1804_v39, %v4263_v34  ;;  %v1806_v35 = vmul.f32 %v1804_v39, %v4265_v29 }
 0x1b5   :  { %v1755_v3 = vadd.f32 %v1753_v13, %v1749_v28  ;;  %v1756_v38 = vadd.f32 %v1754_v1, %v1750_v58  ;;  %v1789_v48 = vadd.f32 %v1787_v52, %v1783_v59  ;;  %v1790_v49 = vadd.f32 %v1788_v20, %v1784_v21 }
 0x1b6   :  { %v1810_v44 = vstv %s4305_s24  ;;  %v1818_v57 = vstv %s4297_s14  ;;  %v1822_v54 = vstv %s4299_s23  ;;  %v1826_v40 = vstv %s4307_s15  ;;  %s4451_s14 = sld [smem:[#allocation14 + $0x1]]  ;;  %s4453_s23 = sld [smem:[#allocation14 + $0x2]] }
 0x1b7   :  { %v1761_v5 = vadd.f32 %v1759_v18, %v1755_v3  ;;  %v1762_v7 = vadd.f32 %v1760_v14, %v1756_v38  ;;  %v1795_v15 = vadd.f32 %v1793_v60, %v1789_v48  ;;  %v1796_v56 = vadd.f32 %v1794_v63, %v1790_v49  ;;  %s2400_s24 = sld [smem:[#allocation14 + $0x3]] }
 0x1b8   :  { %v1819_v47 = vmul.f32 %v1818_v57, %v4569_v17  ;;  %v1820_v13 = vmul.f32 %v1818_v57, %v4570_v46  ;;  %v1827_v1 = vmul.f32 %v1826_v40, %v4571_v62  ;;  %v1828_v11 = vmul.f32 %v1826_v40, %v4572_v6 }
 0x1b9   :  { %v4341_v55 = vmax.f32 %v1761_v5, 0.0  ;;  %v4343_v18 = vmax.f32 %v1762_v7, 0.0  ;;  %v1801_v14 = vadd.f32 %v1799_v4, %v1795_v15  ;;  %v1802_v10 = vadd.f32 %v1800_v19, %v1796_v56 }
 0x1ba   :  { %v1823_v41 = vadd.f32 %v1822_v54, %v1819_v47  ;;  %v1824_v16 = vadd.f32 %v1822_v54, %v1820_v13  ;;  %v1832_v24 = vstv %s4317_s16  ;;  %v1838_v43 = vstv %s4319_s17 }
 0x1bb   :  { %v1807_v37 = vadd.f32 %v1805_v9, %v1801_v14  ;;  %v1808_v2 = vadd.f32 %v1806_v35, %v1802_v10  ;;  %v1811_v30 = vmul.f32 %v1810_v44, %v4341_v55  ;;  %v1812_v31 = vmul.f32 %v1810_v44, %v4343_v18 }
 0x1bc   :  { %v1829_v26 = vadd.f32 %v1827_v1, %v1823_v41  ;;  %v1830_v0 = vadd.f32 %v1828_v11, %v1824_v16  ;;  %v1833_v42 = vmul.f32 %v1832_v24, %v4573_v36  ;;  %v1834_v23 = vmul.f32 %v1832_v24, %v4574_v22 }
 0x1bd   :  { %v4359_v25 = vadd.f32 %v1811_v30, %v1807_v37  ;;  %v4361_v39 = vadd.f32 %v1812_v31, %v1808_v2  ;;  %v1839_v27 = vmul.f32 %v1838_v43, %v3987_v12  ;;  %v1840_v50 = vmul.f32 %v1838_v43, %v4575_v53 }
 0x1be   :  { %v1835_v51 = vadd.f32 %v1833_v42, %v1829_v26  ;;  %v1836_v8 = vadd.f32 %v1834_v23, %v1830_v0  ;;  %v1844_v52 = vstv %s4329_s1  ;;  %v1850_v20 = vstv %s4331_s27 }
 0x1bf   :  { %v1815_v60 = vmax.f32 %v4359_v25, 0.0  ;;  %v1816_v63 = vmax.f32 %v4361_v39, 0.0  ;;  %v1845_v28 = vmul.f32 %v1844_v52, %v4576_v32  ;;  %v1846_v58 = vmul.f32 %v1844_v52, %v4577_v61 }
 0x1c0   :  { %v1841_v59 = vadd.f32 %v1839_v27, %v1835_v51  ;;  %v1842_v21 = vadd.f32 %v1840_v50, %v1836_v8  ;;  %v1851_v4 = vmul.f32 %v1850_v20, %v4159_v45  ;;  %v1852_v19 = vmul.f32 %v1850_v20, %v4578_v33 }
 0x1c1   :  { %v1856_v9 = vstv %s4337_s28  ;;  %v1862_v35 = vstv %s4345_s19  ;;  %v1870_v3 = vstv %s4339_s18  ;;  %v1874_v38 = vstv %s4347_s10 }
 0x1c2   :  { %v1847_v48 = vadd.f32 %v1845_v28, %v1841_v59  ;;  %v1848_v49 = vadd.f32 %v1846_v58, %v1842_v21  ;;  %v1857_v44 = vmul.f32 %v1856_v9, %v4263_v34  ;;  %v1858_v57 = vmul.f32 %v1856_v9, %v4265_v29 }
 0x1c3   :  { %v1863_v54 = vmul.f32 %v1862_v35, %v4341_v55  ;;  %v1864_v40 = vmul.f32 %v1862_v35, %v4343_v18  ;;  %v1871_v5 = vmul.f32 %v1870_v3, %v4569_v17  ;;  %v1872_v7 = vmul.f32 %v1870_v3, %v4570_v46 }
 0x1c4   :  { %v1853_v15 = vadd.f32 %v1851_v4, %v1847_v48  ;;  %v1854_v56 = vadd.f32 %v1852_v19, %v1848_v49  ;;  %v1878_v47 = vstv %s4355_s2  ;;  %v1884_v13 = vstv %s4357_s3 }
 0x1c5   :  { %v1875_v1 = vadd.f32 %v1874_v38, %v1871_v5  ;;  %v1876_v11 = vadd.f32 %v1874_v38, %v1872_v7  ;;  %v1879_v14 = vmul.f32 %v1878_v47, %v4571_v62  ;;  %v1880_v10 = vmul.f32 %v1878_v47, %v4572_v6 }
 0x1c6   :  { %v1859_v41 = vadd.f32 %v1857_v44, %v1853_v15  ;;  %v1860_v16 = vadd.f32 %v1858_v57, %v1854_v56  ;;  %v1885_v24 = vmul.f32 %v1884_v13, %v4573_v36  ;;  %v1886_v43 = vmul.f32 %v1884_v13, %v4574_v22 }
 0x1c7   :  { %v1881_v37 = vadd.f32 %v1879_v14, %v1875_v1  ;;  %v1882_v2 = vadd.f32 %v1880_v10, %v1876_v11  ;;  %v1890_v30 = vstv %s4371_s5  ;;  %v1896_v31 = vstv %s4373_s20 }
 0x1c8   :  { %v4407_v26 = vadd.f32 %v1863_v54, %v1859_v41  ;;  %v4409_v0 = vadd.f32 %v1864_v40, %v1860_v16  ;;  %v1891_v42 = vmul.f32 %v1890_v30, %v3987_v12  ;;  %v1892_v23 = vmul.f32 %v1890_v30, %v4575_v53 }
 0x1c9   :  { %v1887_v27 = vadd.f32 %v1885_v24, %v1881_v37  ;;  %v1888_v50 = vadd.f32 %v1886_v43, %v1882_v2  ;;  %v1897_v51 = vmul.f32 %v1896_v31, %v4576_v32  ;;  %v1898_v8 = vmul.f32 %v1896_v31, %v4577_v61 }
 0x1ca   :  { %v1867_v52 = vmax.f32 %v4407_v26, 0.0  ;;  %v1868_v20 = vmax.f32 %v4409_v0, 0.0  ;;  %v1902_v28 = vstv %s4383_s21  ;;  %v1908_v58 = vstv %s4385_s25 }
 0x1cb   :  { %v1893_v59 = vadd.f32 %v1891_v42, %v1887_v27  ;;  %v1894_v21 = vadd.f32 %v1892_v23, %v1888_v50  ;;  %v1903_v4 = vmul.f32 %v1902_v28, %v4159_v45  ;;  %v1904_v19 = vmul.f32 %v1902_v28, %v4578_v33 }
 0x1cc   :  { %v1909_v9 = vmul.f32 %v1908_v58, %v4263_v34  ;;  %v1910_v35 = vmul.f32 %v1908_v58, %v4265_v29  ;;  %v1914_v3 = vstv %s4393_s26  ;;  %v1922_v38 = vstv %s4395_s29 }
 0x1cd   :  { %v1899_v48 = vadd.f32 %v1897_v51, %v1893_v59  ;;  %v1900_v49 = vadd.f32 %v1898_v8, %v1894_v21  ;;  %v1915_v44 = vmul.f32 %v1914_v3, %v4341_v55  ;;  %v1916_v57 = vmul.f32 %v1914_v3, %v4343_v18 }
 0x1ce   :  { %v1923_v54 = vmul.f32 %v1922_v38, %v4569_v17  ;;  %v1924_v40 = vmul.f32 %v1922_v38, %v4570_v46  ;;  %v1926_v5 = vstv %s4401_s30  ;;  %v1930_v7 = vstv %s4403_s4 }
 0x1cf   :  { %v1905_v15 = vadd.f32 %v1903_v4, %v1899_v48  ;;  %v1906_v56 = vadd.f32 %v1904_v19, %v1900_v49  ;;  %v1931_v47 = vmul.f32 %v1930_v7, %v4571_v62  ;;  %v1932_v13 = vmul.f32 %v1930_v7, %v4572_v6 }
 0x1d0   :  { %v1927_v1 = vadd.f32 %v1926_v5, %v1923_v54  ;;  %v1928_v11 = vadd.f32 %v1926_v5, %v1924_v40  ;;  %v1936_v14 = vstv %s4413_s6  ;;  %v1942_v17 = vstv %s4415_s0 }
 0x1d1   :  { %v1911_v46 = vadd.f32 %v1909_v9, %v1905_v15  ;;  %v1912_v10 = vadd.f32 %v1910_v35, %v1906_v56  ;;  %v1937_v41 = vmul.f32 %v1936_v14, %v4573_v36  ;;  %v1938_v16 = vmul.f32 %v1936_v14, %v4574_v22 }
 0x1d2   :  { %v1933_v62 = vadd.f32 %v1931_v47, %v1927_v1  ;;  %v1934_v6 = vadd.f32 %v1932_v13, %v1928_v11  ;;  %v1943_v24 = vmul.f32 %v1942_v17, %v3987_v12  ;;  %v1944_v43 = vmul.f32 %v1942_v17, %v4575_v53 }
 0x1d3   :  { %v1917_v37 = vadd.f32 %v1915_v44, %v1911_v46  ;;  %v1918_v2 = vadd.f32 %v1916_v57, %v1912_v10  ;;  %v1948_v30 = vstv %s4425_s13  ;;  %v1954_v31 = vstv %s4427_s11 }
 0x1d4   :  { %v1939_v42 = vadd.f32 %v1937_v41, %v1933_v62  ;;  %v1940_v36 = vadd.f32 %v1938_v16, %v1934_v6  ;;  %v1949_v22 = vmul.f32 %v1948_v30, %v4576_v32  ;;  %v1950_v23 = vmul.f32 %v1948_v30, %v4577_v61 }
 0x1d5   :  { %v1919_v27 = vmax.f32 %v1917_v37, 0.0  ;;  %v1920_v50 = vmax.f32 %v1918_v2, 0.0  ;;  %v1955_v51 = vmul.f32 %v1954_v31, %v4159_v45  ;;  %v1956_v12 = vmul.f32 %v1954_v31, %v4578_v33 }
 0x1d6   :  { %v1945_v53 = vadd.f32 %v1943_v24, %v1939_v42  ;;  %v1946_v8 = vadd.f32 %v1944_v43, %v1940_v36  ;;  %v1960_v28 = vstv %s4439_s7  ;;  %v1966_v58 = vstv %s4441_s22 }
 0x1d7   :  { %v1961_v59 = vmul.f32 %v1960_v28, %v4263_v34  ;;  %v1962_v21 = vmul.f32 %v1960_v28, %v4265_v29  ;;  %v1967_v32 = vmul.f32 %v1966_v58, %v4341_v55  ;;  %v1968_v61 = vmul.f32 %v1966_v58, %v4343_v18 }
 0x1d8   :  { %v1951_v4 = vadd.f32 %v1949_v22, %v1945_v53  ;;  %v1952_v19 = vadd.f32 %v1950_v23, %v1946_v8  ;;  %v1974_v45 = vstv %s4447_s12  ;;  %v1978_v33 = vstv %s4515_s8  ;;  %s2564_s8 = smov [#allocation16]  }
 0x1d9   :  { %v1975_v9 = vmul.f32 %v1974_v45, %v1815_v60  ;;  %v1976_v34 = vmul.f32 %v1974_v45, %v1816_v63  ;;  %v1982_v35 = vstv %s4451_s14  ;;  %v1988_v29 = vstv %s4453_s23  ;;  %s2072_s17 = sshll.u32 %s2564_s8, 4  ;;  %s2073_s17 = int_to_ptr.vmem [resolvable:$true] %s2072_s17 }
 0x1da   :  { %v1957_v3 = vadd.f32 %v1955_v51, %v1951_v4  ;;  %v1958_v55 = vadd.f32 %v1956_v12, %v1952_v19  ;;  %v1983_v18 = vmul.f32 %v1982_v35, %v1867_v52  ;;  %v1984_v38 = vmul.f32 %v1982_v35, %v1868_v20  ;;  %s2520_s1 = scalar_lea.vmem %s2073_s17, 64  ;;  %p2525_p6 = scmp.lt.s32.totalorder %s2073_s17, %s2073_s17 }
 0x1db   :  { %v1979_v48 = vadd.f32 %v1978_v33, %v1975_v9  ;;  %v1980_v49 = vadd.f32 %v1978_v33, %v1976_v34  ;;  %v1989_v54 = vmul.f32 %v1988_v29, %v1919_v27  ;;  %v1990_v25 = vmul.f32 %v1988_v29, %v1920_v50  ;;  %p2521_p5 = scmp.ne.s32.totalorder %s2073_s17, %s2520_s1  ;;  %p2526_p7 = scmp.lt.s32.totalorder %s2520_s1, %s2520_s1 }
 0x1dc   :  { %v1963_v44 = vadd.f32 %v1961_v59, %v1957_v3  ;;  %v1964_v57 = vadd.f32 %v1962_v21, %v1958_v55  ;;  %v1994_v5 = vstv %s2400_s24  ;;  %v2001_v26 = vlaneseq }
 0x1dd   :  { %v1985_v60 = vadd.f32 %v1983_v18, %v1979_v48  ;;  %v1986_v40 = vadd.f32 %v1984_v38, %v1980_v49  ;;  %vm2036_vm1 = vcmask 1040384   ;;  %v2563_v8 = vmov 1966171168   ;;  %p2527_p8 = por %p2526_p7, %p2525_p6 }
 0x1de   :  { %v1969_v39 = vadd.f32 %v1967_v32, %v1963_v44  ;;  %v1970_v63 = vadd.f32 %v1968_v61, %v1964_v57  ;;  %vm4483_vm0 = vcmp.lt.s32.totalorder %v2001_v26, 256  ;;  %v2017_v24 = vshrl.u32 %v2001_v26, 7 }
 0x1df   :  { %v1991_v56 = vadd.f32 %v1989_v54, %v1985_v60  ;;  %v1992_v47 = vadd.f32 %v1990_v25, %v1986_v40  ;;  %v2049_v28 = vunpack.c.l.s4 %v2563_v8  ;;  %p2528_p9 = pnand %p2527_p8, %p2521_p5 }
 0x1e0   :  { %v1971_v7 = vmax.f32 %v1969_v39, 0.0  ;;  %v1972_v15 = vmax.f32 %v1970_v63, 0.0  ;;  %v2018_v43 = vsub.s32 0, %v2017_v24  ;;  %v2022_v37 = vsub.s32 1, %v2017_v24 }
 0x1e1   :  { %v2050_v58 = vunpack.c.0.s8 %v2049_v28 }
 0x1e2   :  { %v1995_v52 = vmul.f32 %v1994_v5, %v1971_v7  ;;  %v1996_v13 = vmul.f32 %v1994_v5, %v1972_v15 }
 0x1e3   :  { %v2053_v21 = vsub.s32 %v2050_v58, %v2017_v24 }
 0x1e4   :  { %v1997_v0 = vadd.f32 %v1995_v52, %v1991_v56  ;;  %v1998_v20 = vadd.f32 %v1996_v13, %v1992_v47 }
 0x1e6   :  { %v1999_v11 = vmax.f32 %v1997_v0, 0.0  ;;  %v2000_v14 = vmax.f32 %v1998_v20, 0.0 }
 0x1e8   :  { %v2005_v17 = vsel %vm4483_vm0, %v1999_v11, -inf  ;;  %v2006_v46 = vsel %vm4483_vm0, %v2000_v14, -inf }
 0x1e9   :  { %v2007_v10 = vmax.f32 %v2005_v17, %v2006_v46 }
 0x1eb   :  { %v2008_v41 = vsub.f32 %v1999_v11, %v2007_v10  ;;  %v2009_v16 = vsub.f32 %v2000_v14, %v2007_v10 }
 0x1ed   :  { %v2010_v62 = vmul.f32 1.442695, %v2008_v41  ;;  %v2012_v6 = vmul.f32 1.442695, %v2009_v16 }
 0x1ef   :  { %2414 = vpow2.f32 %v2010_v62 }
 0x1f0   :  { %2416 = vpow2.f32 %v2012_v6 }
 0x1f9   :  { %v2415_v2 = vpop.eup %2414 }
 0x1fa   :  { %v2417_v30 = vpop.eup %2416  ;;  %v2019_v31 = vrot.slane %v2415_v2, %v2018_v43  ;;  %v2023_v42 = vrot.slane %v2415_v2, %v2022_v37 }
 0x1fb   :  { %v2027_v36 = vrot.slane %v2417_v30, %v2018_v43  ;;  %v2031_v22 = vrot.slane %v2417_v30, %v2022_v37 }
 0x1fc   :  { %v2037_v23 = vsel %vm2036_vm1, %v2019_v31, 0.0  ;;  %v2040_v27 = vsel %vm2036_vm1, %v2023_v42, 0.0 }
 0x1fd   :  { %v2038_v50 = vsel %vm2036_vm1, %v2027_v36, 0.0  ;;  %v2041_v51 = vsel %vm2036_vm1, %v2031_v22, 0.0 }
 0x1fe   :  { %v2039_v12 = vadd.f32 %v2038_v50, %v2037_v23  ;;  %v2042_v53 = vadd.f32 %v2041_v51, %v2040_v27 }
 0x200   :  { %2418 = vrcp.f32 %v2039_v12 }
 0x201   :  { %2420 = vrcp.f32 %v2042_v53 }
 0x20a   :  { %v2419_v59 = vpop.eup %2418 }
 0x20b   :  { %v2421_v32 = vpop.eup %2420 }
 0x20c   :  { %v2047_v61 = vcombine.low %v2419_v59, %v2421_v32 }
 0x20e   :  { %v2054_v4 = vrot.slane %v2047_v61, %v2053_v21 }
 0x210   :  { %v2061_v19 = vrot.slane %v2054_v4, %v2053_v21 }
 0x212   :  { %v2063_v45 = vmul.f32 %v2415_v2, %v2061_v19  ;;  %v2064_v33 = vmul.f32 %v2417_v30, %v2061_v19 }
 0x214   :  { %2065 = vst.msk [vmem:[#allocation16] sm:$0x3] %vm4483_vm0, %v2063_v45  ;;  %2066 = vst.msk [vmem:[#allocation16 + $0x2] sm:$0x3] %vm4483_vm0, %v2064_v33 }
 0x215   :  { %2531 = shalt.err (!%p2528_p9)
}
 0x216   :  { %s2532_s18 = scalar_lea.hbm %s4516_s9, 64 }
 0x217   :  { %p2533_p10 = scmp.ne.s32.totalorder %s4516_s9, %s2532_s18  ;;  %p2536_p11 = scmp.lt.u32.totalorder %s2532_s18, %s4516_s9 }
 0x219   :  { %p2538_p12 = pnand %p2536_p11, %p2533_p10 }
 0x21b   :  { %2541 = shalt.err (!%p2538_p12)
}
 0x21c   :  { %s2565_s5 = smov 32   ;;  %s2566_s20 = smov 2  }
 0x21d   :  { %2078 = dma.vmem_to_hbm [thread:$0]  %s2073_s17, 64, %s4516_s9, [#allocation4], %s2565_s5, %s2565_s5, %s2566_s20  }
 0x21e   :  { %2552 = dma.done.wait [#allocation4], 64  }
 0x21f   :  { %2553 = vsyncadd [#allocation4], 4294967232 }
 0x220   :  { %2082 = vsyncpa [#allocation4], 1 }
 0x221   :  { %2083 = vsyncpa [#allocation5], 1 }
 0x222   :  { %2084 = vsyncpa [#allocation6], 1 }
 0x223   :  { %2085 = vsyncpa [#allocation9], 1 }
 0x224   :  { %2086 = vsyncpa [#allocation12], 1 }
 0x225   :  { %2087 = vsyncpa [#allocation15], 1 }

</bundles_post_ra>
